<compile_context>
chip_gen: v7x
topology: tpu7x:2x2x1
jax: 0.10.0
libtpu: 0.0.40
codegen_flags: <defaults>
</compile_context>

<pallas_src>
import jax
import jax.numpy as jnp
import numpy as np
from jax.experimental import pallas as pl
from jax.experimental.pallas import tpu as pltpu

CHANNEL = 64  # fixed by the PyTorch module


def _round_up(x, m):
    return ((x + m - 1) // m) * m


def fusioner_d_kernel(alpha_ref, xi_ref, xv_ref, w_ref, b_ref, o_ref, xstack_ref):
    """One batch-block (NB batch elements) per grid step.

    alpha_ref  : SMEM (1,)                   PReLU slope (nn.PReLU() default: one shared scalar)
    xi_ref     : VMEM (NB, H, W, C)          feature_D_I (NHWC)
    xv_ref     : VMEM (NB, H, W, C)          feature_D_V (NHWC)
    w_ref      : VMEM (3C, 3C) bf16          BN-folded conv weights, [dy*C+cin, dx*C+cout]
    b_ref      : VMEM (1, C)                 BN-folded bias
    o_ref      : VMEM (NB, H, W, C)          output
    xstack_ref : VMEM (NB, H, Wp, 3C) f32    zero-padded, dy-channel-stacked conv LHS
    """
    NB, H, W, C = xi_ref.shape
    _, _, Wp, C3 = xstack_ref.shape

    # ---- Assemble the dy-channel-stacked, zero-padded conv LHS in VMEM. ------
    # xstack[n, h, j, dy*C + cin] = xpad[n, h + dy, j, cin]   (1-pixel zero halo)
    # Built directly from xi with three shifted block stores; halo rows/columns
    # and the sublane padding (Wp >= W + 2, multiple of 8) stay zero.  Re-zeroed
    # every step: with a "parallel" grid each core owns its scratch, so a
    # program_id==0 one-shot init would be unsafe.
    xstack_ref[...] = jnp.zeros_like(xstack_ref)
    xi_f = xi_ref[...]
    xstack_ref[:, 1:H, 1:W + 1, 0:C] = xi_f[:, 0:H - 1]          # dy = 0
    xstack_ref[:, :, 1:W + 1, C:2 * C] = xi_f                    # dy = 1
    xstack_ref[:, 0:H - 1, 1:W + 1, 2 * C:3 * C] = xi_f[:, 1:H]  # dy = 2

    # ---- One wide MXU matmul: (NB*H*Wp, 3C) @ (3C, 3C), f32 accumulation. ----
    # Wp % 8 == 0 so the flatten/unflatten around the dot only relabels the
    # (sublane, lane) layout (no relayout copy).  Operands are bf16 on the MXU.
    lhs = xstack_ref[...].reshape(NB * H * Wp, C3).astype(jnp.bfloat16)
    acc = jnp.dot(lhs, w_ref[...], preferred_element_type=jnp.float32)
    acc = acc.reshape(NB, H, Wp, C3)

    # ---- Combine the three dx output slabs (shifted along the padded width). -
    # acc[n, h, j, dx*C + cout] = sum_{dy,cin} xpad[n,h+dy,j,cin] * W[dy,dx,cin,cout];
    # output pixel (h, w) needs column j = w + dx of slab dx.
    y = (acc[:, :, 0:W, 0:C]
         + acc[:, :, 1:W + 1, C:2 * C]
         + acc[:, :, 2:W + 2, 2 * C:3 * C])

    # ---- f32 elementwise tail: bias, PReLU, w * feature_D_I + feature_D_V. ---
    y = y + b_ref[...]                        # (1, C) broadcasts over (NB, H, W, C)
    a = alpha_ref[0]                          # shared scalar PReLU slope
    y = jnp.where(y > 0, y, a * y)

    out = y * xi_f + xv_ref[...]
    o_ref[...] = out.astype(o_ref.dtype)


def make_params(key, c=CHANNEL):
    """Deterministic synthetic parameters; eval-mode BN folded into the conv."""
    k1, k2, k3, k4, k5, k6 = jax.random.split(key, 6)
    conv_w = jax.random.normal(k1, (c, c, 3, 3), jnp.float32) * 0.05  # (Cout,Cin,kh,kw)
    conv_b = jax.random.normal(k2, (c,), jnp.float32) * 0.05
    gamma = 1.0 + 0.1 * jax.random.normal(k3, (c,), jnp.float32)
    beta = 0.1 * jax.random.normal(k4, (c,), jnp.float32)
    running_mean = 0.1 * jax.random.normal(k5, (c,), jnp.float32)
    running_var = jnp.abs(jax.random.normal(k6, (c,), jnp.float32)) + 0.5
    eps = 1e-5

    scale = gamma / jnp.sqrt(running_var + eps)                  # per out-channel
    w_fold = conv_w * scale[:, None, None, None]                 # (Cout,Cin,3,3)
    b_fold = (conv_b - running_mean) * scale + beta              # (Cout,)

    w_hwio = jnp.transpose(w_fold, (2, 3, 1, 0))                 # (dy,dx,Cin,Cout), f32
    bias = b_fold.reshape(1, c)
    alpha = jnp.array([0.25], jnp.float32)                       # PReLU default init
    return w_hwio, bias, alpha


def pack_weights(w_hwio):
    """(dy, dx, Cin, Cout) -> bf16 (3*Cin, 3*Cout) with rows (dy,cin), cols (dx,cout)."""
    kh, kw, cin, cout = w_hwio.shape
    w_packed = jnp.transpose(w_hwio, (0, 2, 1, 3)).reshape(kh * cin, kw * cout)
    return w_packed.astype(jnp.bfloat16)


def fusioner_d_nhwc(feature_D_I, feature_D_V, w_packed, bias, alpha, *, num_steps=1):
    """Fast path: NHWC in / NHWC out.  No wrapper-side pad or transpose.

    num_steps: how many grid steps the batch is split into.  Default 1 (a single
    kernel step — best on single-TensorCore v5e/v6e where extra steps are pure
    overhead).  On v7x pass num_steps=2 so the two TensorCores each take half
    the batch via the "parallel" grid axis.
    """
    N, H, W, C = feature_D_I.shape
    assert feature_D_V.shape == (N, H, W, C)
    assert N % num_steps == 0
    NB = N // num_steps
    Wp = _round_up(W + 2, 8)     # sublane-aligned padded width for the f32 scratch

    flops = 2 * N * H * W * (9 * C * C)
    bytes_accessed = 3 * N * H * W * C * 4 + (3 * C) * (3 * C) * 2 + C * 4 + 4

    return pl.pallas_call(
        fusioner_d_kernel,
        out_shape=jax.ShapeDtypeStruct((N, H, W, C), feature_D_I.dtype),
        grid_spec=pltpu.PrefetchScalarGridSpec(
            num_scalar_prefetch=0,
            grid=(num_steps,),
            in_specs=[
                pl.BlockSpec(memory_space=pltpu.MemorySpace.SMEM),        # alpha (1,)
                pl.BlockSpec((NB, H, W, C), lambda g: (g, 0, 0, 0)),      # feature_D_I
                pl.BlockSpec((NB, H, W, C), lambda g: (g, 0, 0, 0)),      # feature_D_V
                pl.BlockSpec((3 * C, 3 * C), lambda g: (0, 0)),           # packed weights
                pl.BlockSpec((1, C), lambda g: (0, 0)),                   # bias
            ],
            out_specs=pl.BlockSpec((NB, H, W, C), lambda g: (g, 0, 0, 0)),
            scratch_shapes=[
                pltpu.VMEM((NB, H, Wp, 3 * C), jnp.float32),              # stacked LHS
            ],
        ),
        compiler_params=pltpu.CompilerParams(
            dimension_semantics=("parallel",),
            vmem_limit_bytes=32 * 1024 * 1024,
        ),
        cost_estimate=pl.CostEstimate(
            flops=flops, transcendentals=0, bytes_accessed=bytes_accessed),
    )(alpha, feature_D_I, feature_D_V, w_packed, bias)


def fusioner_d_nchw(feature_D_I, feature_D_V, w_packed, bias, alpha, *, num_steps=1):
    """PyTorch-layout convenience wrapper.  Each transpose is an HBM round trip
    that costs more than this memory-bound kernel itself; prefer
    fusioner_d_nhwc (or fuse the layout change into the surrounding graph)."""
    xi = jnp.transpose(feature_D_I, (0, 2, 3, 1))
    xv = jnp.transpose(feature_D_V, (0, 2, 3, 1))
    out = fusioner_d_nhwc(xi, xv, w_packed, bias, alpha, num_steps=num_steps)
    return jnp.transpose(out, (0, 3, 1, 2))


def reference_nhwc(xi, xv, w_hwio, bias, alpha):
    """Pure-JAX reference (NHWC).  Conv operands are cast to bf16 with f32
    accumulation to match the kernel's MXU precision exactly (bf16 products are
    exact in f32, so the only difference is f32 summation order); the
    bias/PReLU/fma tail is f32, as in the kernel."""
    y = jax.lax.conv_general_dilated(
        xi.astype(jnp.bfloat16), w_hwio.astype(jnp.bfloat16),
        window_strides=(1, 1), padding="SAME",
        dimension_numbers=("NHWC", "HWIO", "NHWC"),
        preferred_element_type=jnp.float32,
    ) + bias.reshape(1, 1, 1, -1)
    a = alpha[0]
    w = jnp.where(y > 0, y, a * y)
    return w * xi + xv


if __name__ == "__main__":
    key = jax.random.PRNGKey(0)
    kp, ki, kv = jax.random.split(key, 3)

    w_hwio, bias, alpha = make_params(kp)
    w_packed = pack_weights(w_hwio)

    # Small shapes consistent with the module: batch=2, channel=64, spatial=16.
    N, H, W, C = 2, 16, 16, CHANNEL
    feature_D_I = jax.random.normal(ki, (N, H, W, C), jnp.float32)
    feature_D_V = jax.random.normal(kv, (N, H, W, C), jnp.float32)

    ref = reference_nhwc(feature_D_I, feature_D_V, w_hwio, bias, alpha)
    ref = np.asarray(jax.block_until_ready(ref))

    # Default path: whole batch in a single grid step (v5e/v6e).
    out1 = fusioner_d_nhwc(feature_D_I, feature_D_V, w_packed, bias, alpha)
    out1 = np.asarray(jax.block_until_ready(out1))
    np.testing.assert_allclose(out1, ref, atol=1e-3, rtol=1e-3)

    # v7x path: batch split across two "parallel" grid steps (one per TensorCore).
    out2 = fusioner_d_nhwc(feature_D_I, feature_D_V, w_packed, bias, alpha,
                           num_steps=2)
    out2 = np.asarray(jax.block_until_ready(out2))
    np.testing.assert_allclose(out2, ref, atol=1e-3, rtol=1e-3)

    print("KERNEL_OK")
</pallas_src>

<mosaic_0001>
module attributes {stable_mosaic.version = 11 : i64} {
  func.func @fusioner_d_kernel(%arg0: i32, %arg1: memref<1xf32, #tpu.memory_space<smem>>, %arg2: memref<2x16x16x64xf32, #tpu.memory_space<vmem>>, %arg3: memref<2x16x16x64xf32, #tpu.memory_space<vmem>>, %arg4: memref<192x192xbf16, #tpu.memory_space<vmem>>, %arg5: memref<1x64xf32, #tpu.memory_space<vmem>>, %arg6: memref<2x16x16x64xf32, #tpu.memory_space<vmem>>, %arg7: memref<2x16x24x192xf32, #tpu.memory_space<vmem>>) attributes {dimension_semantics = [#tpu.dimension_semantics<parallel>], iteration_bounds = array<i64: 1>, scalar_prefetch = 0 : i64, scratch_operands = 1 : i64, tpu.core_type = #tpu.core_type<tc>, window_params = [{transform_indices = @transform_0, window_bounds = array<i64: 1>}, {transform_indices = @transform_1, window_bounds = array<i64: 2, 16, 16, 64>}, {transform_indices = @transform_2, window_bounds = array<i64: 2, 16, 16, 64>}, {pipeline_mode = #tpu.pipeline_mode<synchronous>, transform_indices = @transform_3, window_bounds = array<i64: 192, 192>}, {pipeline_mode = #tpu.pipeline_mode<synchronous>, transform_indices = @transform_4, window_bounds = array<i64: 1, 64>}, {transform_indices = @transform_5, window_bounds = array<i64: 2, 16, 16, 64>}]} {
    %cst = arith.constant 0.000000e+00 : f32
    %0 = vector.broadcast %cst : f32 to vector<2x16x24x192xf32>
    %c0 = arith.constant 0 : index
    %c0_0 = arith.constant 0 : index
    %c0_1 = arith.constant 0 : index
    %c0_2 = arith.constant 0 : index
    %1 = vector.load %arg7[%c0, %c0_0, %c0_1, %c0_2] : memref<2x16x24x192xf32, #tpu.memory_space<vmem>>, vector<2x16x24x192xf32>
    tpu.vector_store %arg7[%c0, %c0_0, %c0_1, %c0_2], %0 {strides = array<i32>} : memref<2x16x24x192xf32, #tpu.memory_space<vmem>>, vector<2x16x24x192xf32>,
    %c0_3 = arith.constant 0 : index
    %c0_4 = arith.constant 0 : index
    %c0_5 = arith.constant 0 : index
    %c0_6 = arith.constant 0 : index
    %2 = vector.load %arg2[%c0_3, %c0_4, %c0_5, %c0_6] : memref<2x16x16x64xf32, #tpu.memory_space<vmem>>, vector<2x16x16x64xf32>
    %3 = vector.extract_strided_slice %2 {offsets = [0, 0, 0, 0], sizes = [2, 15, 16, 64], strides = [1, 1, 1, 1]} : vector<2x16x16x64xf32> to vector<2x15x16x64xf32>
    %c0_7 = arith.constant 0 : index
    %c1 = arith.constant 1 : index
    %c1_8 = arith.constant 1 : index
    %c0_9 = arith.constant 0 : index
    %4 = vector.load %arg7[%c0_7, %c1, %c1_8, %c0_9] : memref<2x16x24x192xf32, #tpu.memory_space<vmem>>, vector<2x15x16x64xf32>
    tpu.vector_store %arg7[%c0_7, %c1, %c1_8, %c0_9], %3 {strides = array<i32>} : memref<2x16x24x192xf32, #tpu.memory_space<vmem>>, vector<2x15x16x64xf32>,
    %c0_10 = arith.constant 0 : index
    %c0_11 = arith.constant 0 : index
    %c1_12 = arith.constant 1 : index
    %c64 = arith.constant 64 : index
    %5 = vector.load %arg7[%c0_10, %c0_11, %c1_12, %c64] : memref<2x16x24x192xf32, #tpu.memory_space<vmem>>, vector<2x16x16x64xf32>
    tpu.vector_store %arg7[%c0_10, %c0_11, %c1_12, %c64], %2 {strides = array<i32>} : memref<2x16x24x192xf32, #tpu.memory_space<vmem>>, vector<2x16x16x64xf32>,
    %6 = vector.extract_strided_slice %2 {offsets = [0, 1, 0, 0], sizes = [2, 15, 16, 64], strides = [1, 1, 1, 1]} : vector<2x16x16x64xf32> to vector<2x15x16x64xf32>
    %c0_13 = arith.constant 0 : index
    %c0_14 = arith.constant 0 : index
    %c1_15 = arith.constant 1 : index
    %c128 = arith.constant 128 : index
    %7 = vector.load %arg7[%c0_13, %c0_14, %c1_15, %c128] : memref<2x16x24x192xf32, #tpu.memory_space<vmem>>, vector<2x15x16x64xf32>
    tpu.vector_store %arg7[%c0_13, %c0_14, %c1_15, %c128], %6 {strides = array<i32>} : memref<2x16x24x192xf32, #tpu.memory_space<vmem>>, vector<2x15x16x64xf32>,
    %c0_16 = arith.constant 0 : index
    %c0_17 = arith.constant 0 : index
    %c0_18 = arith.constant 0 : index
    %c0_19 = arith.constant 0 : index
    %8 = vector.load %arg7[%c0_16, %c0_17, %c0_18, %c0_19] : memref<2x16x24x192xf32, #tpu.memory_space<vmem>>, vector<2x16x24x192xf32>
    %9 = vector.shape_cast %8 : vector<2x16x24x192xf32> to vector<768x192xf32>
    %10 = arith.truncf %9 : vector<768x192xf32> to vector<768x192xbf16>
    %c0_20 = arith.constant 0 : index
    %c0_21 = arith.constant 0 : index
    %11 = vector.load %arg4[%c0_20, %c0_21] : memref<192x192xbf16, #tpu.memory_space<vmem>>, vector<192x192xbf16>
    %cst_22 = arith.constant dense<0.000000e+00> : vector<768x192xf32>
    %12 = tpu.matmul %10, %11, %cst_22 {dimension_numbers = #tpu.dot_dimension_numbers<[1], [0], [0], [1], [0, 0, 1, 1], [], []>} : vector<768x192xbf16>, vector<192x192xbf16>, vector<768x192xf32> -> vector<768x192xf32>
    %13 = vector.shape_cast %12 : vector<768x192xf32> to vector<2x16x24x192xf32>
    %14 = vector.extract_strided_slice %13 {offsets = [0, 0, 0, 0], sizes = [2, 16, 16, 64], strides = [1, 1, 1, 1]} : vector<2x16x24x192xf32> to vector<2x16x16x64xf32>
    %15 = vector.extract_strided_slice %13 {offsets = [0, 0, 1, 64], sizes = [2, 16, 16, 64], strides = [1, 1, 1, 1]} : vector<2x16x24x192xf32> to vector<2x16x16x64xf32>
    %16 = arith.addf %14, %15 : vector<2x16x16x64xf32>
    %17 = vector.extract_strided_slice %13 {offsets = [0, 0, 2, 128], sizes = [2, 16, 16, 64], strides = [1, 1, 1, 1]} : vector<2x16x24x192xf32> to vector<2x16x16x64xf32>
    %18 = arith.addf %16, %17 : vector<2x16x16x64xf32>
    %c0_23 = arith.constant 0 : index
    %c0_24 = arith.constant 0 : index
    %19 = vector.load %arg5[%c0_23, %c0_24] : memref<1x64xf32, #tpu.memory_space<vmem>>, vector<1x64xf32>
    %20 = vector.shape_cast %19 : vector<1x64xf32> to vector<1x1x1x64xf32>
    %21 = vector.broadcast %20 : vector<1x1x1x64xf32> to vector<2x16x16x64xf32>
    %22 = arith.addf %18, %21 : vector<2x16x16x64xf32>
    %c0_25 = arith.constant 0 : index
    %23 = memref.load %arg1[%c0_25] : memref<1xf32, #tpu.memory_space<smem>>
    %cst_26 = arith.constant 0.000000e+00 : f32
    %24 = vector.broadcast %cst_26 : f32 to vector<2x16x16x64xf32>
    %25 = arith.cmpf ogt, %22, %24 : vector<2x16x16x64xf32>
    %26 = vector.broadcast %23 : f32 to vector<2x16x16x64xf32>
    %27 = arith.mulf %26, %22 : vector<2x16x16x64xf32>
    %28 = arith.select %25, %22, %27 : vector<2x16x16x64xi1>, vector<2x16x16x64xf32>
    %29 = arith.mulf %28, %2 : vector<2x16x16x64xf32>
    %c0_27 = arith.constant 0 : index
    %c0_28 = arith.constant 0 : index
    %c0_29 = arith.constant 0 : index
    %c0_30 = arith.constant 0 : index
    %30 = vector.load %arg3[%c0_27, %c0_28, %c0_29, %c0_30] : memref<2x16x16x64xf32, #tpu.memory_space<vmem>>, vector<2x16x16x64xf32>
    %31 = arith.addf %29, %30 : vector<2x16x16x64xf32>
    %c0_31 = arith.constant 0 : index
    %c0_32 = arith.constant 0 : index
    %c0_33 = arith.constant 0 : index
    %c0_34 = arith.constant 0 : index
    %32 = vector.load %arg6[%c0_31, %c0_32, %c0_33, %c0_34] : memref<2x16x16x64xf32, #tpu.memory_space<vmem>>, vector<2x16x16x64xf32>
    tpu.vector_store %arg6[%c0_31, %c0_32, %c0_33, %c0_34], %31 {strides = array<i32>} : memref<2x16x16x64xf32, #tpu.memory_space<vmem>>, vector<2x16x16x64xf32>,
    return
  }
  func.func @transform_0(%arg0: i32) -> i32 {
    %c0_i32 = arith.constant 0 : i32
    %c0_i32_0 = arith.constant 0 : i32
    return %c0_i32 : i32
  }
  func.func @transform_1(%arg0: i32) -> (i32, i32, i32, i32) {
    %c0_i32 = arith.constant 0 : i32
    %c0_i32_0 = arith.constant 0 : i32
    %c0_i32_1 = arith.constant 0 : i32
    %c0_i32_2 = arith.constant 0 : i32
    return %arg0, %c0_i32, %c0_i32_0, %c0_i32_1 : i32, i32, i32, i32
  }
  func.func @transform_2(%arg0: i32) -> (i32, i32, i32, i32) {
    %c0_i32 = arith.constant 0 : i32
    %c0_i32_0 = arith.constant 0 : i32
    %c0_i32_1 = arith.constant 0 : i32
    %c0_i32_2 = arith.constant 0 : i32
    return %arg0, %c0_i32, %c0_i32_0, %c0_i32_1 : i32, i32, i32, i32
  }
  func.func @transform_3(%arg0: i32) -> (i32, i32) {
    %c0_i32 = arith.constant 0 : i32
    %c0_i32_0 = arith.constant 0 : i32
    %c0_i32_1 = arith.constant 0 : i32
    return %c0_i32, %c0_i32_0 : i32, i32
  }
  func.func @transform_4(%arg0: i32) -> (i32, i32) {
    %c0_i32 = arith.constant 0 : i32
    %c0_i32_0 = arith.constant 0 : i32
    %c0_i32_1 = arith.constant 0 : i32
    return %c0_i32, %c0_i32_0 : i32, i32
  }
  func.func @transform_5(%arg0: i32) -> (i32, i32, i32, i32) {
    %c0_i32 = arith.constant 0 : i32
    %c0_i32_0 = arith.constant 0 : i32
    %c0_i32_1 = arith.constant 0 : i32
    %c0_i32_2 = arith.constant 0 : i32
    return %arg0, %c0_i32, %c0_i32_0, %c0_i32_1 : i32, i32, i32, i32
  }
}

</mosaic_0001>

<bundles_post_ra>
// kernel: tpu_custom_call.1
= control target key start
LH: loop header
LB: loop body
LE: loop exit
PB: predicated region body
PF: predicated region fallthrough
CT: control target
= control target key end

     0   :  { %11 = vsyncpa [#allocation5], 0  ;;  %s6400_s0 = inlined_call_operand.<no memory space> [shape: f32[1], index: 0, kind: input, shape index: {}]   ;;  %s6401_s1 = inlined_call_operand.hbm [shape: f32[2,16,16,64], index: 1, kind: input, shape index: {}]   ;;  %s6402_s2 = inlined_call_operand.hbm [shape: f32[2,16,16,64], index: 2, kind: input, shape index: {}]   ;;  %s6403_s3 = inlined_call_operand.hbm [shape: bf16[192,192], index: 3, kind: input, shape index: {}]   ;;  %s6404_s4 = inlined_call_operand.vmem [shape: f32[1,64], index: 4, kind: input, shape index: {}]   ;;  %s6405_s5 = inlined_call_operand.hbm [shape: f32[2,16,16,64], index: 5, kind: output, shape index: {}]  }
   0x1   :  { %12 = vsyncpa [#allocation8], 0 }
   0x2   :  { %13 = vsyncpa [#allocation6], 0  ;;  %s3974_s18 = smov [#allocation7]   ;;  %s3975_s20 = smov [#allocation4]  }
   0x3   :  { %s33_s19 = sshll.u32 %s3974_s18, 4  ;;  %s21_s21 = sshll.u32 %s3975_s20, 4  ;;  %s34_s19 = int_to_ptr.vmem [resolvable:$true] %s33_s19  ;;  %s4012_s21 = int_to_ptr.vmem [resolvable:$true] %s21_s21 }
   0x4   :  { %s3880_s24 = scalar_lea.hbm %s6402_s2, 8192 }
   0x5   :  { %p3881_p0 = scmp.ne.s32.totalorder %s6402_s2, %s3880_s24  ;;  %p3884_p1 = scmp.lt.u32.totalorder %s3880_s24, %s6402_s2 }
   0x7   :  { %p3886_p2 = pnand %p3884_p1, %p3881_p0 }
   0x9   :  { %3889 = shalt.err (!%p3886_p2)
}
   0xa   :  { %s3890_s29 = scalar_lea.vmem %s34_s19, 8192  ;;  %p3895_p4 = scmp.lt.s32.totalorder %s34_s19, %s34_s19 }
   0xb   :  { %p3891_p3 = scmp.ne.s32.totalorder %s34_s19, %s3890_s29  ;;  %p3896_p5 = scmp.lt.s32.totalorder %s3890_s29, %s3890_s29 }
   0xd   :  { %p3897_p6 = por %p3896_p5, %p3895_p4 }
   0xf   :  { %p3898_p7 = pnand %p3897_p6, %p3891_p3 }
  0x11   :  { %3901 = shalt.err (!%p3898_p7)
}
  0x12   :  { %s3976_s30 = smov 128   ;;  %s3977_s6 = smov 8  }
  0x13   :  { %39 = dma.hbm_to_vmem [thread:$0]  %s6402_s2, 8192, %s34_s19, [#allocation8], %s3976_s30, %s3976_s30, %s3977_s6  }
  0x14   :  { %s3902_s11 = scalar_lea.hbm %s6401_s1, 8192 }
  0x15   :  { %p3903_p8 = scmp.ne.s32.totalorder %s6401_s1, %s3902_s11  ;;  %p3906_p9 = scmp.lt.u32.totalorder %s3902_s11, %s6401_s1 }
  0x17   :  { %p3908_p10 = pnand %p3906_p9, %p3903_p8 }
  0x19   :  { %3911 = shalt.err (!%p3908_p10)
}
  0x1a   :  { %s3912_s16 = scalar_lea.vmem %s4012_s21, 8192  ;;  %p3917_p12 = scmp.lt.s32.totalorder %s4012_s21, %s4012_s21 }
  0x1b   :  { %p3913_p11 = scmp.ne.s32.totalorder %s4012_s21, %s3912_s16  ;;  %p3918_p13 = scmp.lt.s32.totalorder %s3912_s16, %s3912_s16 }
  0x1d   :  { %p3919_p0 = por %p3918_p13, %p3917_p12 }
  0x1f   :  { %p3920_p1 = pnand %p3919_p0, %p3913_p11 }
  0x21   :  { %3923 = shalt.err (!%p3920_p1)
}
  0x22   :  { %27 = dma.hbm_to_vmem [thread:$0]  %s6401_s1, 8192, %s4012_s21, [#allocation5], %s3976_s30, %s3976_s30, %s3977_s6  }
  0x23   :  { %s3978_s18 = smov [#allocation9]   ;;  %s3924_s23 = scalar_lea.hbm %s6403_s3, 3072 }
  0x24   :  { %s45_s19 = sshll.u32 %s3978_s18, 4  ;;  %p3925_p2 = scmp.ne.s32.totalorder %s6403_s3, %s3924_s23  ;;  %s46_s19 = int_to_ptr.vmem [resolvable:$true] %s45_s19 }
  0x25   :  { %p3928_p3 = scmp.lt.u32.totalorder %s3924_s23, %s6403_s3 }
  0x27   :  { %p3930_p4 = pnand %p3928_p3, %p3925_p2 }
  0x29   :  { %3933 = shalt.err (!%p3930_p4)
}
  0x2a   :  { %s3934_s28 = scalar_lea.vmem %s46_s19, 3072  ;;  %p3939_p6 = scmp.lt.s32.totalorder %s46_s19, %s46_s19 }
  0x2b   :  { %p3935_p5 = scmp.ne.s32.totalorder %s46_s19, %s3934_s28  ;;  %p3940_p7 = scmp.lt.s32.totalorder %s3934_s28, %s3934_s28 }
  0x2d   :  { %p3941_p8 = por %p3940_p7, %p3939_p6 }
  0x2f   :  { %p3942_p9 = pnand %p3941_p8, %p3935_p5 }
  0x31   :  { %3945 = shalt.err (!%p3942_p9)
}
  0x32   :  { %51 = dma.hbm_to_vmem [thread:$0]  %s6403_s3, 3072, %s46_s19, [#allocation8], %s3976_s30, %s3976_s30, %s3977_s6  }
  0x33   :  { %3968 = dma.done.wait [#allocation5], 8192  }
  0x34   :  { %3969 = vsyncadd [#allocation5], 4294959104 }
  0x35   :  { %3970 = dma.done.wait [#allocation8], 11264  }
  0x36   :  { %3971 = vsyncadd [#allocation8], 4294956032  ;;  %vm65_vm0 = vcmask 523264   ;;  %v3979_v0 = vmov 0.0   ;;  %v289_v1 = vld [vmem:[#allocation4 + $0x100] sm:$0xff]  ;;  %v290_v3 = vld [vmem:[#allocation4 + $0x108] sm:$0xff] }
  0x37   :  { %169 = vst [vmem:[#allocation2 + $0x340] sm:$0xff] %v3979_v0  ;;  %64 = vst [vmem:[#allocation2] sm:$0xff] %v3979_v0  ;;  %v257_v2 = vld [vmem:[#allocation4] sm:$0xff]  ;;  %vm381_vm1 = vcmask 1040384   ;;  %vm563_vm2 = vcmask 523265   ;;  %vm566_vm3 = vcmask 516096  }
  0x38   :  { %66 = vst.msk [vmem:[#allocation2 + $0x8] sm:$0xff] %vm65_vm0, %v3979_v0  ;;  %67 = vst [vmem:[#allocation2 + $0x10] sm:$0xff] %v3979_v0  ;;  %v427_v4 = vrot.slane %v289_v1, 7  ;;  %v382_v5 = vrot.slane %v257_v2, 7  ;;  %v4352_v6 = vrot.slane %v290_v3, 7  ;;  %v258_v7 = vld [vmem:[#allocation4 + $0x8] sm:$0xff] }
  0x39   :  { %68 = vst.msk [vmem:[#allocation2 + $0x18] sm:$0xff] %vm65_vm0, %v3979_v0  ;;  %69 = vst [vmem:[#allocation2 + $0x20] sm:$0xff] %v3979_v0  ;;  %v259_v8 = vld [vmem:[#allocation4 + $0x10] sm:$0xff]  ;;  %v4354_v10 = vrot.slane %v258_v7, 7  ;;  %v260_v13 = vld [vmem:[#allocation4 + $0x18] sm:$0xff]  ;;  %s3980_s3 = smov 64  }
  0x3a   :  { %70 = vst.msk [vmem:[#allocation2 + $0x28] sm:$0xff] %vm65_vm0, %v3979_v0  ;;  %71 = vst [vmem:[#allocation2 + $0x30] sm:$0xff] %v3979_v0  ;;  %v291_v9 = vld [vmem:[#allocation4 + $0x110] sm:$0xff]  ;;  %v4356_v11 = vrot.slane %v259_v8, 7  ;;  %v292_v14 = vld [vmem:[#allocation4 + $0x118] sm:$0xff]  ;;  %761 = vrot.lane.b32.xlu1 %v427_v4, %s3980_s3  ;;  %665 = vrot.lane.b32.xlu0 %v382_v5, %s3980_s3  ;;  %v429_v16 = vsel %vm381_vm1, %v427_v4, %v4352_v6  ;;  %v4366_v17 = vrot.slane %v260_v13, 7 }
  0x3b   :  { %72 = vst.msk [vmem:[#allocation2 + $0x38] sm:$0xff] %vm65_vm0, %v3979_v0  ;;  %73 = vst [vmem:[#allocation2 + $0x40] sm:$0xff] %v3979_v0  ;;  %v4358_v12 = vrot.slane %v291_v9, 7  ;;  %v261_v15 = vld [vmem:[#allocation4 + $0x20] sm:$0xff]  ;;  %v4370_v18 = vrot.slane %v292_v14, 7  ;;  %v262_v19 = vld [vmem:[#allocation4 + $0x28] sm:$0xff]  ;;  %v384_v23 = vsel %vm381_vm1, %v382_v5, %v4354_v10 }
  0x3c   :  { %74 = vst.msk [vmem:[#allocation2 + $0x48] sm:$0xff] %vm65_vm0, %v3979_v0  ;;  %75 = vst [vmem:[#allocation2 + $0x50] sm:$0xff] %v3979_v0  ;;  %v4372_v20 = vrot.slane %v261_v15, 7  ;;  %v293_v21 = vld [vmem:[#allocation4 + $0x120] sm:$0xff]  ;;  %v294_v22 = vld [vmem:[#allocation4 + $0x128] sm:$0xff]  ;;  %v4387_v24 = vrot.slane %v262_v19, 7  ;;  %v4401_v30 = vsel %vm381_vm1, %v4356_v11, %v4366_v17 }
  0x3d   :  { %76 = vst.msk [vmem:[#allocation2 + $0x58] sm:$0xff] %vm65_vm0, %v3979_v0  ;;  %77 = vst [vmem:[#allocation2 + $0x60] sm:$0xff] %v3979_v0  ;;  %v4389_v25 = vrot.slane %v293_v21, 7  ;;  %v4391_v26 = vrot.slane %v294_v22, 7  ;;  %v263_v27 = vld [vmem:[#allocation4 + $0x30] sm:$0xff]  ;;  %v264_v29 = vld [vmem:[#allocation4 + $0x38] sm:$0xff]  ;;  %v4410_v31 = vsel %vm381_vm1, %v4358_v12, %v4370_v18 }
  0x3e   :  { %78 = vst.msk [vmem:[#allocation2 + $0x68] sm:$0xff] %vm65_vm0, %v3979_v0  ;;  %79 = vst [vmem:[#allocation2 + $0x70] sm:$0xff] %v3979_v0  ;;  %v295_v28 = vld [vmem:[#allocation4 + $0x130] sm:$0xff]  ;;  %v4416_v32 = vrot.slane %v263_v27, 7  ;;  %v296_v34 = vld [vmem:[#allocation4 + $0x138] sm:$0xff]  ;;  %v4431_v37 = vsel %vm381_vm1, %v4372_v20, %v4387_v24  ;;  %v4450_v39 = vrot.slane %v264_v29, 7  ;;  %763 = vrot.lane.b32.xlu1 %v429_v16, %s3980_s3  ;;  %667 = vrot.lane.b32.xlu0 %v384_v23, %s3980_s3 }
  0x3f   :  { %80 = vst.msk [vmem:[#allocation2 + $0x78] sm:$0xff] %vm65_vm0, %v3979_v0  ;;  %81 = vst [vmem:[#allocation2 + $0x80] sm:$0xff] %v3979_v0  ;;  %v4418_v33 = vrot.slane %v295_v28, 7  ;;  %v265_v35 = vld [vmem:[#allocation4 + $0x40] sm:$0xff]  ;;  %v266_v36 = vld [vmem:[#allocation4 + $0x48] sm:$0xff]  ;;  %v4440_v38 = vsel %vm381_vm1, %v4389_v25, %v4391_v26  ;;  %v4452_v40 = vrot.slane %v296_v34, 7 }
  0x40   :  { %82 = vst.msk [vmem:[#allocation2 + $0x88] sm:$0xff] %vm65_vm0, %v3979_v0  ;;  %83 = vst [vmem:[#allocation2 + $0x90] sm:$0xff] %v3979_v0  ;;  %v297_v41 = vld [vmem:[#allocation4 + $0x140] sm:$0xff]  ;;  %v298_v42 = vld [vmem:[#allocation4 + $0x148] sm:$0xff]  ;;  %v4472_v44 = vrot.slane %v265_v35, 7  ;;  %v4474_v45 = vrot.slane %v266_v36, 7  ;;  %v4487_v50 = vsel %vm381_vm1, %v4416_v32, %v4450_v39 }
  0x41   :  { %84 = vst.msk [vmem:[#allocation2 + $0x98] sm:$0xff] %vm65_vm0, %v3979_v0  ;;  %85 = vst [vmem:[#allocation2 + $0xa0] sm:$0xff] %v3979_v0  ;;  %v267_v43 = vld [vmem:[#allocation4 + $0x50] sm:$0xff]  ;;  %v4476_v46 = vrot.slane %v297_v41, 7  ;;  %v4478_v47 = vrot.slane %v298_v42, 7  ;;  %v268_v49 = vld [vmem:[#allocation4 + $0x58] sm:$0xff]  ;;  %v4496_v51 = vsel %vm381_vm1, %v4418_v33, %v4452_v40 }
  0x42   :  { %86 = vst.msk [vmem:[#allocation2 + $0xa8] sm:$0xff] %vm65_vm0, %v3979_v0  ;;  %87 = vst [vmem:[#allocation2 + $0xb0] sm:$0xff] %v3979_v0  ;;  %v299_v48 = vld [vmem:[#allocation4 + $0x150] sm:$0xff]  ;;  %v4498_v52 = vrot.slane %v267_v43, 7  ;;  %v300_v54 = vld [vmem:[#allocation4 + $0x158] sm:$0xff]  ;;  %v4513_v57 = vsel %vm381_vm1, %v4472_v44, %v4474_v45  ;;  %v4536_v59 = vrot.slane %v268_v49, 7  ;;  %671 = vrot.lane.b32.xlu1 %v4356_v11, %s3980_s3  ;;  %669 = vrot.lane.b32.xlu0 %v4354_v10, %s3980_s3 }
  0x43   :  { %88 = vst.msk [vmem:[#allocation2 + $0xb8] sm:$0xff] %vm65_vm0, %v3979_v0  ;;  %89 = vst [vmem:[#allocation2 + $0xc0] sm:$0xff] %v3979_v0  ;;  %v4500_v53 = vrot.slane %v299_v48, 7  ;;  %v269_v55 = vld [vmem:[#allocation4 + $0x60] sm:$0xff]  ;;  %v270_v56 = vld [vmem:[#allocation4 + $0x68] sm:$0xff]  ;;  %v4526_v58 = vsel %vm381_vm1, %v4476_v46, %v4478_v47  ;;  %v4538_v60 = vrot.slane %v300_v54, 7 }
  0x44   :  { %90 = vst.msk [vmem:[#allocation2 + $0xc8] sm:$0xff] %vm65_vm0, %v3979_v0  ;;  %91 = vst [vmem:[#allocation2 + $0xd0] sm:$0xff] %v3979_v0  ;;  %v301_v61 = vld [vmem:[#allocation4 + $0x160] sm:$0xff]  ;;  %v302_v62 = vld [vmem:[#allocation4 + $0x168] sm:$0xff]  ;;  %v4558_v1 = vrot.slane %v270_v56, 7  ;;  %vm953_vm4 = vcmask 1048065  }
  0x45   :  { %92 = vst.msk [vmem:[#allocation2 + $0xd8] sm:$0xff] %vm65_vm0, %v3979_v0  ;;  %93 = vst [vmem:[#allocation2 + $0xe0] sm:$0xff] %v3979_v0  ;;  %v271_v63 = vld [vmem:[#allocation4 + $0x70] sm:$0xff]  ;;  %v4560_v2 = vrot.slane %v301_v61, 7  ;;  %v4562_v3 = vrot.slane %v302_v62, 7  ;;  %v304_v22 = vld [vmem:[#allocation4 + $0x178] sm:$0xff] }
  0x46   :  { %94 = vst.msk [vmem:[#allocation2 + $0xe8] sm:$0xff] %vm65_vm0, %v3979_v0  ;;  %95 = vst [vmem:[#allocation2 + $0xf0] sm:$0xff] %v3979_v0  ;;  %v4586_v7 = vrot.slane %v271_v63, 7  ;;  %v3779_v8 = vld [vmem:[#allocation9 + $0x4] ss:$8 sps:$4 sm:$0xff]   ;;  %767 = vrot.lane.b32.xlu1 %v4358_v12, %s3980_s3  ;;  %765 = vrot.lane.b32.xlu0 %v4352_v6, %s3980_s3  ;;  %v4655_v28 = vrot.slane %v304_v22, 7 }
  0x47   :  { %96 = vst.msk [vmem:[#allocation2 + $0xf8] sm:$0xff] %vm65_vm0, %v3979_v0  ;;  %97 = vst [vmem:[#allocation2 + $0x100] sm:$0xff] %v3979_v0  ;;  %v3781_v9 = vld [vmem:[#allocation9] ss:$8 sps:$4 sm:$0xff]   ;;  %v4612_v13 = vsel %vm381_vm1, %v4560_v2, %v4562_v3  ;;  %v3782_v15 = vld [vmem:[#allocation9 + $0x14] ss:$8 sps:$4 sm:$0xff]   ;;  %1724 = vmatprep.subr.bf16.mxu0 %v3779_v8  ;;  %3747 = vmatprep.subr.bf16.mxu1 %v3779_v8 }
  0x48   :  { %98 = vst.msk [vmem:[#allocation2 + $0x108] sm:$0xff] %vm65_vm0, %v3979_v0  ;;  %99 = vst [vmem:[#allocation2 + $0x110] sm:$0xff] %v3979_v0  ;;  %1725 = vmatpush1.bf16.msra.mxu0 %v3781_v9  ;;  %3759 = vmatpush1.bf16.msra.mxu1 %v3781_v9  ;;  %v3784_v19 = vld [vmem:[#allocation9 + $0x10] ss:$8 sps:$4 sm:$0xff]   ;;  %v3785_v27 = vld [vmem:[#allocation9 + $0x24] ss:$8 sps:$4 sm:$0xff]  }
  0x49   :  { %100 = vst.msk [vmem:[#allocation2 + $0x118] sm:$0xff] %vm65_vm0, %v3979_v0  ;;  %101 = vst [vmem:[#allocation2 + $0x120] sm:$0xff] %v3979_v0  ;;  %1726 = vmatprep.subr.bf16.mxu0 %v3782_v15  ;;  %3748 = vmatprep.subr.bf16.mxu1 %v3782_v15  ;;  %v3787_v34 = vld [vmem:[#allocation9 + $0x20] ss:$8 sps:$4 sm:$0xff]   ;;  %v275_v49 = vld [vmem:[#allocation4 + $0x90] sm:$0xff]  ;;  %vm955_vm5 = vcmask 1048064  }
  0x4a   :  { %102 = vst.msk [vmem:[#allocation2 + $0x128] sm:$0xff] %vm65_vm0, %v3979_v0  ;;  %103 = vst [vmem:[#allocation2 + $0x130] sm:$0xff] %v3979_v0  ;;  %v305_v41 = vld [vmem:[#allocation4 + $0x180] sm:$0xff]  ;;  %675 = vrot.lane.b32.xlu1 %v4366_v17, %s3980_s3  ;;  %673 = vrot.lane.b32.xlu0 %v4401_v30, %s3980_s3  ;;  %v306_v42 = vld [vmem:[#allocation4 + $0x188] sm:$0xff]  ;;  %v4707_v54 = vrot.slane %v275_v49, 7  ;;  %vm957_vm6 = vcmask 1040896  }
  0x4b   :  { %104 = vst.msk [vmem:[#allocation2 + $0x138] sm:$0xff] %vm65_vm0, %v3979_v0  ;;  %105 = vst [vmem:[#allocation2 + $0x140] sm:$0xff] %v3979_v0  ;;  %v4686_v43 = vrot.slane %v305_v41, 7  ;;  %v4697_v48 = vrot.slane %v306_v42, 7  ;;  %v307_v61 = vld [vmem:[#allocation4 + $0x190] sm:$0xff]  ;;  %v308_v8 = vld [vmem:[#allocation4 + $0x198] sm:$0xff] }
  0x4c   :  { %106 = vst.msk [vmem:[#allocation2 + $0x148] sm:$0xff] %vm65_vm0, %v3979_v0  ;;  %107 = vst [vmem:[#allocation2 + $0x150] sm:$0xff] %v3979_v0  ;;  %1727 = vmatpush1.bf16.msra.mxu0 %v3784_v19  ;;  %3760 = vmatpush1.bf16.msra.mxu1 %v3784_v19  ;;  %v3791_v62 = vld [vmem:[#allocation9 + $0x44] ss:$8 sps:$4 sm:$0xff]   ;;  %v4730_v63 = vrot.slane %v307_v61, 7  ;;  %vm2333_vm7 = vcmask 1046528  }
  0x4d   :  { %108 = vst.msk [vmem:[#allocation2 + $0x158] sm:$0xff] %vm65_vm0, %v3979_v0  ;;  %109 = vst [vmem:[#allocation2 + $0x160] sm:$0xff] %v3979_v0  ;;  %1728 = vmatprep.subr.bf16.mxu0 %v3785_v27  ;;  %3749 = vmatprep.subr.bf16.mxu1 %v3785_v27  ;;  %v4712_v56 = vsel %vm381_vm1, %v4686_v43, %v4697_v48  ;;  %v3793_v9 = vld [vmem:[#allocation9 + $0x40] ss:$8 sps:$4 sm:$0xff]   ;;  %v3794_v22 = vld [vmem:[#allocation9 + $0x54] ss:$8 sps:$4 sm:$0xff]  }
  0x4e   :  { %110 = vst.msk [vmem:[#allocation2 + $0x168] sm:$0xff] %vm65_vm0, %v3979_v0  ;;  %111 = vst [vmem:[#allocation2 + $0x170] sm:$0xff] %v3979_v0  ;;  %771 = vrot.lane.b32.xlu1 %v4370_v18, %s3980_s3  ;;  %769 = vrot.lane.b32.xlu0 %v4410_v31, %s3980_s3  ;;  %v278_v19 = vld [vmem:[#allocation4 + $0xa8] sm:$0xff]  ;;  %vm2846_vm8 = vcmask 1045504  }
  0x4f   :  { %112 = vst.msk [vmem:[#allocation2 + $0x178] sm:$0xff] %vm65_vm0, %v3979_v0  ;;  %113 = vst [vmem:[#allocation2 + $0x180] sm:$0xff] %v3979_v0  ;;  %v4768_v27 = vrot.slane %v278_v19, 7  ;;  %v3797_v49 = vld [vmem:[#allocation9 + $0x64] ss:$8 sps:$4 sm:$0xff]   ;;  %v311_v19 = vld [vmem:[#allocation4 + $0x1b0] sm:$0xff] }
  0x50   :  { %114 = vst.msk [vmem:[#allocation2 + $0x188] sm:$0xff] %vm65_vm0, %v3979_v0  ;;  %115 = vst [vmem:[#allocation2 + $0x190] sm:$0xff] %v3979_v0  ;;  %1729 = vmatpush1.bf16.msra.mxu0 %v3787_v34  ;;  %3761 = vmatpush1.bf16.msra.mxu1 %v3787_v34  ;;  %v3796_v34 = vld [vmem:[#allocation9 + $0x50] ss:$8 sps:$4 sm:$0xff]  }
  0x51   :  { %116 = vst.msk [vmem:[#allocation2 + $0x198] sm:$0xff] %vm65_vm0, %v3979_v0  ;;  %117 = vst [vmem:[#allocation2 + $0x1a0] sm:$0xff] %v3979_v0 }
  0x52   :  { %118 = vst.msk [vmem:[#allocation2 + $0x1a8] sm:$0xff] %vm65_vm0, %v3979_v0  ;;  %119 = vst [vmem:[#allocation2 + $0x1b0] sm:$0xff] %v3979_v0  ;;  %679 = vrot.lane.b32.xlu1 %v4431_v37, %s3980_s3  ;;  %677 = vrot.lane.b32.xlu0 %v4372_v20, %s3980_s3 }
  0x53   :  { %120 = vst.msk [vmem:[#allocation2 + $0x1b8] sm:$0xff] %vm65_vm0, %v3979_v0  ;;  %121 = vst [vmem:[#allocation2 + $0x1c0] sm:$0xff] %v3979_v0 }
  0x54   :  { %122 = vst.msk [vmem:[#allocation2 + $0x1c8] sm:$0xff] %vm65_vm0, %v3979_v0  ;;  %123 = vst [vmem:[#allocation2 + $0x1d0] sm:$0xff] %v3979_v0 }
  0x55   :  { %124 = vst.msk [vmem:[#allocation2 + $0x1d8] sm:$0xff] %vm65_vm0, %v3979_v0  ;;  %125 = vst [vmem:[#allocation2 + $0x1e0] sm:$0xff] %v3979_v0 }
  0x56   :  { %126 = vst.msk [vmem:[#allocation2 + $0x1e8] sm:$0xff] %vm65_vm0, %v3979_v0  ;;  %127 = vst [vmem:[#allocation2 + $0x1f0] sm:$0xff] %v3979_v0  ;;  %775 = vrot.lane.b32.xlu1 %v4440_v38, %s3980_s3  ;;  %773 = vrot.lane.b32.xlu0 %v4389_v25, %s3980_s3 }
  0x57   :  { %128 = vst.msk [vmem:[#allocation2 + $0x1f8] sm:$0xff] %vm65_vm0, %v3979_v0  ;;  %129 = vst [vmem:[#allocation2 + $0x200] sm:$0xff] %v3979_v0 }
  0x58   :  { %130 = vst.msk [vmem:[#allocation2 + $0x208] sm:$0xff] %vm65_vm0, %v3979_v0  ;;  %131 = vst [vmem:[#allocation2 + $0x210] sm:$0xff] %v3979_v0 }
  0x59   :  { %132 = vst.msk [vmem:[#allocation2 + $0x218] sm:$0xff] %vm65_vm0, %v3979_v0  ;;  %133 = vst [vmem:[#allocation2 + $0x220] sm:$0xff] %v3979_v0 }
  0x5a   :  { %134 = vst.msk [vmem:[#allocation2 + $0x228] sm:$0xff] %vm65_vm0, %v3979_v0  ;;  %135 = vst [vmem:[#allocation2 + $0x230] sm:$0xff] %v3979_v0  ;;  %683 = vrot.lane.b32.xlu1 %v4416_v32, %s3980_s3  ;;  %681 = vrot.lane.b32.xlu0 %v4387_v24, %s3980_s3 }
  0x5b   :  { %136 = vst.msk [vmem:[#allocation2 + $0x238] sm:$0xff] %vm65_vm0, %v3979_v0  ;;  %137 = vst [vmem:[#allocation2 + $0x240] sm:$0xff] %v3979_v0 }
  0x5c   :  { %138 = vst.msk [vmem:[#allocation2 + $0x248] sm:$0xff] %vm65_vm0, %v3979_v0  ;;  %139 = vst [vmem:[#allocation2 + $0x250] sm:$0xff] %v3979_v0 }
  0x5d   :  { %140 = vst.msk [vmem:[#allocation2 + $0x258] sm:$0xff] %vm65_vm0, %v3979_v0  ;;  %141 = vst [vmem:[#allocation2 + $0x260] sm:$0xff] %v3979_v0 }
  0x5e   :  { %142 = vst.msk [vmem:[#allocation2 + $0x268] sm:$0xff] %vm65_vm0, %v3979_v0  ;;  %143 = vst [vmem:[#allocation2 + $0x270] sm:$0xff] %v3979_v0  ;;  %779 = vrot.lane.b32.xlu1 %v4418_v33, %s3980_s3  ;;  %777 = vrot.lane.b32.xlu0 %v4391_v26, %s3980_s3 }
  0x5f   :  { %144 = vst.msk [vmem:[#allocation2 + $0x278] sm:$0xff] %vm65_vm0, %v3979_v0  ;;  %145 = vst [vmem:[#allocation2 + $0x280] sm:$0xff] %v3979_v0 }
  0x60   :  { %146 = vst.msk [vmem:[#allocation2 + $0x288] sm:$0xff] %vm65_vm0, %v3979_v0  ;;  %147 = vst [vmem:[#allocation2 + $0x290] sm:$0xff] %v3979_v0 }
  0x61   :  { %148 = vst.msk [vmem:[#allocation2 + $0x298] sm:$0xff] %vm65_vm0, %v3979_v0  ;;  %149 = vst [vmem:[#allocation2 + $0x2a0] sm:$0xff] %v3979_v0 }
  0x62   :  { %150 = vst.msk [vmem:[#allocation2 + $0x2a8] sm:$0xff] %vm65_vm0, %v3979_v0  ;;  %151 = vst [vmem:[#allocation2 + $0x2b0] sm:$0xff] %v3979_v0  ;;  %687 = vrot.lane.b32.xlu1 %v4450_v39, %s3980_s3  ;;  %685 = vrot.lane.b32.xlu0 %v4487_v50, %s3980_s3 }
  0x63   :  { %152 = vst.msk [vmem:[#allocation2 + $0x2b8] sm:$0xff] %vm65_vm0, %v3979_v0  ;;  %153 = vst [vmem:[#allocation2 + $0x2c0] sm:$0xff] %v3979_v0 }
  0x64   :  { %154 = vst.msk [vmem:[#allocation2 + $0x2c8] sm:$0xff] %vm65_vm0, %v3979_v0  ;;  %155 = vst [vmem:[#allocation2 + $0x2d0] sm:$0xff] %v3979_v0 }
  0x65   :  { %156 = vst.msk [vmem:[#allocation2 + $0x2d8] sm:$0xff] %vm65_vm0, %v3979_v0  ;;  %157 = vst [vmem:[#allocation2 + $0x2e0] sm:$0xff] %v3979_v0 }
  0x66   :  { %158 = vst.msk [vmem:[#allocation2 + $0x2e8] sm:$0xff] %vm65_vm0, %v3979_v0  ;;  %159 = vst [vmem:[#allocation2 + $0x2f0] sm:$0xff] %v3979_v0  ;;  %783 = vrot.lane.b32.xlu1 %v4452_v40, %s3980_s3  ;;  %781 = vrot.lane.b32.xlu0 %v4496_v51, %s3980_s3 }
  0x67   :  { %160 = vst.msk [vmem:[#allocation2 + $0x2f8] sm:$0xff] %vm65_vm0, %v3979_v0  ;;  %161 = vst [vmem:[#allocation2 + $0x300] sm:$0xff] %v3979_v0 }
  0x68   :  { %162 = vst.msk [vmem:[#allocation2 + $0x308] sm:$0xff] %vm65_vm0, %v3979_v0  ;;  %163 = vst [vmem:[#allocation2 + $0x310] sm:$0xff] %v3979_v0 }
  0x69   :  { %164 = vst.msk [vmem:[#allocation2 + $0x318] sm:$0xff] %vm65_vm0, %v3979_v0  ;;  %165 = vst [vmem:[#allocation2 + $0x320] sm:$0xff] %v3979_v0 }
  0x6a   :  { %166 = vst.msk [vmem:[#allocation2 + $0x328] sm:$0xff] %vm65_vm0, %v3979_v0  ;;  %167 = vst [vmem:[#allocation2 + $0x330] sm:$0xff] %v3979_v0  ;;  %691 = vrot.lane.b32.xlu1 %v4513_v57, %s3980_s3  ;;  %689 = vrot.lane.b32.xlu0 %v4472_v44, %s3980_s3 }
  0x6b   :  { %168 = vst.msk [vmem:[#allocation2 + $0x338] sm:$0xff] %vm65_vm0, %v3979_v0  ;;  %170 = vst.msk [vmem:[#allocation2 + $0x348] sm:$0xff] %vm65_vm0, %v3979_v0 }
  0x6c   :  { %171 = vst [vmem:[#allocation2 + $0x350] sm:$0xff] %v3979_v0  ;;  %172 = vst.msk [vmem:[#allocation2 + $0x358] sm:$0xff] %vm65_vm0, %v3979_v0 }
  0x6d   :  { %173 = vst [vmem:[#allocation2 + $0x360] sm:$0xff] %v3979_v0  ;;  %174 = vst.msk [vmem:[#allocation2 + $0x368] sm:$0xff] %vm65_vm0, %v3979_v0 }
  0x6e   :  { %175 = vst [vmem:[#allocation2 + $0x370] sm:$0xff] %v3979_v0  ;;  %176 = vst.msk [vmem:[#allocation2 + $0x378] sm:$0xff] %vm65_vm0, %v3979_v0  ;;  %787 = vrot.lane.b32.xlu1 %v4526_v58, %s3980_s3  ;;  %785 = vrot.lane.b32.xlu0 %v4476_v46, %s3980_s3 }
  0x6f   :  { %177 = vst [vmem:[#allocation2 + $0x380] sm:$0xff] %v3979_v0  ;;  %178 = vst.msk [vmem:[#allocation2 + $0x388] sm:$0xff] %vm65_vm0, %v3979_v0 }
  0x70   :  { %179 = vst [vmem:[#allocation2 + $0x390] sm:$0xff] %v3979_v0  ;;  %180 = vst.msk [vmem:[#allocation2 + $0x398] sm:$0xff] %vm65_vm0, %v3979_v0 }
  0x71   :  { %181 = vst [vmem:[#allocation2 + $0x3a0] sm:$0xff] %v3979_v0  ;;  %182 = vst.msk [vmem:[#allocation2 + $0x3a8] sm:$0xff] %vm65_vm0, %v3979_v0 }
  0x72   :  { %183 = vst [vmem:[#allocation2 + $0x3b0] sm:$0xff] %v3979_v0  ;;  %184 = vst.msk [vmem:[#allocation2 + $0x3b8] sm:$0xff] %vm65_vm0, %v3979_v0  ;;  %695 = vrot.lane.b32.xlu1 %v4498_v52, %s3980_s3  ;;  %693 = vrot.lane.b32.xlu0 %v4474_v45, %s3980_s3 }
  0x73   :  { %185 = vst [vmem:[#allocation2 + $0x3c0] sm:$0xff] %v3979_v0  ;;  %186 = vst.msk [vmem:[#allocation2 + $0x3c8] sm:$0xff] %vm65_vm0, %v3979_v0 }
  0x74   :  { %187 = vst [vmem:[#allocation2 + $0x3d0] sm:$0xff] %v3979_v0  ;;  %188 = vst.msk [vmem:[#allocation2 + $0x3d8] sm:$0xff] %vm65_vm0, %v3979_v0 }
  0x75   :  { %189 = vst [vmem:[#allocation2 + $0x3e0] sm:$0xff] %v3979_v0  ;;  %190 = vst.msk [vmem:[#allocation2 + $0x3e8] sm:$0xff] %vm65_vm0, %v3979_v0 }
  0x76   :  { %191 = vst [vmem:[#allocation2 + $0x3f0] sm:$0xff] %v3979_v0  ;;  %192 = vst.msk [vmem:[#allocation2 + $0x3f8] sm:$0xff] %vm65_vm0, %v3979_v0  ;;  %791 = vrot.lane.b32.xlu1 %v4500_v53, %s3980_s3  ;;  %789 = vrot.lane.b32.xlu0 %v4478_v47, %s3980_s3 }
  0x77   :  { %193 = vst [vmem:[#allocation2 + $0x400] sm:$0xff] %v3979_v0  ;;  %194 = vst.msk [vmem:[#allocation2 + $0x408] sm:$0xff] %vm65_vm0, %v3979_v0 }
  0x78   :  { %195 = vst [vmem:[#allocation2 + $0x410] sm:$0xff] %v3979_v0  ;;  %196 = vst.msk [vmem:[#allocation2 + $0x418] sm:$0xff] %vm65_vm0, %v3979_v0 }
  0x79   :  { %197 = vst [vmem:[#allocation2 + $0x420] sm:$0xff] %v3979_v0  ;;  %198 = vst.msk [vmem:[#allocation2 + $0x428] sm:$0xff] %vm65_vm0, %v3979_v0 }
  0x7a   :  { %199 = vst [vmem:[#allocation2 + $0x430] sm:$0xff] %v3979_v0  ;;  %200 = vst.msk [vmem:[#allocation2 + $0x438] sm:$0xff] %vm65_vm0, %v3979_v0  ;;  %699 = vrot.lane.b32.xlu1 %v4536_v59, %s3980_s3 }
  0x7b   :  { %201 = vst [vmem:[#allocation2 + $0x440] sm:$0xff] %v3979_v0  ;;  %202 = vst.msk [vmem:[#allocation2 + $0x448] sm:$0xff] %vm65_vm0, %v3979_v0 }
  0x7c   :  { %203 = vst [vmem:[#allocation2 + $0x450] sm:$0xff] %v3979_v0  ;;  %204 = vst.msk [vmem:[#allocation2 + $0x458] sm:$0xff] %vm65_vm0, %v3979_v0 }
  0x7d   :  { %205 = vst [vmem:[#allocation2 + $0x460] sm:$0xff] %v3979_v0  ;;  %206 = vst.msk [vmem:[#allocation2 + $0x468] sm:$0xff] %vm65_vm0, %v3979_v0 }
  0x7e   :  { %207 = vst [vmem:[#allocation2 + $0x470] sm:$0xff] %v3979_v0  ;;  %208 = vst.msk [vmem:[#allocation2 + $0x478] sm:$0xff] %vm65_vm0, %v3979_v0  ;;  %795 = vrot.lane.b32.xlu1 %v4538_v60, %s3980_s3 }
  0x7f   :  { %209 = vst [vmem:[#allocation2 + $0x480] sm:$0xff] %v3979_v0  ;;  %210 = vst.msk [vmem:[#allocation2 + $0x488] sm:$0xff] %vm65_vm0, %v3979_v0 }
  0x80   :  { %211 = vst [vmem:[#allocation2 + $0x490] sm:$0xff] %v3979_v0  ;;  %212 = vst.msk [vmem:[#allocation2 + $0x498] sm:$0xff] %vm65_vm0, %v3979_v0 }
  0x81   :  { %213 = vst [vmem:[#allocation2 + $0x4a0] sm:$0xff] %v3979_v0  ;;  %214 = vst.msk [vmem:[#allocation2 + $0x4a8] sm:$0xff] %vm65_vm0, %v3979_v0 }
  0x82   :  { %215 = vst [vmem:[#allocation2 + $0x4b0] sm:$0xff] %v3979_v0  ;;  %216 = vst.msk [vmem:[#allocation2 + $0x4b8] sm:$0xff] %vm65_vm0, %v3979_v0 }
  0x83   :  { %217 = vst [vmem:[#allocation2 + $0x4c0] sm:$0xff] %v3979_v0  ;;  %218 = vst.msk [vmem:[#allocation2 + $0x4c8] sm:$0xff] %vm65_vm0, %v3979_v0 }
  0x84   :  { %219 = vst [vmem:[#allocation2 + $0x4d0] sm:$0xff] %v3979_v0  ;;  %220 = vst.msk [vmem:[#allocation2 + $0x4d8] sm:$0xff] %vm65_vm0, %v3979_v0 }
  0x85   :  { %221 = vst [vmem:[#allocation2 + $0x4e0] sm:$0xff] %v3979_v0  ;;  %222 = vst.msk [vmem:[#allocation2 + $0x4e8] sm:$0xff] %vm65_vm0, %v3979_v0 }
  0x86   :  { %223 = vst [vmem:[#allocation2 + $0x4f0] sm:$0xff] %v3979_v0  ;;  %224 = vst.msk [vmem:[#allocation2 + $0x4f8] sm:$0xff] %vm65_vm0, %v3979_v0 }
  0x87   :  { %225 = vst [vmem:[#allocation2 + $0x500] sm:$0xff] %v3979_v0  ;;  %226 = vst.msk [vmem:[#allocation2 + $0x508] sm:$0xff] %vm65_vm0, %v3979_v0 }
  0x88   :  { %227 = vst [vmem:[#allocation2 + $0x510] sm:$0xff] %v3979_v0  ;;  %228 = vst.msk [vmem:[#allocation2 + $0x518] sm:$0xff] %vm65_vm0, %v3979_v0 }
  0x89   :  { %229 = vst [vmem:[#allocation2 + $0x520] sm:$0xff] %v3979_v0  ;;  %230 = vst.msk [vmem:[#allocation2 + $0x528] sm:$0xff] %vm65_vm0, %v3979_v0 }
  0x8a   :  { %231 = vst [vmem:[#allocation2 + $0x530] sm:$0xff] %v3979_v0  ;;  %232 = vst.msk [vmem:[#allocation2 + $0x538] sm:$0xff] %vm65_vm0, %v3979_v0 }
  0x8b   :  { %233 = vst [vmem:[#allocation2 + $0x540] sm:$0xff] %v3979_v0  ;;  %234 = vst.msk [vmem:[#allocation2 + $0x548] sm:$0xff] %vm65_vm0, %v3979_v0 }
  0x8c   :  { %235 = vst [vmem:[#allocation2 + $0x550] sm:$0xff] %v3979_v0  ;;  %236 = vst.msk [vmem:[#allocation2 + $0x558] sm:$0xff] %vm65_vm0, %v3979_v0 }
  0x8d   :  { %237 = vst [vmem:[#allocation2 + $0x560] sm:$0xff] %v3979_v0  ;;  %238 = vst.msk [vmem:[#allocation2 + $0x568] sm:$0xff] %vm65_vm0, %v3979_v0 }
  0x8e   :  { %239 = vst [vmem:[#allocation2 + $0x570] sm:$0xff] %v3979_v0  ;;  %240 = vst.msk [vmem:[#allocation2 + $0x578] sm:$0xff] %vm65_vm0, %v3979_v0 }
  0x8f   :  { %241 = vst [vmem:[#allocation2 + $0x580] sm:$0xff] %v3979_v0  ;;  %242 = vst.msk [vmem:[#allocation2 + $0x588] sm:$0xff] %vm65_vm0, %v3979_v0 }
  0x90   :  { %243 = vst [vmem:[#allocation2 + $0x590] sm:$0xff] %v3979_v0  ;;  %244 = vst.msk [vmem:[#allocation2 + $0x598] sm:$0xff] %vm65_vm0, %v3979_v0 }
  0x91   :  { %245 = vst [vmem:[#allocation2 + $0x5a0] sm:$0xff] %v3979_v0  ;;  %246 = vst.msk [vmem:[#allocation2 + $0x5a8] sm:$0xff] %vm65_vm0, %v3979_v0 }
  0x92   :  { %247 = vst [vmem:[#allocation2 + $0x5b0] sm:$0xff] %v3979_v0  ;;  %248 = vst.msk [vmem:[#allocation2 + $0x5b8] sm:$0xff] %vm65_vm0, %v3979_v0 }
  0x93   :  { %249 = vst [vmem:[#allocation2 + $0x5c0] sm:$0xff] %v3979_v0  ;;  %250 = vst.msk [vmem:[#allocation2 + $0x5c8] sm:$0xff] %vm65_vm0, %v3979_v0 }
  0x94   :  { %251 = vst [vmem:[#allocation2 + $0x5d0] sm:$0xff] %v3979_v0  ;;  %252 = vst.msk [vmem:[#allocation2 + $0x5d8] sm:$0xff] %vm65_vm0, %v3979_v0 }
  0x95   :  { %253 = vst [vmem:[#allocation2 + $0x5e0] sm:$0xff] %v3979_v0  ;;  %254 = vst.msk [vmem:[#allocation2 + $0x5e8] sm:$0xff] %vm65_vm0, %v3979_v0 }
  0x96   :  { %255 = vst [vmem:[#allocation2 + $0x5f0] sm:$0xff] %v3979_v0  ;;  %256 = vst.msk [vmem:[#allocation2 + $0x5f8] sm:$0xff] %vm65_vm0, %v3979_v0  ;;  %v4556_v0 = vrot.slane %v269_v55, 7  ;;  %v3790_v55 = vld [vmem:[#allocation9 + $0x30] ss:$8 sps:$4 sm:$0xff]  }
  0x97   :  { %564 = vst.msk [vmem:[#allocation2 + $0x30] sm:$0xfe] %vm563_vm2, %v382_v5  ;;  %610 = vst.msk [vmem:[#allocation2 + $0x330] sm:$0xfe] %vm563_vm2, %v427_v4  ;;  %v4575_v4 = vsel %vm381_vm1, %v4498_v52, %v4536_v59  ;;  %v4584_v5 = vsel %vm381_vm1, %v4500_v53, %v4538_v60 }
  0x98   :  { %612 = vst.msk [vmem:[#allocation2 + $0x350] sm:$0x1] %vm566_vm3, %v4352_v6  ;;  %567 = vst.msk [vmem:[#allocation2 + $0x50] sm:$0x1] %vm566_vm3, %v4354_v10  ;;  %v303_v10 = vld [vmem:[#allocation4 + $0x170] sm:$0xff]  ;;  %v274_v6 = vld [vmem:[#allocation4 + $0x88] sm:$0xff]  ;;  %697 = vrot.lane.b32.xlu0 %v4575_v4, %s3980_s3 }
  0x99   :  { %611 = vst.msk [vmem:[#allocation2 + $0x340] sm:$0xff] %vm65_vm0, %v429_v16  ;;  %565 = vst.msk [vmem:[#allocation2 + $0x40] sm:$0xff] %vm65_vm0, %v384_v23  ;;  %v4622_v14 = vrot.slane %v303_v10, 7  ;;  %v272_v16 = vld [vmem:[#allocation4 + $0x78] sm:$0xff]  ;;  %v4672_v36 = vrot.slane %v274_v6, 7  ;;  %v4738_v10 = vrot.slane %v308_v8, 7 }
  0x9a   :  { %1058 = vst.msk [vmem:[#allocation2 + $0x8] sm:$0xfe] %vm563_vm2, %v4356_v11  ;;  %568 = vst.msk [vmem:[#allocation2 + $0x60] sm:$0xfe] %vm563_vm2, %v4356_v11  ;;  %v4599_v11 = vsel %vm381_vm1, %v4556_v0, %v4558_v1  ;;  %v4640_v21 = vrot.slane %v272_v16, 7  ;;  %v277_v16 = vld [vmem:[#allocation4 + $0xa0] sm:$0xff] }
  0x9b   :  { %1103 = vst.msk [vmem:[#allocation2 + $0x308] sm:$0xfe] %vm563_vm2, %v4358_v12  ;;  %613 = vst.msk [vmem:[#allocation2 + $0x360] sm:$0xfe] %vm563_vm2, %v4358_v12  ;;  %v273_v12 = vld [vmem:[#allocation4 + $0x80] sm:$0xff]  ;;  %v4670_v35 = vsel %vm381_vm1, %v4622_v14, %v4655_v28  ;;  %v310_v6 = vld [vmem:[#allocation4 + $0x1a8] sm:$0xff]  ;;  %703 = vrot.lane.b32.xlu1 %v4599_v11, %s3980_s3 }
  0x9c   :  { %1060 = vst.msk [vmem:[#allocation2 + $0x28] sm:$0x1] %vm566_vm3, %v4366_v17  ;;  %570 = vst.msk [vmem:[#allocation2 + $0x80] sm:$0x1] %vm566_vm3, %v4366_v17  ;;  %v4653_v23 = vsel %vm381_vm1, %v4586_v7, %v4640_v21  ;;  %v4661_v29 = vrot.slane %v273_v12, 7  ;;  %v309_v12 = vld [vmem:[#allocation4 + $0x1a0] sm:$0xff]  ;;  %793 = vrot.lane.b32.xlu0 %v4584_v5, %s3980_s3 }
  0x9d   :  { %1105 = vst.msk [vmem:[#allocation2 + $0x328] sm:$0x1] %vm566_vm3, %v4370_v18  ;;  %615 = vst.msk [vmem:[#allocation2 + $0x380] sm:$0x1] %vm566_vm3, %v4370_v18  ;;  %v3788_v17 = vld [vmem:[#allocation9 + $0x34] ss:$8 sps:$4 sm:$0xff]  }
  0x9e   :  { %1061 = vst.msk [vmem:[#allocation2 + $0x38] sm:$0xfe] %vm563_vm2, %v4372_v20  ;;  %571 = vst.msk [vmem:[#allocation2 + $0x90] sm:$0xfe] %vm563_vm2, %v4372_v20  ;;  %1730 = vmatprep.subr.bf16.mxu0 %v3788_v17  ;;  %3750 = vmatprep.subr.bf16.mxu1 %v3788_v17  ;;  %v276_v18 = vld [vmem:[#allocation4 + $0x98] sm:$0xff]  ;;  %v4764_v20 = vsel %vm381_vm1, %v4730_v63, %v4738_v10  ;;  %v4787_v42 = vrot.slane %v309_v12, 7 }
  0x9f   :  { %569 = vst.msk [vmem:[#allocation2 + $0x70] sm:$0xff] %vm65_vm0, %v4401_v30  ;;  %1059 = vst.msk [vmem:[#allocation2 + $0x18] sm:$0xff] %vm65_vm0, %v4401_v30  ;;  %v4691_v30 = vsel %vm381_vm1, %v4661_v29, %v4672_v36  ;;  %1731 = vmatpush1.bf16.msra.mxu0 %v3790_v55  ;;  %3762 = vmatpush1.bf16.msra.mxu1 %v3790_v55  ;;  %v4789_v17 = vrot.slane %v310_v6, 7  ;;  %v279_v55 = vld [vmem:[#allocation4 + $0xb0] sm:$0xff]  ;;  %v3799_v12 = vld [vmem:[#allocation9 + $0x60] ss:$8 sps:$4 sm:$0xff]  }
  0xa0   :  { %614 = vst.msk [vmem:[#allocation2 + $0x370] sm:$0xff] %vm65_vm0, %v4410_v31  ;;  %1104 = vst.msk [vmem:[#allocation2 + $0x318] sm:$0xff] %vm65_vm0, %v4410_v31  ;;  %v4736_v31 = vrot.slane %v276_v18, 7  ;;  %1732 = vmatprep.subr.bf16.mxu0 %v3791_v62  ;;  %3751 = vmatprep.subr.bf16.mxu1 %v3791_v62  ;;  %v4822_v6 = vrot.slane %v311_v19, 7  ;;  %v313_v19 = vld [vmem:[#allocation4 + $0x1c0] sm:$0xff] }
  0xa1   :  { %1063 = vst.msk [vmem:[#allocation2 + $0x58] sm:$0x1] %vm566_vm3, %v4387_v24  ;;  %573 = vst.msk [vmem:[#allocation2 + $0xb0] sm:$0x1] %vm566_vm3, %v4387_v24  ;;  %v1149_v61 = vld [vmem:[#allocation2 + $0x8] sm:$0xff]  ;;  %v4802_v62 = vsel %vm381_vm1, %v4787_v42, %v4789_v17  ;;  %701 = vrot.lane.b32.xlu0 %v4556_v0, %s3980_s3  ;;  %799 = vrot.lane.b32.xlu1 %v4612_v13, %s3980_s3 }
  0xa2   :  { %1106 = vst.msk [vmem:[#allocation2 + $0x338] sm:$0xfe] %vm563_vm2, %v4389_v25  ;;  %616 = vst.msk [vmem:[#allocation2 + $0x390] sm:$0xfe] %vm563_vm2, %v4389_v25  ;;  %v4751_v15 = vsel %vm381_vm1, %v4707_v54, %v4736_v31  ;;  %v4812_v25 = vrot.slane %v279_v55, 7  ;;  %v1245_v18 = vld [vmem:[#allocation2 + $0x308] sm:$0xff] }
  0xa3   :  { %1108 = vst.msk [vmem:[#allocation2 + $0x358] sm:$0x1] %vm566_vm3, %v4391_v26  ;;  %618 = vst.msk [vmem:[#allocation2 + $0x3b0] sm:$0x1] %vm566_vm3, %v4391_v26  ;;  %1733 = vmatpush1.bf16.msra.mxu0 %v3793_v9  ;;  %3763 = vmatpush1.bf16.msra.mxu1 %v3793_v9  ;;  %v3803_v26 = vld [vmem:[#allocation9 + $0x84] ss:$8 sps:$4 sm:$0xff]  }
  0xa4   :  { %572 = vst.msk [vmem:[#allocation2 + $0xa0] sm:$0xff] %vm65_vm0, %v4431_v37  ;;  %1062 = vst.msk [vmem:[#allocation2 + $0x48] sm:$0xff] %vm65_vm0, %v4431_v37  ;;  %v4766_v37 = vrot.slane %v277_v16, 7  ;;  %1734 = vmatprep.subr.bf16.mxu0 %v3794_v22  ;;  %3752 = vmatprep.subr.bf16.mxu1 %v3794_v22  ;;  %v280_v22 = vld [vmem:[#allocation4 + $0xb8] sm:$0xff] }
  0xa5   :  { %617 = vst.msk [vmem:[#allocation2 + $0x3a0] sm:$0xff] %vm65_vm0, %v4440_v38  ;;  %1107 = vst.msk [vmem:[#allocation2 + $0x348] sm:$0xff] %vm65_vm0, %v4440_v38  ;;  %v4824_v55 = vrot.slane %v280_v22, 7  ;;  %v314_v22 = vld [vmem:[#allocation4 + $0x1c8] sm:$0xff]  ;;  %797 = vrot.lane.b32.xlu0 %v4560_v2, %s3980_s3  ;;  %707 = vrot.lane.b32.xlu1 %v4586_v7, %s3980_s3 }
  0xa6   :  { %1064 = vst.msk [vmem:[#allocation2 + $0x68] sm:$0xfe] %vm563_vm2, %v4416_v32  ;;  %574 = vst.msk [vmem:[#allocation2 + $0xc0] sm:$0xfe] %vm563_vm2, %v4416_v32  ;;  %v4777_v41 = vsel %vm381_vm1, %v4766_v37, %v4768_v27  ;;  %v1151_v38 = vld [vmem:[#allocation2 + $0x18] sm:$0xff] }
  0xa7   :  { %1109 = vst.msk [vmem:[#allocation2 + $0x368] sm:$0xfe] %vm563_vm2, %v4418_v33  ;;  %619 = vst.msk [vmem:[#allocation2 + $0x3c0] sm:$0xfe] %vm563_vm2, %v4418_v33  ;;  %v1247_v8 = vld [vmem:[#allocation2 + $0x318] sm:$0xff]  ;;  %v1341_v9 = vpack.c.bf16 %v1151_v38, %v1149_v61  ;;  %1735 = vmatpush1.bf16.msra.mxu0 %v3796_v34  ;;  %3764 = vmatpush1.bf16.msra.mxu1 %v3796_v34  ;;  %v281_v38 = vld [vmem:[#allocation4 + $0xc0] sm:$0xff]  ;;  %v4841_v24 = vsel %vm381_vm1, %v4812_v25, %v4824_v55 }
  0xa8   :  { %1066 = vst.msk [vmem:[#allocation2 + $0x88] sm:$0x1] %vm566_vm3, %v4450_v39  ;;  %576 = vst.msk [vmem:[#allocation2 + $0xe0] sm:$0x1] %vm566_vm3, %v4450_v39  ;;  %v1389_v16 = vpack.c.bf16 %v1247_v8, %v1245_v18  ;;  %v312_v61 = vld [vmem:[#allocation4 + $0x1b8] sm:$0xff]  ;;  %v282_v34 = vld [vmem:[#allocation4 + $0xc8] sm:$0xff]  ;;  %1736 = vmatprep.subr.bf16.mxu0 %v3797_v49  ;;  %3753 = vmatprep.subr.bf16.mxu1 %v3797_v49 }
  0xa9   :  { %1111 = vst.msk [vmem:[#allocation2 + $0x388] sm:$0x1] %vm566_vm3, %v4452_v40  ;;  %621 = vst.msk [vmem:[#allocation2 + $0x3e0] sm:$0x1] %vm566_vm3, %v4452_v40  ;;  %v3800_v18 = vld [vmem:[#allocation9 + $0x74] ss:$8 sps:$4 sm:$0xff]   ;;  %3698 = vmatprep.mubr.msk.bf16.mxu0 %vm65_vm0, %v1341_v9  ;;  %705 = vrot.lane.b32.xlu0 %v4558_v1, %s3980_s3 }
  0xaa   :  { %575 = vst.msk [vmem:[#allocation2 + $0xd0] sm:$0xff] %vm65_vm0, %v4487_v50  ;;  %1065 = vst.msk [vmem:[#allocation2 + $0x78] sm:$0xff] %vm65_vm0, %v4487_v50  ;;  %v4843_v32 = vrot.slane %v312_v61, 7  ;;  %v4845_v49 = vrot.slane %v281_v38, 7  ;;  %v4847_v8 = vrot.slane %v282_v34, 7  ;;  %3722 = vmatprep.mubr.msk.bf16.mxu1 %vm65_vm0, %v1389_v16  ;;  %v283_v38 = vld [vmem:[#allocation4 + $0xd0] sm:$0xff]  ;;  %803 = vrot.lane.b32.xlu1 %v4622_v14, %s3980_s3 }
  0xab   :  { %620 = vst.msk [vmem:[#allocation2 + $0x3d0] sm:$0xff] %vm65_vm0, %v4496_v51  ;;  %1110 = vst.msk [vmem:[#allocation2 + $0x378] sm:$0xff] %vm65_vm0, %v4496_v51  ;;  %1737 = vmatpush1.bf16.msra.mxu0 %v3799_v12  ;;  %3765 = vmatpush1.bf16.msra.mxu1 %v3799_v12  ;;  %v3802_v61 = vld [vmem:[#allocation9 + $0x70] ss:$8 sps:$4 sm:$0xff]   ;;  %v4877_v12 = vrot.slane %v313_v19, 7  ;;  %v4891_v34 = vrot.slane %v314_v22, 7 }
  0xac   :  { %1067 = vst.msk [vmem:[#allocation2 + $0x98] sm:$0xfe] %vm563_vm2, %v4472_v44  ;;  %577 = vst.msk [vmem:[#allocation2 + $0xf0] sm:$0xfe] %vm563_vm2, %v4472_v44  ;;  %v4862_v9 = vsel %vm381_vm1, %v4822_v6, %v4843_v32  ;;  %v4867_v16 = vsel %vm381_vm1, %v4845_v49, %v4847_v8  ;;  %v4893_v19 = vrot.slane %v283_v38, 7  ;;  %v315_v33 = vld [vmem:[#allocation4 + $0x1d0] sm:$0xff]  ;;  %1738 = vmatprep.subr.bf16.mxu0 %v3800_v18  ;;  %3754 = vmatprep.subr.bf16.mxu1 %v3800_v18 }
  0xad   :  { %1069 = vst.msk [vmem:[#allocation2 + $0xb8] sm:$0x1] %vm566_vm3, %v4474_v45  ;;  %579 = vst.msk [vmem:[#allocation2 + $0x110] sm:$0x1] %vm566_vm3, %v4474_v45  ;;  %v4904_v22 = vsel %vm381_vm1, %v4877_v12, %v4891_v34  ;;  %v316_v38 = vld [vmem:[#allocation4 + $0x1d8] sm:$0xff]  ;;  %v287_v51 = vld [vmem:[#allocation4 + $0xf0] sm:$0xff]  ;;  %801 = vrot.lane.b32.xlu0 %v4562_v3, %s3980_s3  ;;  %v762_v45 = vpop.permute.xlu1 %761 }
  0xae   :  { %1112 = vst.msk [vmem:[#allocation2 + $0x398] sm:$0xfe] %vm563_vm2, %v4476_v46  ;;  %622 = vst.msk [vmem:[#allocation2 + $0x3f0] sm:$0xfe] %vm563_vm2, %v4476_v46  ;;  %v3806_v39 = vld [vmem:[#allocation9 + $0x94] ss:$8 sps:$4 sm:$0xff]   ;;  %711 = vrot.lane.b32.xlu1 %v4640_v21, %s3980_s3 }
  0xaf   :  { %1114 = vst.msk [vmem:[#allocation2 + $0x3b8] sm:$0x1] %vm566_vm3, %v4478_v47  ;;  %624 = vst.msk [vmem:[#allocation2 + $0x410] sm:$0x1] %vm566_vm3, %v4478_v47  ;;  %1739 = vmatpush1.bf16.msra.mxu0 %v3802_v61  ;;  %3766 = vmatpush1.bf16.msra.mxu1 %v3802_v61  ;;  %v3809_v40 = vld [vmem:[#allocation9 + $0xa4] ss:$8 sps:$4 sm:$0xff]   ;;  %v666_v47 = vpop.permute.xlu0 %665 }
  0xb0   :  { %578 = vst.msk [vmem:[#allocation2 + $0x100] sm:$0xff] %vm65_vm0, %v4513_v57  ;;  %1068 = vst.msk [vmem:[#allocation2 + $0xa8] sm:$0xff] %vm65_vm0, %v4513_v57  ;;  %1740 = vmatprep.subr.bf16.mxu0 %v3803_v26  ;;  %3755 = vmatprep.subr.bf16.mxu1 %v3803_v26  ;;  %v318_v26 = vld [vmem:[#allocation4 + $0x1e8] sm:$0xff]  ;;  %v288_v44 = vld [vmem:[#allocation4 + $0xf8] sm:$0xff] }
  0xb1   :  { %623 = vst.msk [vmem:[#allocation2 + $0x400] sm:$0xff] %vm65_vm0, %v4526_v58  ;;  %1113 = vst.msk [vmem:[#allocation2 + $0x3a8] sm:$0xff] %vm65_vm0, %v4526_v58  ;;  %v5018_v57 = vrot.slane %v288_v44, 7  ;;  %v320_v46 = vld [vmem:[#allocation4 + $0x1f8] sm:$0xff]  ;;  %709 = vrot.lane.b32.xlu0 %v4653_v23, %s3980_s3 }
  0xb2   :  { %1070 = vst.msk [vmem:[#allocation2 + $0xc8] sm:$0xfe] %vm563_vm2, %v4498_v52  ;;  %580 = vst.msk [vmem:[#allocation2 + $0x120] sm:$0xfe] %vm563_vm2, %v4498_v52  ;;  %807 = vrot.lane.b32.xlu1 %v4655_v28, %s3980_s3  ;;  %v764_v52 = vpop.permute.xlu1 %763 }
  0xb3   :  { %1115 = vst.msk [vmem:[#allocation2 + $0x3c8] sm:$0xfe] %vm563_vm2, %v4500_v53  ;;  %625 = vst.msk [vmem:[#allocation2 + $0x420] sm:$0xfe] %vm563_vm2, %v4500_v53  ;;  %v668_v53 = vpop.permute.xlu0 %667 }
  0xb4   :  { %1072 = vst.msk [vmem:[#allocation2 + $0xe8] sm:$0x1] %vm566_vm3, %v4536_v59  ;;  %582 = vst.msk [vmem:[#allocation2 + $0x140] sm:$0x1] %vm566_vm3, %v4536_v59 }
  0xb5   :  { %1117 = vst.msk [vmem:[#allocation2 + $0x3e8] sm:$0x1] %vm566_vm3, %v4538_v60  ;;  %627 = vst.msk [vmem:[#allocation2 + $0x440] sm:$0x1] %vm566_vm3, %v4538_v60  ;;  %805 = vrot.lane.b32.xlu0 %v4670_v35, %s3980_s3 }
  0xb6   :  { %581 = vst.msk [vmem:[#allocation2 + $0x130] sm:$0xff] %vm65_vm0, %v4575_v4  ;;  %1071 = vst.msk [vmem:[#allocation2 + $0xd8] sm:$0xff] %vm65_vm0, %v4575_v4  ;;  %715 = vrot.lane.b32.xlu1 %v4691_v30, %s3980_s3  ;;  %v672_v59 = vpop.permute.xlu1 %671 }
  0xb7   :  { %626 = vst.msk [vmem:[#allocation2 + $0x430] sm:$0xff] %vm65_vm0, %v4584_v5  ;;  %1116 = vst.msk [vmem:[#allocation2 + $0x3d8] sm:$0xff] %vm65_vm0, %v4584_v5  ;;  %v670_v60 = vpop.permute.xlu0 %669 }
  0xb8   :  { %1073 = vst.msk [vmem:[#allocation2 + $0xf8] sm:$0xfe] %vm563_vm2, %v4556_v0  ;;  %583 = vst.msk [vmem:[#allocation2 + $0x150] sm:$0xfe] %vm563_vm2, %v4556_v0  ;;  %v1153_v0 = vld [vmem:[#allocation2 + $0x28] sm:$0xff] }
  0xb9   :  { %1075 = vst.msk [vmem:[#allocation2 + $0x118] sm:$0x1] %vm566_vm3, %v4558_v1  ;;  %585 = vst.msk [vmem:[#allocation2 + $0x170] sm:$0x1] %vm566_vm3, %v4558_v1  ;;  %713 = vrot.lane.b32.xlu0 %v4661_v29, %s3980_s3  ;;  %v1155_v1 = vld [vmem:[#allocation2 + $0x38] sm:$0xff] }
  0xba   :  { %1118 = vst.msk [vmem:[#allocation2 + $0x3f8] sm:$0xfe] %vm563_vm2, %v4560_v2  ;;  %628 = vst.msk [vmem:[#allocation2 + $0x450] sm:$0xfe] %vm563_vm2, %v4560_v2  ;;  %811 = vrot.lane.b32.xlu1 %v4712_v56, %s3980_s3  ;;  %v1249_v2 = vld [vmem:[#allocation2 + $0x328] sm:$0xff]  ;;  %v768_v5 = vpop.permute.xlu1 %767 }
  0xbb   :  { %1120 = vst.msk [vmem:[#allocation2 + $0x418] sm:$0x1] %vm566_vm3, %v4562_v3  ;;  %630 = vst.msk [vmem:[#allocation2 + $0x470] sm:$0x1] %vm566_vm3, %v4562_v3  ;;  %v1251_v3 = vld [vmem:[#allocation2 + $0x338] sm:$0xff] }
  0xbc   :  { %584 = vst.msk [vmem:[#allocation2 + $0x160] sm:$0xff] %vm65_vm0, %v4599_v11  ;;  %1074 = vst.msk [vmem:[#allocation2 + $0x108] sm:$0xff] %vm65_vm0, %v4599_v11 }
  0xbd   :  { %629 = vst.msk [vmem:[#allocation2 + $0x460] sm:$0xff] %vm65_vm0, %v4612_v13  ;;  %1119 = vst.msk [vmem:[#allocation2 + $0x408] sm:$0xff] %vm65_vm0, %v4612_v13  ;;  %809 = vrot.lane.b32.xlu0 %v4686_v43, %s3980_s3 }
  0xbe   :  { %1076 = vst.msk [vmem:[#allocation2 + $0x128] sm:$0xfe] %vm563_vm2, %v4586_v7  ;;  %586 = vst.msk [vmem:[#allocation2 + $0x180] sm:$0xfe] %vm563_vm2, %v4586_v7  ;;  %719 = vrot.lane.b32.xlu1 %v4707_v54, %s3980_s3  ;;  %v766_v7 = vpop.permute.xlu0 %765 }
  0xbf   :  { %1121 = vst.msk [vmem:[#allocation2 + $0x428] sm:$0xfe] %vm563_vm2, %v4622_v14  ;;  %631 = vst.msk [vmem:[#allocation2 + $0x480] sm:$0xfe] %vm563_vm2, %v4622_v14 }
  0xc0   :  { %1078 = vst.msk [vmem:[#allocation2 + $0x148] sm:$0x1] %vm566_vm3, %v4640_v21  ;;  %588 = vst.msk [vmem:[#allocation2 + $0x1a0] sm:$0x1] %vm566_vm3, %v4640_v21  ;;  %v1343_v21 = vpack.c.bf16 %v1155_v1, %v1153_v0  ;;  %v1165_v1 = vld [vmem:[#allocation2 + $0x88] sm:$0xff] }
  0xc1   :  { %587 = vst.msk [vmem:[#allocation2 + $0x190] sm:$0xff] %vm65_vm0, %v4653_v23  ;;  %1077 = vst.msk [vmem:[#allocation2 + $0x138] sm:$0xff] %vm65_vm0, %v4653_v23  ;;  %717 = vrot.lane.b32.xlu0 %v4672_v36, %s3980_s3  ;;  %v1391_v23 = vpack.c.bf16 %v1251_v3, %v1249_v2  ;;  %v1167_v2 = vld [vmem:[#allocation2 + $0x98] sm:$0xff] }
  0xc2   :  { %1123 = vst.msk [vmem:[#allocation2 + $0x448] sm:$0x1] %vm566_vm3, %v4655_v28  ;;  %633 = vst.msk [vmem:[#allocation2 + $0x4a0] sm:$0x1] %vm566_vm3, %v4655_v28  ;;  %815 = vrot.lane.b32.xlu1 %v4730_v63, %s3980_s3  ;;  %v1263_v3 = vld [vmem:[#allocation2 + $0x398] sm:$0xff] }
  0xc3   :  { %632 = vst.msk [vmem:[#allocation2 + $0x490] sm:$0xff] %vm65_vm0, %v4670_v35  ;;  %1122 = vst.msk [vmem:[#allocation2 + $0x438] sm:$0xff] %vm65_vm0, %v4670_v35  ;;  %v676_v35 = vpop.permute.xlu1 %675 }
  0xc4   :  { %1079 = vst.msk [vmem:[#allocation2 + $0x158] sm:$0xfe] %vm563_vm2, %v4661_v29  ;;  %589 = vst.msk [vmem:[#allocation2 + $0x1b0] sm:$0xfe] %vm563_vm2, %v4661_v29 }
  0xc5   :  { %1081 = vst.msk [vmem:[#allocation2 + $0x178] sm:$0x1] %vm566_vm3, %v4672_v36  ;;  %591 = vst.msk [vmem:[#allocation2 + $0x1d0] sm:$0x1] %vm566_vm3, %v4672_v36  ;;  %813 = vrot.lane.b32.xlu0 %v4697_v48, %s3980_s3  ;;  %v674_v36 = vpop.permute.xlu0 %673 }
  0xc6   :  { %590 = vst.msk [vmem:[#allocation2 + $0x1c0] sm:$0xff] %vm65_vm0, %v4691_v30  ;;  %1080 = vst.msk [vmem:[#allocation2 + $0x168] sm:$0xff] %vm65_vm0, %v4691_v30  ;;  %723 = vrot.lane.b32.xlu1 %v4736_v31, %s3980_s3 }
  0xc7   :  { %1124 = vst.msk [vmem:[#allocation2 + $0x458] sm:$0xfe] %vm563_vm2, %v4686_v43  ;;  %634 = vst.msk [vmem:[#allocation2 + $0x4b0] sm:$0xfe] %vm563_vm2, %v4686_v43 }
  0xc8   :  { %1126 = vst.msk [vmem:[#allocation2 + $0x478] sm:$0x1] %vm566_vm3, %v4697_v48  ;;  %636 = vst.msk [vmem:[#allocation2 + $0x4d0] sm:$0x1] %vm566_vm3, %v4697_v48  ;;  %v1157_v48 = vld [vmem:[#allocation2 + $0x48] sm:$0xff] }
  0xc9   :  { %635 = vst.msk [vmem:[#allocation2 + $0x4c0] sm:$0xff] %vm65_vm0, %v4712_v56  ;;  %1125 = vst.msk [vmem:[#allocation2 + $0x468] sm:$0xff] %vm65_vm0, %v4712_v56  ;;  %721 = vrot.lane.b32.xlu0 %v4751_v15, %s3980_s3  ;;  %v1253_v56 = vld [vmem:[#allocation2 + $0x348] sm:$0xff] }
  0xca   :  { %1082 = vst.msk [vmem:[#allocation2 + $0x188] sm:$0xfe] %vm563_vm2, %v4707_v54  ;;  %592 = vst.msk [vmem:[#allocation2 + $0x1e0] sm:$0xfe] %vm563_vm2, %v4707_v54  ;;  %819 = vrot.lane.b32.xlu1 %v4738_v10, %s3980_s3  ;;  %v1159_v54 = vld [vmem:[#allocation2 + $0x58] sm:$0xff] }
  0xcb   :  { %1127 = vst.msk [vmem:[#allocation2 + $0x488] sm:$0xfe] %vm563_vm2, %v4730_v63  ;;  %637 = vst.msk [vmem:[#allocation2 + $0x4e0] sm:$0xfe] %vm563_vm2, %v4730_v63  ;;  %v1255_v63 = vld [vmem:[#allocation2 + $0x358] sm:$0xff] }
  0xcc   :  { %1084 = vst.msk [vmem:[#allocation2 + $0x1a8] sm:$0x1] %vm566_vm3, %v4736_v31  ;;  %594 = vst.msk [vmem:[#allocation2 + $0x200] sm:$0x1] %vm566_vm3, %v4736_v31 }
  0xcd   :  { %593 = vst.msk [vmem:[#allocation2 + $0x1f0] sm:$0xff] %vm65_vm0, %v4751_v15  ;;  %1083 = vst.msk [vmem:[#allocation2 + $0x198] sm:$0xff] %vm65_vm0, %v4751_v15  ;;  %817 = vrot.lane.b32.xlu0 %v4764_v20, %s3980_s3  ;;  %v770_v15 = vpop.permute.xlu0 %769 }
  0xce   :  { %1129 = vst.msk [vmem:[#allocation2 + $0x4a8] sm:$0x1] %vm566_vm3, %v4738_v10  ;;  %639 = vst.msk [vmem:[#allocation2 + $0x500] sm:$0x1] %vm566_vm3, %v4738_v10  ;;  %727 = vrot.lane.b32.xlu1 %v4777_v41, %s3980_s3  ;;  %v772_v10 = vpop.permute.xlu1 %771 }
  0xcf   :  { %638 = vst.msk [vmem:[#allocation2 + $0x4f0] sm:$0xff] %vm65_vm0, %v4764_v20  ;;  %1128 = vst.msk [vmem:[#allocation2 + $0x498] sm:$0xff] %vm65_vm0, %v4764_v20 }
  0xd0   :  { %1085 = vst.msk [vmem:[#allocation2 + $0x1b8] sm:$0xfe] %vm563_vm2, %v4766_v37  ;;  %595 = vst.msk [vmem:[#allocation2 + $0x210] sm:$0xfe] %vm563_vm2, %v4766_v37 }
  0xd1   :  { %1087 = vst.msk [vmem:[#allocation2 + $0x1d8] sm:$0x1] %vm566_vm3, %v4768_v27  ;;  %597 = vst.msk [vmem:[#allocation2 + $0x230] sm:$0x1] %vm566_vm3, %v4768_v27  ;;  %725 = vrot.lane.b32.xlu0 %v4766_v37, %s3980_s3 }
  0xd2   :  { %596 = vst.msk [vmem:[#allocation2 + $0x220] sm:$0xff] %vm65_vm0, %v4777_v41  ;;  %1086 = vst.msk [vmem:[#allocation2 + $0x1c8] sm:$0xff] %vm65_vm0, %v4777_v41  ;;  %823 = vrot.lane.b32.xlu1 %v4802_v62, %s3980_s3  ;;  %v1393_v41 = vpack.c.bf16 %v1255_v63, %v1253_v56  ;;  %v1171_v56 = vld [vmem:[#allocation2 + $0xb8] sm:$0xff] }
  0xd3   :  { %1130 = vst.msk [vmem:[#allocation2 + $0x4b8] sm:$0xfe] %vm563_vm2, %v4787_v42  ;;  %640 = vst.msk [vmem:[#allocation2 + $0x510] sm:$0xfe] %vm563_vm2, %v4787_v42  ;;  %v1267_v63 = vld [vmem:[#allocation2 + $0x3b8] sm:$0xff] }
  0xd4   :  { %1132 = vst.msk [vmem:[#allocation2 + $0x4d8] sm:$0x1] %vm566_vm3, %v4789_v17  ;;  %642 = vst.msk [vmem:[#allocation2 + $0x530] sm:$0x1] %vm566_vm3, %v4789_v17 }
  0xd5   :  { %641 = vst.msk [vmem:[#allocation2 + $0x520] sm:$0xff] %vm65_vm0, %v4802_v62  ;;  %1131 = vst.msk [vmem:[#allocation2 + $0x4c8] sm:$0xff] %vm65_vm0, %v4802_v62  ;;  %821 = vrot.lane.b32.xlu0 %v4787_v42, %s3980_s3  ;;  %v678_v62 = vpop.permute.xlu0 %677 }
  0xd6   :  { %1088 = vst.msk [vmem:[#allocation2 + $0x1e8] sm:$0xfe] %vm563_vm2, %v4812_v25  ;;  %598 = vst.msk [vmem:[#allocation2 + $0x240] sm:$0xfe] %vm563_vm2, %v4812_v25  ;;  %731 = vrot.lane.b32.xlu1 %v4812_v25, %s3980_s3 }
  0xd7   :  { %1133 = vst.msk [vmem:[#allocation2 + $0x4e8] sm:$0xfe] %vm563_vm2, %v4822_v6  ;;  %643 = vst.msk [vmem:[#allocation2 + $0x540] sm:$0xfe] %vm563_vm2, %v4822_v6 }
  0xd8   :  { %1090 = vst.msk [vmem:[#allocation2 + $0x208] sm:$0x1] %vm566_vm3, %v4824_v55  ;;  %600 = vst.msk [vmem:[#allocation2 + $0x260] sm:$0x1] %vm566_vm3, %v4824_v55 }
  0xd9   :  { %6453 = vst [vmem:[#allocation14_spill] sm:$0xff] %v4845_v49  ;;  %6454 = vst [vmem:[#allocation15_spill] sm:$0xff] %v4847_v8  ;;  %729 = vrot.lane.b32.xlu0 %v4768_v27, %s3980_s3  ;;  %v1345_v27 = vpack.c.bf16 %v1159_v54, %v1157_v48  ;;  %v774_v44 = vpop.permute.xlu0 %773  ;;  %v1169_v54 = vld [vmem:[#allocation2 + $0xa8] sm:$0xff] }
  0xda   :  { %599 = vst.msk [vmem:[#allocation2 + $0x250] sm:$0xff] %vm65_vm0, %v4841_v24  ;;  %1089 = vst.msk [vmem:[#allocation2 + $0x1f8] sm:$0xff] %vm65_vm0, %v4841_v24  ;;  %827 = vrot.lane.b32.xlu1 %v4822_v6, %s3980_s3 }
  0xdb   :  { %1135 = vst.msk [vmem:[#allocation2 + $0x508] sm:$0x1] %vm566_vm3, %v4843_v32  ;;  %645 = vst.msk [vmem:[#allocation2 + $0x560] sm:$0x1] %vm566_vm3, %v4843_v32 }
  0xdc   :  { %1091 = vst.msk [vmem:[#allocation2 + $0x218] sm:$0xfe] %vm563_vm2, %v4845_v49  ;;  %601 = vst.msk [vmem:[#allocation2 + $0x270] sm:$0xfe] %vm563_vm2, %v4845_v49  ;;  %v284_v49 = vld [vmem:[#allocation4 + $0xd8] sm:$0xff] }
  0xdd   :  { %1093 = vst.msk [vmem:[#allocation2 + $0x238] sm:$0x1] %vm566_vm3, %v4847_v8  ;;  %603 = vst.msk [vmem:[#allocation2 + $0x290] sm:$0x1] %vm566_vm3, %v4847_v8  ;;  %v4899_v8 = vrot.slane %v315_v33, 7  ;;  %v4914_v18 = vrot.slane %v284_v49, 7  ;;  %825 = vrot.lane.b32.xlu0 %v4789_v17, %s3980_s3  ;;  %v680_v17 = vpop.permute.xlu1 %679 }
  0xde   :  { %6455 = vst [vmem:[#allocation16_spill] sm:$0xff] %v4877_v12  ;;  %644 = vst.msk [vmem:[#allocation2 + $0x550] sm:$0xff] %vm65_vm0, %v4862_v9  ;;  %v3805_v33 = vld [vmem:[#allocation9 + $0x80] ss:$8 sps:$4 sm:$0xff]   ;;  %735 = vrot.lane.b32.xlu1 %v4824_v55, %s3980_s3 }
  0xdf   :  { %1134 = vst.msk [vmem:[#allocation2 + $0x4f8] sm:$0xff] %vm65_vm0, %v4862_v9  ;;  %602 = vst.msk [vmem:[#allocation2 + $0x280] sm:$0xff] %vm65_vm0, %v4867_v16  ;;  %v285_v49 = vld [vmem:[#allocation4 + $0xe0] sm:$0xff]  ;;  %v4937_v61 = vsel %vm381_vm1, %v4893_v19, %v4914_v18  ;;  %1741 = vmatpush1.bf16.msra.mxu0 %v3805_v33  ;;  %3767 = vmatpush1.bf16.msra.mxu1 %v3805_v33  ;;  %v5002_v33 = vrot.slane %v287_v51, 7  ;;  %v3814_v51 = vld [vmem:[#allocation9 + $0xb0] ss:$8 sps:$4 sm:$0xff]  }
  0xe0   :  { %1092 = vst.msk [vmem:[#allocation2 + $0x228] sm:$0xff] %vm65_vm0, %v4867_v16  ;;  %6456 = vst [vmem:[#allocation17_spill] sm:$0xff] %v4891_v34  ;;  %1742 = vmatprep.subr.bf16.mxu0 %v3806_v39  ;;  %3756 = vmatprep.subr.bf16.mxu1 %v3806_v39  ;;  %v3812_v39 = vld [vmem:[#allocation9 + $0xb4] ss:$8 sps:$4 sm:$0xff]   ;;  %v1257_v55 = vld [vmem:[#allocation2 + $0x368] sm:$0xff] }
  0xe1   :  { %1136 = vst.msk [vmem:[#allocation2 + $0x518] sm:$0xfe] %vm563_vm2, %v4877_v12  ;;  %646 = vst.msk [vmem:[#allocation2 + $0x570] sm:$0xfe] %vm563_vm2, %v4877_v12  ;;  %v286_v12 = vld [vmem:[#allocation4 + $0xe8] sm:$0xff]  ;;  %v5025_v58 = vsel %vm381_vm1, %v5002_v33, %v5018_v57  ;;  %733 = vrot.lane.b32.xlu0 %v4841_v24, %s3980_s3 }
  0xe2   :  { %6457 = vst [vmem:[#allocation18_spill] sm:$0xff] %v4904_v22  ;;  %1138 = vst.msk [vmem:[#allocation2 + $0x538] sm:$0x1] %vm566_vm3, %v4891_v34  ;;  %831 = vrot.lane.b32.xlu1 %v4843_v32, %s3980_s3  ;;  %v6463_v32 = vld [vmem:[#allocation14_spill] sm:$0xff] }
  0xe3   :  { %648 = vst.msk [vmem:[#allocation2 + $0x590] sm:$0x1] %vm566_vm3, %v4891_v34  ;;  %v4924_v34 = vrot.slane %v316_v38, 7  ;;  %1096 = vst.msk [vmem:[#allocation2 + $0x268] sm:$0x1] %vm566_vm3, %v4914_v18  ;;  %v4939_v38 = vrot.slane %v285_v49, 7 }
  0xe4   :  { %1094 = vst.msk [vmem:[#allocation2 + $0x248] sm:$0xfe] %vm563_vm2, %v4893_v19  ;;  %604 = vst.msk [vmem:[#allocation2 + $0x2a0] sm:$0xfe] %vm563_vm2, %v4893_v19 }
  0xe5   :  { %647 = vst.msk [vmem:[#allocation2 + $0x580] sm:$0xff] %vm65_vm0, %v4904_v22  ;;  %1137 = vst.msk [vmem:[#allocation2 + $0x528] sm:$0xff] %vm65_vm0, %v4904_v22  ;;  %v4941_v22 = vrot.slane %v286_v12, 7  ;;  %v4954_v50 = vsel %vm381_vm1, %v4899_v8, %v4924_v34  ;;  %v317_v12 = vld [vmem:[#allocation4 + $0x1e0] sm:$0xff]  ;;  %829 = vrot.lane.b32.xlu0 %v4862_v9, %s3980_s3 }
  0xe6   :  { %1139 = vst.msk [vmem:[#allocation2 + $0x548] sm:$0xfe] %vm563_vm2, %v4899_v8  ;;  %649 = vst.msk [vmem:[#allocation2 + $0x5a0] sm:$0xfe] %vm563_vm2, %v4899_v8  ;;  %739 = vrot.lane.b32.xlu1 %v4867_v16, %s3980_s3  ;;  %v1261_v16 = vld [vmem:[#allocation2 + $0x388] sm:$0xff] }
  0xe7   :  { %6458 = vst [vmem:[#allocation19_spill] sm:$0xff] %v4924_v34  ;;  %606 = vst.msk [vmem:[#allocation2 + $0x2c0] sm:$0x1] %vm566_vm3, %v4914_v18  ;;  %v4963_v49 = vsel %vm381_vm1, %v4939_v38, %v4941_v22 }
  0xe8   :  { %6459 = vst [vmem:[#allocation20_spill] sm:$0xff] %v4937_v61  ;;  %6460 = vst [vmem:[#allocation21_spill] sm:$0xff] %v4941_v22 }
  0xe9   :  { %605 = vst.msk [vmem:[#allocation2 + $0x2b0] sm:$0xff] %vm65_vm0, %v4937_v61  ;;  %1095 = vst.msk [vmem:[#allocation2 + $0x258] sm:$0xff] %vm65_vm0, %v4937_v61  ;;  %v3808_v61 = vld [vmem:[#allocation9 + $0x90] ss:$8 sps:$4 sm:$0xff]   ;;  %737 = vrot.lane.b32.xlu0 %v6463_v32, %s3980_s3 }
  0xea   :  { %1141 = vst.msk [vmem:[#allocation2 + $0x568] sm:$0x1] %vm566_vm3, %v4924_v34  ;;  %651 = vst.msk [vmem:[#allocation2 + $0x5c0] sm:$0x1] %vm566_vm3, %v4924_v34  ;;  %v4973_v34 = vrot.slane %v317_v12, 7  ;;  %1743 = vmatpush1.bf16.msra.mxu0 %v3808_v61  ;;  %3768 = vmatpush1.bf16.msra.mxu1 %v3808_v61  ;;  %v5033_v61 = vrot.slane %v320_v46, 7 }
  0xeb   :  { %6461 = vst [vmem:[#allocation22_spill] sm:$0xff] %v4954_v50  ;;  %650 = vst.msk [vmem:[#allocation2 + $0x5b0] sm:$0xff] %vm65_vm0, %v4954_v50  ;;  %1744 = vmatprep.subr.bf16.mxu0 %v3809_v40  ;;  %3757 = vmatprep.subr.bf16.mxu1 %v3809_v40  ;;  %v1161_v40 = vld [vmem:[#allocation2 + $0x68] sm:$0xff] }
  0xec   :  { %1140 = vst.msk [vmem:[#allocation2 + $0x558] sm:$0xff] %vm65_vm0, %v4954_v50  ;;  %v4975_v50 = vrot.slane %v318_v26, 7  ;;  %608 = vst.msk [vmem:[#allocation2 + $0x2e0] sm:$0xff] %vm65_vm0, %v4963_v49  ;;  %v3811_v26 = vld [vmem:[#allocation9 + $0xa0] ss:$8 sps:$4 sm:$0xff]  }
  0xed   :  { %1097 = vst.msk [vmem:[#allocation2 + $0x278] sm:$0xfe] %vm563_vm2, %v4939_v38  ;;  %607 = vst.msk [vmem:[#allocation2 + $0x2d0] sm:$0xfe] %vm563_vm2, %v4939_v38 }
  0xee   :  { %1099 = vst.msk [vmem:[#allocation2 + $0x298] sm:$0x1] %vm566_vm3, %v4941_v22  ;;  %609 = vst.msk [vmem:[#allocation2 + $0x2f0] sm:$0x1] %vm566_vm3, %v4941_v22  ;;  %v4988_v12 = vsel %vm381_vm1, %v4973_v34, %v4975_v50  ;;  %1745 = vmatpush1.bf16.msra.mxu0 %v3811_v26  ;;  %3769 = vmatpush1.bf16.msra.mxu1 %v3811_v26  ;;  %v1163_v26 = vld [vmem:[#allocation2 + $0x78] sm:$0xff] }
  0xef   :  { %6462 = vst [vmem:[#allocation23_spill] sm:$0xff] %v4975_v50  ;;  %1098 = vst.msk [vmem:[#allocation2 + $0x288] sm:$0xff] %vm65_vm0, %v4963_v49  ;;  %1746 = vmatprep.subr.bf16.mxu0 %v3812_v39  ;;  %3758 = vmatprep.subr.bf16.mxu1 %v3812_v39  ;;  %v1259_v39 = vld [vmem:[#allocation2 + $0x378] sm:$0xff] }
  0xf0   :  { %1142 = vst.msk [vmem:[#allocation2 + $0x578] sm:$0xfe] %vm563_vm2, %v4973_v34  ;;  %652 = vst.msk [vmem:[#allocation2 + $0x5d0] sm:$0xfe] %vm563_vm2, %v4973_v34 }
  0xf1   :  { %1144 = vst.msk [vmem:[#allocation2 + $0x598] sm:$0x1] %vm566_vm3, %v4975_v50  ;;  %654 = vst.msk [vmem:[#allocation2 + $0x5f0] sm:$0x1] %vm566_vm3, %v4975_v50  ;;  %v319_v50 = vld [vmem:[#allocation4 + $0x1f0] sm:$0xff] }
  0xf2   :  { %653 = vst.msk [vmem:[#allocation2 + $0x5e0] sm:$0xff] %vm65_vm0, %v4988_v12  ;;  %1143 = vst.msk [vmem:[#allocation2 + $0x588] sm:$0xff] %vm65_vm0, %v4988_v12  ;;  %v5010_v22 = vrot.slane %v319_v50, 7  ;;  %1747 = vmatpush1.bf16.msra.mxu0 %v3814_v51  ;;  %3770 = vmatpush1.bf16.msra.mxu1 %v3814_v51  ;;  %v776_v51 = vpop.permute.xlu1 %775 }
  0xf3   :  { %1100 = vst.msk [vmem:[#allocation2 + $0x2a8] sm:$0xfe] %vm563_vm2, %v5002_v33 }
  0xf4   :  { %1145 = vst.msk [vmem:[#allocation2 + $0x5a8] sm:$0xfe] %vm563_vm2, %v5010_v22  ;;  %v5040_v50 = vsel %vm381_vm1, %v5010_v22, %v5033_v61 }
  0xf5   :  { %1102 = vst.msk [vmem:[#allocation2 + $0x2c8] sm:$0x1] %vm566_vm3, %v5018_v57  ;;  %1147 = vst.msk [vmem:[#allocation2 + $0x5c8] sm:$0x1] %vm566_vm3, %v5033_v61 }
  0xf6   :  { %1101 = vst.msk [vmem:[#allocation2 + $0x2b8] sm:$0xff] %vm65_vm0, %v5025_v58  ;;  %1146 = vst.msk [vmem:[#allocation2 + $0x5b8] sm:$0xff] %vm65_vm0, %v5040_v50  ;;  %v684_v9 = vpop.permute.xlu1 %683 }
  0xf7   :  { %1004 = vst.msk [vmem:[#allocation2 + $0x300] sm:$0xfe] %vm953_vm4, %v762_v45  ;;  %954 = vst.msk [vmem:[#allocation2] sm:$0xfe] %vm953_vm4, %v666_v47  ;;  %v1347_v47 = vpack.c.bf16 %v1163_v26, %v1161_v40  ;;  %v1173_v26 = vld [vmem:[#allocation2 + $0xc8] sm:$0xff] }
  0xf8   :  { %1005 = vst.msk [vmem:[#allocation2 + $0x310] sm:$0xff] %vm955_vm5, %v764_v52  ;;  %956 = vst.msk [vmem:[#allocation2 + $0x10] sm:$0xff] %vm955_vm5, %v668_v53  ;;  %v1395_v52 = vpack.c.bf16 %v1259_v39, %v1257_v55  ;;  %v1175_v55 = vld [vmem:[#allocation2 + $0xd8] sm:$0xff] }
  0xf9   :  { %959 = vst.msk [vmem:[#allocation2 + $0x30] sm:$0xfe] %vm953_vm4, %v672_v59  ;;  %1007 = vst.msk [vmem:[#allocation2 + $0x330] sm:$0xfe] %vm953_vm4, %v768_v5  ;;  %v682_v59 = vpop.permute.xlu0 %681  ;;  %v6465_v5 = vld [vmem:[#allocation16_spill] sm:$0xff]  ;;  %v1271_v39 = vld [vmem:[#allocation2 + $0x3d8] sm:$0xff] }
  0xfa   :  { %958 = vst.msk [vmem:[#allocation2 + $0x20] sm:$0x1] %vm957_vm6, %v670_v60  ;;  %1006 = vst.msk [vmem:[#allocation2 + $0x320] sm:$0x1] %vm957_vm6, %v766_v7  ;;  %833 = vrot.lane.b32.xlu0 %v6465_v5, %s3980_s3 }
  0xfb   :  { %961 = vst.msk [vmem:[#allocation2 + $0x50] sm:$0x1] %vm957_vm6, %v676_v35  ;;  %1009 = vst.msk [vmem:[#allocation2 + $0x350] sm:$0x1] %vm957_vm6, %v772_v10  ;;  %v6466_v35 = vld [vmem:[#allocation15_spill] sm:$0xff] }
  0xfc   :  { %960 = vst.msk [vmem:[#allocation2 + $0x40] sm:$0xff] %vm955_vm5, %v674_v36  ;;  %1008 = vst.msk [vmem:[#allocation2 + $0x340] sm:$0xff] %vm955_vm5, %v770_v15 }
  0xfd   :  { %963 = vst.msk [vmem:[#allocation2 + $0x70] sm:$0xff] %vm955_vm5, %v680_v17  ;;  %1011 = vst.msk [vmem:[#allocation2 + $0x370] sm:$0xff] %vm955_vm5, %v776_v51  ;;  %v6470_v51 = vld [vmem:[#allocation22_spill] sm:$0xff] }
  0xfe   :  { %v1244_v4 = vld [vmem:[#allocation2 + $0x300] sm:$0xff]  ;;  %962 = vst.msk [vmem:[#allocation2 + $0x60] sm:$0xfe] %vm953_vm4, %v678_v62  ;;  %1010 = vst.msk [vmem:[#allocation2 + $0x360] sm:$0xfe] %vm953_vm4, %v774_v44  ;;  %741 = vrot.lane.b32.xlu0 %v6466_v35, %s3980_s3  ;;  %v1181_v35 = vld [vmem:[#allocation2 + $0x108] sm:$0xff] }
  0xff   :  { %v1148_v11 = vld [vmem:[#allocation2] sm:$0xff]  ;;  %v1150_v13 = vld [vmem:[#allocation2 + $0x10] sm:$0xff]  ;;  %965 = vst.msk [vmem:[#allocation2 + $0x90] sm:$0xfe] %vm953_vm4, %v684_v9 }
 0x100   :  { %v1246_v14 = vld [vmem:[#allocation2 + $0x310] sm:$0xff]  ;;  %v1340_v28 = vpack.c.bf16 %v1150_v13, %v1148_v11  ;;  %964 = vst.msk [vmem:[#allocation2 + $0x80] sm:$0x1] %vm957_vm6, %v682_v59  ;;  %v780_v11 = vpop.permute.xlu1 %779  ;;  %v778_v13 = vpop.permute.xlu0 %777 }
 0x101   :  { %v1388_v29 = vpack.c.bf16 %v1246_v14, %v1244_v4  ;;  %v1152_v43 = vld [vmem:[#allocation2 + $0x20] sm:$0xff]  ;;  %v1154_v30 = vld [vmem:[#allocation2 + $0x30] sm:$0xff]  ;;  %1013 = vst.msk [vmem:[#allocation2 + $0x390] sm:$0xfe] %vm953_vm4, %v780_v11 }
 0x102   :  { %1757 = vmatmul.mubr.bf16.vlgmr.msra.gmra.mrb[0].mxu0 %v1340_v28  ;;  %v1342_v31 = vpack.c.bf16 %v1154_v30, %v1152_v43  ;;  %v1248_v20 = vld [vmem:[#allocation2 + $0x320] sm:$0xff]  ;;  %v1250_v37 = vld [vmem:[#allocation2 + $0x330] sm:$0xff]  ;;  %v1397_v28 = vpack.c.bf16 %v1263_v3, %v1261_v16  ;;  %1012 = vst.msk [vmem:[#allocation2 + $0x380] sm:$0x1] %vm957_vm6, %v778_v13  ;;  %v1179_v16 = vld [vmem:[#allocation2 + $0xf8] sm:$0xff] }
 0x103   :  { %1997 = vmatmul.mubr.bf16.vlgmr.msra.gmra.mrb[0].mxu1 %v1388_v29  ;;  %3699 = vmatprep.mubr.msk.bf16.mxu0 %vm65_vm0, %v1343_v21  ;;  %v1390_v42 = vpack.c.bf16 %v1250_v37, %v1248_v20  ;;  %v1156_v25 = vld [vmem:[#allocation2 + $0x40] sm:$0xff]  ;;  %v1158_v6 = vld [vmem:[#allocation2 + $0x50] sm:$0xff]  ;;  %v1275_v3 = vld [vmem:[#allocation2 + $0x3f8] sm:$0xff] }
 0x104   :  { %3723 = vmatprep.mubr.msk.bf16.mxu1 %vm65_vm0, %v1391_v23  ;;  %v1344_v24 = vpack.c.bf16 %v1158_v6, %v1156_v25  ;;  %v1252_v46 = vld [vmem:[#allocation2 + $0x340] sm:$0xff]  ;;  %v1254_v45 = vld [vmem:[#allocation2 + $0x350] sm:$0xff]  ;;  %v1349_v23 = vpack.c.bf16 %v1167_v2, %v1165_v1  ;;  %v688_v36 = vpop.permute.xlu1 %687  ;;  %v686_v43 = vpop.permute.xlu0 %685  ;;  %v1177_v2 = vld [vmem:[#allocation2 + $0xe8] sm:$0xff] }
 0x105   :  { %v1392_v53 = vpack.c.bf16 %v1254_v45, %v1252_v46  ;;  %v1160_v60 = vld [vmem:[#allocation2 + $0x60] sm:$0xff]  ;;  %v1162_v0 = vld [vmem:[#allocation2 + $0x70] sm:$0xff]  ;;  %967 = vst.msk [vmem:[#allocation2 + $0xb0] sm:$0x1] %vm957_vm6, %v688_v36  ;;  %v1355_v13 = vpack.c.bf16 %v1179_v16, %v1177_v2  ;;  %v1183_v36 = vld [vmem:[#allocation2 + $0x118] sm:$0xff] }
 0x106   :  { %v6464_v4 = vld [vmem:[#allocation18_spill] sm:$0xff]  ;;  %v1346_v7 = vpack.c.bf16 %v1162_v0, %v1160_v60  ;;  %v1258_v21 = vld [vmem:[#allocation2 + $0x370] sm:$0xff]  ;;  %966 = vst.msk [vmem:[#allocation2 + $0xa0] sm:$0xff] %vm955_vm5, %v686_v43  ;;  %v1279_v43 = vld [vmem:[#allocation2 + $0x418] sm:$0xff] }
 0x107   :  { %835 = vrot.lane.b32.xlu1 %v6464_v4, %s3980_s3  ;;  %v1256_v14 = vld [vmem:[#allocation2 + $0x360] sm:$0xff]  ;;  %v1166_v48 = vld [vmem:[#allocation2 + $0x90] sm:$0xff] }
 0x108   :  { %v1394_v29 = vpack.c.bf16 %v1258_v21, %v1256_v14  ;;  %v1164_v30 = vld [vmem:[#allocation2 + $0x80] sm:$0xff]  ;;  %v784_v15 = vpop.permute.xlu1 %783  ;;  %v782_v20 = vpop.permute.xlu0 %781 }
 0x109   :  { %v1348_v10 = vpack.c.bf16 %v1166_v48, %v1164_v30  ;;  %v1260_v37 = vld [vmem:[#allocation2 + $0x380] sm:$0xff]  ;;  %1015 = vst.msk [vmem:[#allocation2 + $0x3b0] sm:$0x1] %vm957_vm6, %v784_v15  ;;  %v6472_v30 = vld [vmem:[#allocation23_spill] sm:$0xff] }
 0x10a   :  { %1767 = vmatmul.mubr.bf16.gmra.mrb[4].mxu0 %v1342_v31  ;;  %v6467_v31 = vld [vmem:[#allocation17_spill] sm:$0xff]  ;;  %1014 = vst.msk [vmem:[#allocation2 + $0x3a0] sm:$0xff] %vm955_vm5, %v782_v20 }
 0x10b   :  { %2007 = vmatmul.mubr.bf16.gmra.mrb[4].mxu1 %v1390_v42  ;;  %3700 = vmatprep.mubr.msk.bf16.mxu0 %vm65_vm0, %v1345_v27  ;;  %v1262_v27 = vld [vmem:[#allocation2 + $0x390] sm:$0xff] }
 0x10c   :  { %3724 = vmatprep.mubr.msk.bf16.mxu1 %vm65_vm0, %v1393_v41  ;;  %743 = vrot.lane.b32.xlu1 %v4893_v19, %s3980_s3  ;;  %v1265_v19 = vld [vmem:[#allocation2 + $0x3a8] sm:$0xff]  ;;  %v1351_v41 = vpack.c.bf16 %v1171_v56, %v1169_v54  ;;  %v1396_v17 = vpack.c.bf16 %v1262_v27, %v1260_v37  ;;  %v692_v62 = vpop.permute.xlu1 %691  ;;  %v690_v25 = vpop.permute.xlu0 %689  ;;  %v1170_v40 = vld [vmem:[#allocation2 + $0xb0] sm:$0xff] }
 0x10d   :  { %837 = vrot.lane.b32.xlu0 %v6467_v31, %s3980_s3  ;;  %v1399_v42 = vpack.c.bf16 %v1267_v63, %v1265_v19  ;;  %v1168_v6 = vld [vmem:[#allocation2 + $0xa0] sm:$0xff]  ;;  %969 = vst.msk [vmem:[#allocation2 + $0xd0] sm:$0xff] %vm955_vm5, %v692_v62  ;;  %v1357_v31 = vpack.c.bf16 %v1183_v36, %v1181_v35  ;;  %v1197_v36 = vld [vmem:[#allocation2 + $0x188] sm:$0xff] }
 0x10e   :  { %968 = vst.msk [vmem:[#allocation2 + $0xc0] sm:$0xfe] %vm953_vm4, %v690_v25  ;;  %v1350_v44 = vpack.c.bf16 %v1170_v40, %v1168_v6 }
 0x110   :  { %839 = vrot.lane.b32.xlu1 %v4899_v8, %s3980_s3  ;;  %v6468_v8 = vld [vmem:[#allocation20_spill] sm:$0xff]  ;;  %v788_v46 = vpop.permute.xlu1 %787  ;;  %v786_v45 = vpop.permute.xlu0 %785 }
 0x111   :  { %745 = vrot.lane.b32.xlu0 %v6468_v8, %s3980_s3  ;;  %1017 = vst.msk [vmem:[#allocation2 + $0x3d0] sm:$0xff] %vm955_vm5, %v788_v46  ;;  %v1287_v46 = vld [vmem:[#allocation2 + $0x458] sm:$0xff] }
 0x112   :  { %1777 = vmatmul.mubr.bf16.gmra.mrb[8].mxu0 %v1344_v24  ;;  %v6469_v24 = vld [vmem:[#allocation19_spill] sm:$0xff]  ;;  %1016 = vst.msk [vmem:[#allocation2 + $0x3c0] sm:$0xfe] %vm953_vm4, %v786_v45 }
 0x113   :  { %2017 = vmatmul.mubr.bf16.gmra.mrb[8].mxu1 %v1392_v53  ;;  %3701 = vmatprep.mubr.msk.bf16.mxu0 %vm65_vm0, %v1347_v47  ;;  %v1264_v47 = vld [vmem:[#allocation2 + $0x3a0] sm:$0xff]  ;;  %v1353_v53 = vpack.c.bf16 %v1175_v55, %v1173_v26 }
 0x114   :  { %3725 = vmatprep.mubr.msk.bf16.mxu1 %vm65_vm0, %v1395_v52  ;;  %747 = vrot.lane.b32.xlu1 %v4914_v18, %s3980_s3  ;;  %v1269_v18 = vld [vmem:[#allocation2 + $0x3c8] sm:$0xff]  ;;  %v1266_v52 = vld [vmem:[#allocation2 + $0x3b0] sm:$0xff]  ;;  %v696_v59 = vpop.permute.xlu1 %695  ;;  %v694_v60 = vpop.permute.xlu0 %693 }
 0x115   :  { %841 = vrot.lane.b32.xlu0 %v6470_v51, %s3980_s3  ;;  %v1401_v32 = vpack.c.bf16 %v1271_v39, %v1269_v18  ;;  %v1398_v9 = vpack.c.bf16 %v1266_v52, %v1264_v47  ;;  %v1172_v0 = vld [vmem:[#allocation2 + $0xc0] sm:$0xff]  ;;  %v1174_v1 = vld [vmem:[#allocation2 + $0xd0] sm:$0xff]  ;;  %971 = vst.msk [vmem:[#allocation2 + $0xf0] sm:$0xfe] %vm953_vm4, %v696_v59  ;;  %v1191_v51 = vld [vmem:[#allocation2 + $0x158] sm:$0xff] }
 0x116   :  { %970 = vst.msk [vmem:[#allocation2 + $0xe0] sm:$0x1] %vm957_vm6, %v694_v60 }
 0x118   :  { %843 = vrot.lane.b32.xlu1 %v6469_v24, %s3980_s3  ;;  %v792_v4 = vpop.permute.xlu1 %791  ;;  %v790_v5 = vpop.permute.xlu0 %789  ;;  %v1270_v11 = vld [vmem:[#allocation2 + $0x3d0] sm:$0xff]  ;;  %v1189_v24 = vld [vmem:[#allocation2 + $0x148] sm:$0xff] }
 0x119   :  { %749 = vrot.lane.b32.xlu0 %v4939_v38, %s3980_s3  ;;  %v1352_v38 = vpack.c.bf16 %v1174_v1, %v1172_v0  ;;  %1019 = vst.msk [vmem:[#allocation2 + $0x3f0] sm:$0xfe] %vm953_vm4, %v792_v4  ;;  %v1291_v4 = vld [vmem:[#allocation2 + $0x478] sm:$0xff] }
 0x11a   :  { %1787 = vmatmul.mubr.bf16.gmra.mrb[12].mxu0 %v1346_v7  ;;  %v1268_v7 = vld [vmem:[#allocation2 + $0x3c0] sm:$0xff]  ;;  %1018 = vst.msk [vmem:[#allocation2 + $0x3e0] sm:$0x1] %vm957_vm6, %v790_v5 }
 0x11b   :  { %2027 = vmatmul.mubr.bf16.gmra.mrb[12].mxu1 %v1394_v29  ;;  %3702 = vmatprep.mubr.msk.bf16.mxu0 %vm65_vm0, %v1349_v23  ;;  %v1400_v21 = vpack.c.bf16 %v1270_v11, %v1268_v7 }
 0x11c   :  { %3726 = vmatprep.mubr.msk.bf16.mxu1 %vm65_vm0, %v1397_v28  ;;  %751 = vrot.lane.b32.xlu1 %v4963_v49, %s3980_s3  ;;  %v1273_v49 = vld [vmem:[#allocation2 + $0x3e8] sm:$0xff]  ;;  %v698_v23 = vpop.permute.xlu0 %697  ;;  %v1178_v29 = vld [vmem:[#allocation2 + $0xf0] sm:$0xff] }
 0x11d   :  { %845 = vrot.lane.b32.xlu0 %v4973_v34, %s3980_s3  ;;  %v1403_v14 = vpack.c.bf16 %v1275_v3, %v1273_v49  ;;  %v700_v34 = vpop.permute.xlu1 %699  ;;  %v1176_v28 = vld [vmem:[#allocation2 + $0xe0] sm:$0xff]  ;;  %972 = vst.msk [vmem:[#allocation2 + $0x100] sm:$0xff] %vm955_vm5, %v698_v23  ;;  %v1193_v49 = vld [vmem:[#allocation2 + $0x168] sm:$0xff]  ;;  %v1195_v3 = vld [vmem:[#allocation2 + $0x178] sm:$0xff] }
 0x11e   :  { %973 = vst.msk [vmem:[#allocation2 + $0x110] sm:$0x1] %vm957_vm6, %v700_v34  ;;  %v1354_v48 = vpack.c.bf16 %v1178_v29, %v1176_v28 }
 0x120   :  { %847 = vrot.lane.b32.xlu1 %v4988_v12, %s3980_s3  ;;  %v6471_v12 = vld [vmem:[#allocation21_spill] sm:$0xff]  ;;  %v794_v56 = vpop.permute.xlu0 %793  ;;  %v1274_v63 = vld [vmem:[#allocation2 + $0x3f0] sm:$0xff] }
 0x121   :  { %753 = vrot.lane.b32.xlu0 %v6471_v12, %s3980_s3  ;;  %v796_v54 = vpop.permute.xlu1 %795  ;;  %v1272_v19 = vld [vmem:[#allocation2 + $0x3e0] sm:$0xff]  ;;  %1020 = vst.msk [vmem:[#allocation2 + $0x400] sm:$0xff] %vm955_vm5, %v794_v56 }
 0x122   :  { %1797 = vmatmul.mubr.bf16.gmra.mrb[16].mxu0 %v1348_v10  ;;  %1021 = vst.msk [vmem:[#allocation2 + $0x410] sm:$0x1] %vm957_vm6, %v796_v54  ;;  %v1402_v15 = vpack.c.bf16 %v1274_v63, %v1272_v19 }
 0x123   :  { %2037 = vmatmul.mubr.bf16.gmra.mrb[16].mxu1 %v1396_v17  ;;  %3703 = vmatprep.mubr.msk.bf16.mxu0 %vm65_vm0, %v1351_v41  ;;  %v1185_v41 = vld [vmem:[#allocation2 + $0x128] sm:$0xff]  ;;  %v1283_v17 = vld [vmem:[#allocation2 + $0x438] sm:$0xff] }
 0x124   :  { %3727 = vmatprep.mubr.msk.bf16.mxu1 %vm65_vm0, %v1399_v42  ;;  %755 = vrot.lane.b32.xlu1 %v5002_v33, %s3980_s3  ;;  %v1277_v33 = vld [vmem:[#allocation2 + $0x408] sm:$0xff]  ;;  %v702_v20 = vpop.permute.xlu0 %701  ;;  %v1180_v37 = vld [vmem:[#allocation2 + $0x100] sm:$0xff]  ;;  %v1187_v42 = vld [vmem:[#allocation2 + $0x138] sm:$0xff] }
 0x125   :  { %849 = vrot.lane.b32.xlu0 %v6472_v30, %s3980_s3  ;;  %v1405_v10 = vpack.c.bf16 %v1279_v43, %v1277_v33  ;;  %v1182_v27 = vld [vmem:[#allocation2 + $0x110] sm:$0xff]  ;;  %974 = vst.msk [vmem:[#allocation2 + $0x120] sm:$0xfe] %vm953_vm4, %v702_v20  ;;  %v1359_v40 = vpack.c.bf16 %v1187_v42, %v1185_v41  ;;  %v1199_v33 = vld [vmem:[#allocation2 + $0x198] sm:$0xff]  ;;  %v1293_v43 = vld [vmem:[#allocation2 + $0x488] sm:$0xff] }
 0x126   :  { %v1295_v30 = vld [vmem:[#allocation2 + $0x498] sm:$0xff]  ;;  %v1201_v41 = vld [vmem:[#allocation2 + $0x1a8] sm:$0xff] }
 0x127   :  { %v1203_v42 = vld [vmem:[#allocation2 + $0x1b8] sm:$0xff] }
 0x128   :  { %851 = vrot.lane.b32.xlu1 %v5010_v22, %s3980_s3  ;;  %v704_v22 = vpop.permute.xlu1 %703  ;;  %v798_v62 = vpop.permute.xlu0 %797  ;;  %v1276_v25 = vld [vmem:[#allocation2 + $0x400] sm:$0xff] }
 0x129   :  { %757 = vrot.lane.b32.xlu0 %v5025_v58, %s3980_s3  ;;  %975 = vst.msk [vmem:[#allocation2 + $0x130] sm:$0xff] %vm955_vm5, %v704_v22  ;;  %v1356_v58 = vpack.c.bf16 %v1182_v27, %v1180_v37  ;;  %v1278_v6 = vld [vmem:[#allocation2 + $0x410] sm:$0xff] }
 0x12a   :  { %1807 = vmatmul.mubr.bf16.gmra.mrb[20].mxu0 %v1350_v44  ;;  %1022 = vst.msk [vmem:[#allocation2 + $0x420] sm:$0xfe] %vm953_vm4, %v798_v62  ;;  %v1404_v55 = vpack.c.bf16 %v1278_v6, %v1276_v25  ;;  %v1285_v44 = vld [vmem:[#allocation2 + $0x448] sm:$0xff] }
 0x12b   :  { %2047 = vmatmul.mubr.bf16.gmra.mrb[20].mxu1 %v1398_v9  ;;  %3704 = vmatprep.mubr.msk.bf16.mxu0 %vm65_vm0, %v1353_v53  ;;  %v1361_v9 = vpack.c.bf16 %v1191_v51, %v1189_v24  ;;  %v1409_v59 = vpack.c.bf16 %v1287_v46, %v1285_v44  ;;  %v1205_v24 = vld [vmem:[#allocation2 + $0x1c8] sm:$0xff]  ;;  %v1207_v51 = vld [vmem:[#allocation2 + $0x1d8] sm:$0xff] }
 0x12c   :  { %3728 = vmatprep.mubr.msk.bf16.mxu1 %vm65_vm0, %v1401_v32  ;;  %759 = vrot.lane.b32.xlu1 %v5018_v57, %s3980_s3  ;;  %v1281_v57 = vld [vmem:[#allocation2 + $0x428] sm:$0xff]  ;;  %v800_v8 = vpop.permute.xlu1 %799  ;;  %v706_v39 = vpop.permute.xlu0 %705  ;;  %v1303_v46 = vld [vmem:[#allocation2 + $0x4d8] sm:$0xff] }
 0x12d   :  { %853 = vrot.lane.b32.xlu0 %v5040_v50, %s3980_s3  ;;  %v1407_v26 = vpack.c.bf16 %v1283_v17, %v1281_v57  ;;  %1023 = vst.msk [vmem:[#allocation2 + $0x430] sm:$0xff] %vm955_vm5, %v800_v8  ;;  %v1297_v57 = vld [vmem:[#allocation2 + $0x4a8] sm:$0xff]  ;;  %v1299_v17 = vld [vmem:[#allocation2 + $0x4b8] sm:$0xff] }
 0x12e   :  { %976 = vst.msk [vmem:[#allocation2 + $0x140] sm:$0x1] %vm957_vm6, %v706_v39  ;;  %v1301_v44 = vld [vmem:[#allocation2 + $0x4c8] sm:$0xff] }
 0x130   :  { %855 = vrot.lane.b32.xlu1 %v5033_v61, %s3980_s3  ;;  %v708_v18 = vpop.permute.xlu1 %707  ;;  %v1184_v61 = vld [vmem:[#allocation2 + $0x120] sm:$0xff]  ;;  %v1186_v50 = vld [vmem:[#allocation2 + $0x130] sm:$0xff]  ;;  %v802_v52 = vpop.permute.xlu0 %801 }
 0x131   :  { %977 = vst.msk [vmem:[#allocation2 + $0x150] sm:$0xfe] %vm953_vm4, %v708_v18  ;;  %v1358_v45 = vpack.c.bf16 %v1186_v50, %v1184_v61  ;;  %v1280_v53 = vld [vmem:[#allocation2 + $0x420] sm:$0xff] }
 0x132   :  { %1817 = vmatmul.mubr.bf16.gmra.mrb[24].mxu0 %v1352_v38  ;;  %1024 = vst.msk [vmem:[#allocation2 + $0x440] sm:$0x1] %vm957_vm6, %v802_v52  ;;  %v1289_v38 = vld [vmem:[#allocation2 + $0x468] sm:$0xff] }
 0x133   :  { %2057 = vmatmul.mubr.bf16.gmra.mrb[24].mxu1 %v1400_v21  ;;  %3705 = vmatprep.mubr.msk.bf16.mxu0 %vm65_vm0, %v1355_v13  ;;  %v1363_v21 = vpack.c.bf16 %v1195_v3, %v1193_v49  ;;  %v1411_v12 = vpack.c.bf16 %v1291_v4, %v1289_v38  ;;  %v1209_v49 = vld [vmem:[#allocation2 + $0x1e8] sm:$0xff]  ;;  %v1211_v3 = vld [vmem:[#allocation2 + $0x1f8] sm:$0xff] }
 0x134   :  { %3729 = vmatprep.mubr.msk.bf16.mxu1 %vm65_vm0, %v1403_v14  ;;  %v804_v47 = vpop.permute.xlu1 %803  ;;  %v1282_v32 = vld [vmem:[#allocation2 + $0x430] sm:$0xff]  ;;  %v710_v1 = vpop.permute.xlu0 %709  ;;  %v1305_v38 = vld [vmem:[#allocation2 + $0x4e8] sm:$0xff]  ;;  %v1307_v4 = vld [vmem:[#allocation2 + $0x4f8] sm:$0xff] }
 0x135   :  { %1025 = vst.msk [vmem:[#allocation2 + $0x450] sm:$0xfe] %vm953_vm4, %v804_v47  ;;  %v1406_v60 = vpack.c.bf16 %v1282_v32, %v1280_v53  ;;  %v1188_v2 = vld [vmem:[#allocation2 + $0x140] sm:$0xff] }
 0x136   :  { %978 = vst.msk [vmem:[#allocation2 + $0x160] sm:$0xff] %vm955_vm5, %v710_v1 }
 0x138   :  { %v712_v0 = vpop.permute.xlu1 %711  ;;  %v1190_v16 = vld [vmem:[#allocation2 + $0x150] sm:$0xff]  ;;  %v806_v11 = vpop.permute.xlu0 %805 }
 0x139   :  { %979 = vst.msk [vmem:[#allocation2 + $0x170] sm:$0x1] %vm957_vm6, %v712_v0  ;;  %v1360_v5 = vpack.c.bf16 %v1190_v16, %v1188_v2  ;;  %v1284_v13 = vld [vmem:[#allocation2 + $0x440] sm:$0xff] }
 0x13a   :  { %1827 = vmatmul.mubr.bf16.gmra.mrb[28].mxu0 %v1354_v48  ;;  %1026 = vst.msk [vmem:[#allocation2 + $0x460] sm:$0xff] %vm955_vm5, %v806_v11 }
 0x13b   :  { %2067 = vmatmul.mubr.bf16.gmra.mrb[28].mxu1 %v1402_v15  ;;  %3706 = vmatprep.mubr.msk.bf16.mxu0 %vm65_vm0, %v1357_v31  ;;  %v1365_v31 = vpack.c.bf16 %v1199_v33, %v1197_v36  ;;  %v1213_v36 = vld [vmem:[#allocation2 + $0x208] sm:$0xff]  ;;  %v1215_v33 = vld [vmem:[#allocation2 + $0x218] sm:$0xff] }
 0x13c   :  { %3730 = vmatprep.mubr.msk.bf16.mxu1 %vm65_vm0, %v1405_v10  ;;  %v808_v7 = vpop.permute.xlu1 %807  ;;  %v1286_v14 = vld [vmem:[#allocation2 + $0x450] sm:$0xff]  ;;  %v714_v28 = vpop.permute.xlu0 %713  ;;  %v1413_v10 = vpack.c.bf16 %v1295_v30, %v1293_v43  ;;  %v1309_v43 = vld [vmem:[#allocation2 + $0x508] sm:$0xff]  ;;  %v1311_v30 = vld [vmem:[#allocation2 + $0x518] sm:$0xff] }
 0x13d   :  { %1027 = vst.msk [vmem:[#allocation2 + $0x470] sm:$0x1] %vm957_vm6, %v808_v7  ;;  %v1408_v34 = vpack.c.bf16 %v1286_v14, %v1284_v13  ;;  %v1192_v29 = vld [vmem:[#allocation2 + $0x160] sm:$0xff] }
 0x13e   :  { %980 = vst.msk [vmem:[#allocation2 + $0x180] sm:$0xfe] %vm953_vm4, %v714_v28 }
 0x140   :  { %v716_v23 = vpop.permute.xlu1 %715  ;;  %v1194_v35 = vld [vmem:[#allocation2 + $0x170] sm:$0xff]  ;;  %v810_v56 = vpop.permute.xlu0 %809 }
 0x141   :  { %981 = vst.msk [vmem:[#allocation2 + $0x190] sm:$0xff] %vm955_vm5, %v716_v23  ;;  %v1362_v48 = vpack.c.bf16 %v1194_v35, %v1192_v29  ;;  %v1288_v19 = vld [vmem:[#allocation2 + $0x460] sm:$0xff] }
 0x142   :  { %1837 = vmatmul.mubr.bf16.gmra.mrb[32].mxu0 %v1356_v58  ;;  %1028 = vst.msk [vmem:[#allocation2 + $0x480] sm:$0xfe] %vm953_vm4, %v810_v56 }
 0x143   :  { %2077 = vmatmul.mubr.bf16.gmra.mrb[32].mxu1 %v1404_v55  ;;  %3707 = vmatprep.mubr.msk.bf16.mxu0 %vm65_vm0, %v1359_v40  ;;  %v1367_v40 = vpack.c.bf16 %v1203_v42, %v1201_v41  ;;  %v1217_v41 = vld [vmem:[#allocation2 + $0x228] sm:$0xff]  ;;  %v1219_v42 = vld [vmem:[#allocation2 + $0x238] sm:$0xff] }
 0x144   :  { %3731 = vmatprep.mubr.msk.bf16.mxu1 %vm65_vm0, %v1407_v26  ;;  %v812_v54 = vpop.permute.xlu1 %811  ;;  %v1290_v63 = vld [vmem:[#allocation2 + $0x470] sm:$0xff]  ;;  %v718_v20 = vpop.permute.xlu0 %717  ;;  %v1415_v26 = vpack.c.bf16 %v1299_v17, %v1297_v57  ;;  %v1313_v57 = vld [vmem:[#allocation2 + $0x528] sm:$0xff]  ;;  %v1315_v17 = vld [vmem:[#allocation2 + $0x538] sm:$0xff] }
 0x145   :  { %1029 = vst.msk [vmem:[#allocation2 + $0x490] sm:$0xff] %vm955_vm5, %v812_v54  ;;  %v1410_v15 = vpack.c.bf16 %v1290_v63, %v1288_v19  ;;  %v1196_v37 = vld [vmem:[#allocation2 + $0x180] sm:$0xff] }
 0x146   :  { %982 = vst.msk [vmem:[#allocation2 + $0x1a0] sm:$0x1] %vm957_vm6, %v718_v20 }
 0x148   :  { %v720_v22 = vpop.permute.xlu1 %719  ;;  %v1198_v27 = vld [vmem:[#allocation2 + $0x190] sm:$0xff]  ;;  %v814_v62 = vpop.permute.xlu0 %813 }
 0x149   :  { %983 = vst.msk [vmem:[#allocation2 + $0x1b0] sm:$0xfe] %vm953_vm4, %v720_v22  ;;  %v1364_v58 = vpack.c.bf16 %v1198_v27, %v1196_v37  ;;  %v1292_v25 = vld [vmem:[#allocation2 + $0x480] sm:$0xff] }
 0x14a   :  { %1847 = vmatmul.mubr.bf16.gmra.mrb[36].mxu0 %v1358_v45  ;;  %1030 = vst.msk [vmem:[#allocation2 + $0x4a0] sm:$0x1] %vm957_vm6, %v814_v62 }
 0x14b   :  { %2087 = vmatmul.mubr.bf16.gmra.mrb[36].mxu1 %v1406_v60  ;;  %3708 = vmatprep.mubr.msk.bf16.mxu0 %vm65_vm0, %v1361_v9  ;;  %v1369_v9 = vpack.c.bf16 %v1207_v51, %v1205_v24  ;;  %v1221_v24 = vld [vmem:[#allocation2 + $0x248] sm:$0xff]  ;;  %v1223_v51 = vld [vmem:[#allocation2 + $0x258] sm:$0xff] }
 0x14c   :  { %3732 = vmatprep.mubr.msk.bf16.mxu1 %vm65_vm0, %v1409_v59  ;;  %v816_v8 = vpop.permute.xlu1 %815  ;;  %v1294_v6 = vld [vmem:[#allocation2 + $0x490] sm:$0xff]  ;;  %v722_v39 = vpop.permute.xlu0 %721  ;;  %v1417_v59 = vpack.c.bf16 %v1303_v46, %v1301_v44  ;;  %v1317_v44 = vld [vmem:[#allocation2 + $0x548] sm:$0xff]  ;;  %v1319_v46 = vld [vmem:[#allocation2 + $0x558] sm:$0xff] }
 0x14d   :  { %1031 = vst.msk [vmem:[#allocation2 + $0x4b0] sm:$0xfe] %vm953_vm4, %v816_v8  ;;  %v1412_v55 = vpack.c.bf16 %v1294_v6, %v1292_v25  ;;  %v1200_v61 = vld [vmem:[#allocation2 + $0x1a0] sm:$0xff] }
 0x14e   :  { %984 = vst.msk [vmem:[#allocation2 + $0x1c0] sm:$0xff] %vm955_vm5, %v722_v39 }
 0x150   :  { %v724_v18 = vpop.permute.xlu1 %723  ;;  %v1202_v50 = vld [vmem:[#allocation2 + $0x1b0] sm:$0xff]  ;;  %v818_v52 = vpop.permute.xlu0 %817 }
 0x151   :  { %985 = vst.msk [vmem:[#allocation2 + $0x1d0] sm:$0x1] %vm957_vm6, %v724_v18  ;;  %v1366_v45 = vpack.c.bf16 %v1202_v50, %v1200_v61  ;;  %v1296_v53 = vld [vmem:[#allocation2 + $0x4a0] sm:$0xff] }
 0x152   :  { %1857 = vmatmul.mubr.bf16.gmra.mrb[40].mxu0 %v1360_v5  ;;  %1032 = vst.msk [vmem:[#allocation2 + $0x4c0] sm:$0xff] %vm955_vm5, %v818_v52 }
 0x153   :  { %2097 = vmatmul.mubr.bf16.gmra.mrb[40].mxu1 %v1408_v34  ;;  %3709 = vmatprep.mubr.msk.bf16.mxu0 %vm65_vm0, %v1363_v21  ;;  %v1371_v21 = vpack.c.bf16 %v1211_v3, %v1209_v49  ;;  %v1225_v49 = vld [vmem:[#allocation2 + $0x268] sm:$0xff]  ;;  %v1227_v3 = vld [vmem:[#allocation2 + $0x278] sm:$0xff] }
 0x154   :  { %3733 = vmatprep.mubr.msk.bf16.mxu1 %vm65_vm0, %v1411_v12  ;;  %v820_v47 = vpop.permute.xlu1 %819  ;;  %v1298_v32 = vld [vmem:[#allocation2 + $0x4b0] sm:$0xff]  ;;  %v726_v1 = vpop.permute.xlu0 %725  ;;  %v1419_v12 = vpack.c.bf16 %v1307_v4, %v1305_v38  ;;  %v1321_v38 = vld [vmem:[#allocation2 + $0x568] sm:$0xff]  ;;  %v1323_v4 = vld [vmem:[#allocation2 + $0x578] sm:$0xff] }
 0x155   :  { %1033 = vst.msk [vmem:[#allocation2 + $0x4d0] sm:$0x1] %vm957_vm6, %v820_v47  ;;  %v1414_v60 = vpack.c.bf16 %v1298_v32, %v1296_v53  ;;  %v1204_v2 = vld [vmem:[#allocation2 + $0x1c0] sm:$0xff] }
 0x156   :  { %986 = vst.msk [vmem:[#allocation2 + $0x1e0] sm:$0xfe] %vm953_vm4, %v726_v1 }
 0x158   :  { %v728_v0 = vpop.permute.xlu1 %727  ;;  %v1206_v16 = vld [vmem:[#allocation2 + $0x1d0] sm:$0xff]  ;;  %v822_v11 = vpop.permute.xlu0 %821 }
 0x159   :  { %987 = vst.msk [vmem:[#allocation2 + $0x1f0] sm:$0xff] %vm955_vm5, %v728_v0  ;;  %v1368_v5 = vpack.c.bf16 %v1206_v16, %v1204_v2  ;;  %v1300_v13 = vld [vmem:[#allocation2 + $0x4c0] sm:$0xff] }
 0x15a   :  { %1867 = vmatmul.mubr.bf16.gmra.mrb[44].mxu0 %v1362_v48  ;;  %1034 = vst.msk [vmem:[#allocation2 + $0x4e0] sm:$0xfe] %vm953_vm4, %v822_v11 }
 0x15b   :  { %2107 = vmatmul.mubr.bf16.gmra.mrb[44].mxu1 %v1410_v15  ;;  %3710 = vmatprep.mubr.msk.bf16.mxu0 %vm65_vm0, %v1365_v31  ;;  %v1373_v31 = vpack.c.bf16 %v1215_v33, %v1213_v36  ;;  %v1229_v36 = vld [vmem:[#allocation2 + $0x288] sm:$0xff]  ;;  %v1231_v33 = vld [vmem:[#allocation2 + $0x298] sm:$0xff] }
 0x15c   :  { %3734 = vmatprep.mubr.msk.bf16.mxu1 %vm65_vm0, %v1413_v10  ;;  %v824_v7 = vpop.permute.xlu1 %823  ;;  %v1302_v14 = vld [vmem:[#allocation2 + $0x4d0] sm:$0xff]  ;;  %v730_v28 = vpop.permute.xlu0 %729  ;;  %v1421_v10 = vpack.c.bf16 %v1311_v30, %v1309_v43  ;;  %v1325_v43 = vld [vmem:[#allocation2 + $0x588] sm:$0xff]  ;;  %v1327_v30 = vld [vmem:[#allocation2 + $0x598] sm:$0xff] }
 0x15d   :  { %1035 = vst.msk [vmem:[#allocation2 + $0x4f0] sm:$0xff] %vm955_vm5, %v824_v7  ;;  %v1416_v34 = vpack.c.bf16 %v1302_v14, %v1300_v13  ;;  %v1208_v29 = vld [vmem:[#allocation2 + $0x1e0] sm:$0xff] }
 0x15e   :  { %988 = vst.msk [vmem:[#allocation2 + $0x200] sm:$0x1] %vm957_vm6, %v730_v28 }
 0x160   :  { %v732_v23 = vpop.permute.xlu1 %731  ;;  %v1210_v35 = vld [vmem:[#allocation2 + $0x1f0] sm:$0xff]  ;;  %v826_v56 = vpop.permute.xlu0 %825 }
 0x161   :  { %989 = vst.msk [vmem:[#allocation2 + $0x210] sm:$0xfe] %vm953_vm4, %v732_v23  ;;  %v1370_v48 = vpack.c.bf16 %v1210_v35, %v1208_v29  ;;  %v1304_v19 = vld [vmem:[#allocation2 + $0x4e0] sm:$0xff] }
 0x162   :  { %1877 = vmatmul.mubr.bf16.gmra.mrb[48].mxu0 %v1364_v58  ;;  %1036 = vst.msk [vmem:[#allocation2 + $0x500] sm:$0x1] %vm957_vm6, %v826_v56 }
 0x163   :  { %2117 = vmatmul.mubr.bf16.gmra.mrb[48].mxu1 %v1412_v55  ;;  %3711 = vmatprep.mubr.msk.bf16.mxu0 %vm65_vm0, %v1367_v40  ;;  %v1375_v40 = vpack.c.bf16 %v1219_v42, %v1217_v41  ;;  %v1233_v41 = vld [vmem:[#allocation2 + $0x2a8] sm:$0xff]  ;;  %v1235_v42 = vld [vmem:[#allocation2 + $0x2b8] sm:$0xff] }
 0x164   :  { %3735 = vmatprep.mubr.msk.bf16.mxu1 %vm65_vm0, %v1415_v26  ;;  %v828_v54 = vpop.permute.xlu1 %827  ;;  %v1306_v63 = vld [vmem:[#allocation2 + $0x4f0] sm:$0xff]  ;;  %v734_v20 = vpop.permute.xlu0 %733  ;;  %v1423_v26 = vpack.c.bf16 %v1315_v17, %v1313_v57  ;;  %v1329_v57 = vld [vmem:[#allocation2 + $0x5a8] sm:$0xff]  ;;  %v1331_v17 = vld [vmem:[#allocation2 + $0x5b8] sm:$0xff] }
 0x165   :  { %1037 = vst.msk [vmem:[#allocation2 + $0x510] sm:$0xfe] %vm953_vm4, %v828_v54  ;;  %v1418_v15 = vpack.c.bf16 %v1306_v63, %v1304_v19  ;;  %v1212_v37 = vld [vmem:[#allocation2 + $0x200] sm:$0xff] }
 0x166   :  { %990 = vst.msk [vmem:[#allocation2 + $0x220] sm:$0xff] %vm955_vm5, %v734_v20 }
 0x168   :  { %v736_v22 = vpop.permute.xlu1 %735  ;;  %v1214_v27 = vld [vmem:[#allocation2 + $0x210] sm:$0xff]  ;;  %v830_v62 = vpop.permute.xlu0 %829 }
 0x169   :  { %991 = vst.msk [vmem:[#allocation2 + $0x230] sm:$0x1] %vm957_vm6, %v736_v22  ;;  %v1372_v58 = vpack.c.bf16 %v1214_v27, %v1212_v37  ;;  %v1308_v25 = vld [vmem:[#allocation2 + $0x500] sm:$0xff] }
 0x16a   :  { %1887 = vmatmul.mubr.bf16.gmra.mrb[52].mxu0 %v1366_v45  ;;  %1038 = vst.msk [vmem:[#allocation2 + $0x520] sm:$0xff] %vm955_vm5, %v830_v62 }
 0x16b   :  { %2127 = vmatmul.mubr.bf16.gmra.mrb[52].mxu1 %v1414_v60  ;;  %3712 = vmatprep.mubr.msk.bf16.mxu0 %vm65_vm0, %v1369_v9  ;;  %v1377_v9 = vpack.c.bf16 %v1223_v51, %v1221_v24  ;;  %v1237_v24 = vld [vmem:[#allocation2 + $0x2c8] sm:$0xff]  ;;  %v1239_v51 = vld [vmem:[#allocation2 + $0x2d8] sm:$0xff] }
 0x16c   :  { %3736 = vmatprep.mubr.msk.bf16.mxu1 %vm65_vm0, %v1417_v59  ;;  %v832_v8 = vpop.permute.xlu1 %831  ;;  %v1310_v6 = vld [vmem:[#allocation2 + $0x510] sm:$0xff]  ;;  %v738_v39 = vpop.permute.xlu0 %737  ;;  %v1425_v59 = vpack.c.bf16 %v1319_v46, %v1317_v44  ;;  %v1333_v44 = vld [vmem:[#allocation2 + $0x5c8] sm:$0xff]  ;;  %v1335_v46 = vld [vmem:[#allocation2 + $0x5d8] sm:$0xff] }
 0x16d   :  { %1039 = vst.msk [vmem:[#allocation2 + $0x530] sm:$0x1] %vm957_vm6, %v832_v8  ;;  %v1420_v55 = vpack.c.bf16 %v1310_v6, %v1308_v25  ;;  %v1216_v61 = vld [vmem:[#allocation2 + $0x220] sm:$0xff] }
 0x16e   :  { %992 = vst.msk [vmem:[#allocation2 + $0x240] sm:$0xfe] %vm953_vm4, %v738_v39 }
 0x170   :  { %v740_v18 = vpop.permute.xlu1 %739  ;;  %v1218_v50 = vld [vmem:[#allocation2 + $0x230] sm:$0xff]  ;;  %v834_v52 = vpop.permute.xlu0 %833 }
 0x171   :  { %993 = vst.msk [vmem:[#allocation2 + $0x250] sm:$0xff] %vm955_vm5, %v740_v18  ;;  %v1374_v45 = vpack.c.bf16 %v1218_v50, %v1216_v61  ;;  %v1312_v53 = vld [vmem:[#allocation2 + $0x520] sm:$0xff] }
 0x172   :  { %1897 = vmatmul.mubr.bf16.gmra.mrb[56].mxu0 %v1368_v5  ;;  %1040 = vst.msk [vmem:[#allocation2 + $0x540] sm:$0xfe] %vm953_vm4, %v834_v52 }
 0x173   :  { %2137 = vmatmul.mubr.bf16.gmra.mrb[56].mxu1 %v1416_v34  ;;  %3713 = vmatprep.mubr.msk.bf16.mxu0 %vm65_vm0, %v1371_v21  ;;  %v1379_v21 = vpack.c.bf16 %v1227_v3, %v1225_v49  ;;  %v1241_v49 = vld [vmem:[#allocation2 + $0x2e8] sm:$0xff]  ;;  %v1243_v3 = vld [vmem:[#allocation2 + $0x2f8] sm:$0xff] }
 0x174   :  { %3737 = vmatprep.mubr.msk.bf16.mxu1 %vm65_vm0, %v1419_v12  ;;  %v1314_v32 = vld [vmem:[#allocation2 + $0x530] sm:$0xff]  ;;  %v742_v1 = vpop.permute.xlu0 %741  ;;  %v1427_v12 = vpack.c.bf16 %v1323_v4, %v1321_v38  ;;  %v1337_v38 = vld [vmem:[#allocation2 + $0x5e8] sm:$0xff]  ;;  %v1339_v4 = vld [vmem:[#allocation2 + $0x5f8] sm:$0xff] }
 0x175   :  { %v1422_v60 = vpack.c.bf16 %v1314_v32, %v1312_v53  ;;  %v1220_v2 = vld [vmem:[#allocation2 + $0x240] sm:$0xff]  ;;  %994 = vst.msk [vmem:[#allocation2 + $0x260] sm:$0x1] %vm957_vm6, %v742_v1 }
 0x178   :  { %v1222_v16 = vld [vmem:[#allocation2 + $0x250] sm:$0xff] }
 0x179   :  { %v836_v47 = vpop.permute.xlu1 %835  ;;  %v1376_v5 = vpack.c.bf16 %v1222_v16, %v1220_v2  ;;  %v1316_v13 = vld [vmem:[#allocation2 + $0x540] sm:$0xff] }
 0x17a   :  { %1907 = vmatmul.mubr.bf16.gmra.mrb[60].mxu0 %v1370_v48  ;;  %1041 = vst.msk [vmem:[#allocation2 + $0x550] sm:$0xff] %vm955_vm5, %v836_v47 }
 0x17b   :  { %2147 = vmatmul.mubr.bf16.gmra.mrb[60].mxu1 %v1418_v15  ;;  %3714 = vmatprep.mubr.msk.bf16.mxu0 %vm65_vm0, %v1373_v31  ;;  %v1381_v31 = vpack.c.bf16 %v1231_v33, %v1229_v36 }
 0x17c   :  { %3738 = vmatprep.mubr.msk.bf16.mxu1 %vm65_vm0, %v1421_v10  ;;  %v1224_v29 = vld [vmem:[#allocation2 + $0x260] sm:$0xff]  ;;  %v1429_v10 = vpack.c.bf16 %v1327_v30, %v1325_v43 }
 0x17e   :  { %v744_v0 = vpop.permute.xlu1 %743 }
 0x17f   :  { %995 = vst.msk [vmem:[#allocation2 + $0x270] sm:$0xfe] %vm953_vm4, %v744_v0  ;;  %v838_v11 = vpop.permute.xlu0 %837 }
 0x180   :  { %1042 = vst.msk [vmem:[#allocation2 + $0x560] sm:$0x1] %vm957_vm6, %v838_v11 }
 0x181   :  { %v1318_v14 = vld [vmem:[#allocation2 + $0x550] sm:$0xff] }
 0x182   :  { %1917 = vmatmul.mubr.bf16.gmra.mrb[64].mxu0 %v1372_v58  ;;  %v840_v7 = vpop.permute.xlu1 %839  ;;  %v1424_v34 = vpack.c.bf16 %v1318_v14, %v1316_v13 }
 0x183   :  { %2157 = vmatmul.mubr.bf16.gmra.mrb[64].mxu1 %v1420_v55  ;;  %3715 = vmatprep.mubr.msk.bf16.mxu0 %vm65_vm0, %v1375_v40  ;;  %1043 = vst.msk [vmem:[#allocation2 + $0x570] sm:$0xfe] %vm953_vm4, %v840_v7  ;;  %v746_v28 = vpop.permute.xlu0 %745  ;;  %v1383_v40 = vpack.c.bf16 %v1235_v42, %v1233_v41 }
 0x184   :  { %3739 = vmatprep.mubr.msk.bf16.mxu1 %vm65_vm0, %v1423_v26  ;;  %996 = vst.msk [vmem:[#allocation2 + $0x280] sm:$0xff] %vm955_vm5, %v746_v28  ;;  %v1431_v26 = vpack.c.bf16 %v1331_v17, %v1329_v57 }
 0x186   :  { %v748_v23 = vpop.permute.xlu1 %747  ;;  %v1226_v35 = vld [vmem:[#allocation2 + $0x270] sm:$0xff] }
 0x187   :  { %997 = vst.msk [vmem:[#allocation2 + $0x290] sm:$0x1] %vm957_vm6, %v748_v23  ;;  %v1378_v48 = vpack.c.bf16 %v1226_v35, %v1224_v29  ;;  %v842_v56 = vpop.permute.xlu0 %841  ;;  %v1320_v19 = vld [vmem:[#allocation2 + $0x560] sm:$0xff] }
 0x188   :  { %1044 = vst.msk [vmem:[#allocation2 + $0x580] sm:$0xff] %vm955_vm5, %v842_v56 }
 0x18a   :  { %1927 = vmatmul.mubr.bf16.gmra.mrb[68].mxu0 %v1374_v45  ;;  %v844_v54 = vpop.permute.xlu1 %843  ;;  %v1322_v63 = vld [vmem:[#allocation2 + $0x570] sm:$0xff] }
 0x18b   :  { %2167 = vmatmul.mubr.bf16.gmra.mrb[68].mxu1 %v1422_v60  ;;  %3716 = vmatprep.mubr.msk.bf16.mxu0 %vm65_vm0, %v1377_v9  ;;  %1045 = vst.msk [vmem:[#allocation2 + $0x590] sm:$0x1] %vm957_vm6, %v844_v54  ;;  %v1426_v15 = vpack.c.bf16 %v1322_v63, %v1320_v19  ;;  %v750_v20 = vpop.permute.xlu0 %749  ;;  %v1228_v37 = vld [vmem:[#allocation2 + $0x280] sm:$0xff]  ;;  %v1385_v9 = vpack.c.bf16 %v1239_v51, %v1237_v24 }
 0x18c   :  { %3740 = vmatprep.mubr.msk.bf16.mxu1 %vm65_vm0, %v1425_v59  ;;  %998 = vst.msk [vmem:[#allocation2 + $0x2a0] sm:$0xfe] %vm953_vm4, %v750_v20  ;;  %v1433_v59 = vpack.c.bf16 %v1335_v46, %v1333_v44 }
 0x18e   :  { %v752_v22 = vpop.permute.xlu1 %751  ;;  %v1230_v27 = vld [vmem:[#allocation2 + $0x290] sm:$0xff] }
 0x18f   :  { %999 = vst.msk [vmem:[#allocation2 + $0x2b0] sm:$0xff] %vm955_vm5, %v752_v22  ;;  %v1380_v58 = vpack.c.bf16 %v1230_v27, %v1228_v37  ;;  %v846_v62 = vpop.permute.xlu0 %845  ;;  %v1324_v25 = vld [vmem:[#allocation2 + $0x580] sm:$0xff] }
 0x190   :  { %1046 = vst.msk [vmem:[#allocation2 + $0x5a0] sm:$0xfe] %vm953_vm4, %v846_v62 }
 0x192   :  { %1937 = vmatmul.mubr.bf16.gmra.mrb[72].mxu0 %v1376_v5  ;;  %v848_v8 = vpop.permute.xlu1 %847  ;;  %v1326_v6 = vld [vmem:[#allocation2 + $0x590] sm:$0xff] }
 0x193   :  { %2177 = vmatmul.mubr.bf16.gmra.mrb[72].mxu1 %v1424_v34  ;;  %3717 = vmatprep.mubr.msk.bf16.mxu0 %vm65_vm0, %v1379_v21  ;;  %1047 = vst.msk [vmem:[#allocation2 + $0x5b0] sm:$0xff] %vm955_vm5, %v848_v8  ;;  %v1428_v55 = vpack.c.bf16 %v1326_v6, %v1324_v25  ;;  %v754_v39 = vpop.permute.xlu0 %753  ;;  %v1232_v61 = vld [vmem:[#allocation2 + $0x2a0] sm:$0xff]  ;;  %v1387_v21 = vpack.c.bf16 %v1243_v3, %v1241_v49 }
 0x194   :  { %3741 = vmatprep.mubr.msk.bf16.mxu1 %vm65_vm0, %v1427_v12  ;;  %1000 = vst.msk [vmem:[#allocation2 + $0x2c0] sm:$0x1] %vm957_vm6, %v754_v39  ;;  %v1435_v12 = vpack.c.bf16 %v1339_v4, %v1337_v38 }
 0x196   :  { %v756_v18 = vpop.permute.xlu1 %755  ;;  %v1234_v50 = vld [vmem:[#allocation2 + $0x2b0] sm:$0xff] }
 0x197   :  { %1001 = vst.msk [vmem:[#allocation2 + $0x2d0] sm:$0xfe] %vm953_vm4, %v756_v18  ;;  %v1382_v45 = vpack.c.bf16 %v1234_v50, %v1232_v61  ;;  %v850_v52 = vpop.permute.xlu0 %849  ;;  %v1328_v53 = vld [vmem:[#allocation2 + $0x5a0] sm:$0xff] }
 0x198   :  { %1048 = vst.msk [vmem:[#allocation2 + $0x5c0] sm:$0x1] %vm957_vm6, %v850_v52 }
 0x19a   :  { %1947 = vmatmul.mubr.bf16.gmra.mrb[76].mxu0 %v1378_v48  ;;  %v852_v47 = vpop.permute.xlu1 %851  ;;  %v1330_v32 = vld [vmem:[#allocation2 + $0x5b0] sm:$0xff] }
 0x19b   :  { %2187 = vmatmul.mubr.bf16.gmra.mrb[76].mxu1 %v1426_v15  ;;  %3718 = vmatprep.mubr.msk.bf16.mxu0 %vm65_vm0, %v1381_v31  ;;  %1049 = vst.msk [vmem:[#allocation2 + $0x5d0] sm:$0xfe] %vm953_vm4, %v852_v47  ;;  %v1430_v60 = vpack.c.bf16 %v1330_v32, %v1328_v53  ;;  %v758_v1 = vpop.permute.xlu0 %757  ;;  %v1236_v2 = vld [vmem:[#allocation2 + $0x2c0] sm:$0xff] }
 0x19c   :  { %3742 = vmatprep.mubr.msk.bf16.mxu1 %vm65_vm0, %v1429_v10  ;;  %1002 = vst.msk [vmem:[#allocation2 + $0x2e0] sm:$0xff] %vm955_vm5, %v758_v1 }
 0x19e   :  { %v760_v0 = vpop.permute.xlu1 %759  ;;  %v1238_v16 = vld [vmem:[#allocation2 + $0x2d0] sm:$0xff] }
 0x19f   :  { %1003 = vst.msk [vmem:[#allocation2 + $0x2f0] sm:$0x1] %vm957_vm6, %v760_v0  ;;  %v1384_v5 = vpack.c.bf16 %v1238_v16, %v1236_v2  ;;  %v854_v11 = vpop.permute.xlu0 %853  ;;  %v1332_v13 = vld [vmem:[#allocation2 + $0x5c0] sm:$0xff] }
 0x1a0   :  { %1050 = vst.msk [vmem:[#allocation2 + $0x5e0] sm:$0xff] %vm955_vm5, %v854_v11 }
 0x1a2   :  { %1957 = vmatmul.mubr.bf16.gmra.mrb[80].mxu0 %v1380_v58  ;;  %v856_v7 = vpop.permute.xlu1 %855  ;;  %v1334_v14 = vld [vmem:[#allocation2 + $0x5d0] sm:$0xff] }
 0x1a3   :  { %2197 = vmatmul.mubr.bf16.gmra.mrb[80].mxu1 %v1428_v55  ;;  %3719 = vmatprep.mubr.msk.bf16.mxu0 %vm65_vm0, %v1383_v40  ;;  %1051 = vst.msk [vmem:[#allocation2 + $0x5f0] sm:$0x1] %vm957_vm6, %v856_v7  ;;  %v1432_v34 = vpack.c.bf16 %v1334_v14, %v1332_v13  ;;  %v1240_v23 = vld [vmem:[#allocation2 + $0x2e0] sm:$0xff] }
 0x1a4   :  { %3743 = vmatprep.mubr.msk.bf16.mxu1 %vm65_vm0, %v1431_v26 }
 0x1a6   :  { %v1242_v28 = vld [vmem:[#allocation2 + $0x2f0] sm:$0xff] }
 0x1a7   :  { %v1386_v29 = vpack.c.bf16 %v1242_v28, %v1240_v23  ;;  %v1336_v35 = vld [vmem:[#allocation2 + $0x5e0] sm:$0xff] }
 0x1aa   :  { %1967 = vmatmul.mubr.bf16.gmra.mrb[84].mxu0 %v1382_v45  ;;  %v1338_v36 = vld [vmem:[#allocation2 + $0x5f0] sm:$0xff] }
 0x1ab   :  { %2207 = vmatmul.mubr.bf16.gmra.mrb[84].mxu1 %v1430_v60  ;;  %3720 = vmatprep.mubr.msk.bf16.mxu0 %vm65_vm0, %v1385_v9  ;;  %v1434_v33 = vpack.c.bf16 %v1338_v36, %v1336_v35 }
 0x1ac   :  { %3744 = vmatprep.mubr.msk.bf16.mxu1 %vm65_vm0, %v1433_v59 }
 0x1b2   :  { %1977 = vmatmul.mubr.bf16.gmra.mrb[88].mxu0 %v1384_v5 }
 0x1b3   :  { %2217 = vmatmul.mubr.bf16.gmra.mrb[88].mxu1 %v1432_v34  ;;  %3721 = vmatprep.mubr.msk.bf16.mxu0 %vm65_vm0, %v1387_v21 }
 0x1b4   :  { %3745 = vmatprep.mubr.msk.bf16.mxu1 %vm65_vm0, %v1435_v12 }
 0x1ba   :  { %1987 = vmatmul.mubr.bf16.gmra.mrb[92].mxu0 %v1386_v29 }
 0x1bb   :  { %2227 = vmatmul.mubr.bf16.gmra.mrb[92].mxu1 %v1434_v33 }
 0x1d5   :  { %v5318_v43 = vpop.f32.mrb[0].mxu0 }
 0x1d6   :  { %v5320_v30 = vpop.f32.mrb[0].mxu1  ;;  %v1760_v48 = vpop.f32.mrb[1].mxu0  ;;  %v2334_v63 = vrot.slane %v5318_v43, 1 }
 0x1d7   :  { %v2000_v54 = vpop.f32.mrb[1].mxu1  ;;  %v5322_v56 = vpop.f32.mrb[2].mxu0  ;;  %v2414_v31 = vrot.slane %v5320_v30, 1  ;;  %v2847_v37 = vrot.slane %v1760_v48, 2 }
 0x1d8   :  { %v5324_v19 = vpop.f32.mrb[2].mxu1  ;;  %v2335_v10 = vrot.slane %v5322_v56, 1  ;;  %v1764_v22 = vpop.f32.mrb[3].mxu0  ;;  %v2927_v27 = vrot.slane %v2000_v54, 2 }
 0x1d9   :  { %v2415_v15 = vrot.slane %v5324_v19, 1  ;;  %v2004_v20 = vpop.f32.mrb[3].mxu1  ;;  %v2848_v41 = vrot.slane %v1764_v22, 2 }
 0x1da   :  { %v2928_v42 = vrot.slane %v2004_v20, 2  ;;  %v2336_v57 = vsel %vm2333_vm7, %v2334_v63, %v2335_v10 }
 0x1db   :  { %v2416_v17 = vsel %vm2333_vm7, %v2414_v31, %v2415_v15  ;;  %2494 = vrot.lane.b32.xlu0 %v2336_v57, %s3980_s3  ;;  %v5334_v58 = vsel %vm2846_vm8, %v2847_v37, %v2848_v41 }
 0x1dc   :  { %v5337_v8 = vsel %vm2846_vm8, %v2927_v27, %v2928_v42 }
 0x1dd   :  { %v1768_v62 = vpop.f32.mrb[4].mxu0 }
 0x1de   :  { %v2008_v25 = vpop.f32.mrb[4].mxu1  ;;  %v2337_v6 = vrot.slane %v1768_v62, 1  ;;  %v1770_v26 = vpop.f32.mrb[5].mxu0 }
 0x1df   :  { %v2417_v40 = vrot.slane %v2008_v25, 1  ;;  %v2010_v55 = vpop.f32.mrb[5].mxu1  ;;  %v2850_v18 = vrot.slane %v1770_v26, 2  ;;  %2558 = vrot.lane.b32.xlu0 %v2416_v17, %s3980_s3  ;;  %v5340_v61 = vpop.f32.mrb[6].mxu0 }
 0x1e0   :  { %v2930_v39 = vrot.slane %v2010_v55, 2  ;;  %v5342_v50 = vpop.f32.mrb[6].mxu1  ;;  %v1774_v24 = vpop.f32.mrb[7].mxu0  ;;  %v2338_v44 = vsel %vm2333_vm7, %v2335_v10, %v2337_v6  ;;  %v2339_v32 = vrot.slane %v5340_v61, 1 }
 0x1e1   :  { %v2014_v51 = vpop.f32.mrb[7].mxu1  ;;  %v2418_v46 = vsel %vm2333_vm7, %v2415_v15, %v2417_v40  ;;  %2496 = vrot.lane.b32.xlu1 %v2338_v44, %s3980_s3  ;;  %v5348_v45 = vsel %vm2846_vm8, %v2848_v41, %v2850_v18  ;;  %v2419_v9 = vrot.slane %v5342_v50, 1  ;;  %v2852_v2 = vrot.slane %v1774_v24, 2 }
 0x1e2   :  { %v5351_v47 = vsel %vm2846_vm8, %v2928_v42, %v2930_v39  ;;  %v2932_v16 = vrot.slane %v2014_v51, 2 }
 0x1e5   :  { %2560 = vrot.lane.b32.xlu1 %v2418_v46, %s3980_s3  ;;  %v5356_v53 = vpop.f32.mrb[8].mxu0 }
 0x1e6   :  { %v5353_v52 = vpop.f32.mrb[8].mxu1  ;;  %v2340_v60 = vrot.slane %v5356_v53, 1  ;;  %v1780_v0 = vpop.f32.mrb[9].mxu0 }
 0x1e7   :  { %v2420_v59 = vrot.slane %v5353_v52, 1  ;;  %v2020_v1 = vpop.f32.mrb[9].mxu1  ;;  %v2853_v49 = vrot.slane %v1780_v0, 2  ;;  %v1782_v38 = vpop.f32.mrb[10].mxu0 }
 0x1e8   :  { %v2933_v3 = vrot.slane %v2020_v1, 2  ;;  %v2022_v4 = vpop.f32.mrb[10].mxu1  ;;  %v2342_v5 = vrot.slane %v1782_v38, 1  ;;  %v1784_v7 = vpop.f32.mrb[11].mxu0  ;;  %v2341_v14 = vsel %vm2333_vm7, %v2339_v32, %v2340_v60 }
 0x1e9   :  { %v2422_v11 = vrot.slane %v2022_v4, 1  ;;  %v2024_v13 = vpop.f32.mrb[11].mxu1  ;;  %v2421_v21 = vsel %vm2333_vm7, %v2419_v9, %v2420_v59  ;;  %v2855_v12 = vrot.slane %v1784_v7, 2  ;;  %2498 = vrot.lane.b32.xlu0 %v2341_v14, %s3980_s3  ;;  %v5366_v23 = vsel %vm2846_vm8, %v2852_v2, %v2853_v49 }
 0x1ea   :  { %v2935_v34 = vrot.slane %v2024_v13, 2  ;;  %v5369_v28 = vsel %vm2846_vm8, %v2932_v16, %v2933_v3  ;;  %v2343_v29 = vsel %vm2333_vm7, %v2340_v60, %v2342_v5 }
 0x1eb   :  { %v2423_v35 = vsel %vm2333_vm7, %v2420_v59, %v2422_v11  ;;  %2500 = vrot.lane.b32.xlu1 %v2343_v29, %s3980_s3  ;;  %v5375_v36 = vsel %vm2846_vm8, %v2853_v49, %v2855_v12 }
 0x1ec   :  { %v5378_v33 = vsel %vm2846_vm8, %v2933_v3, %v2935_v34 }
 0x1ed   :  { %2562 = vrot.lane.b32.xlu0 %v2421_v21, %s3980_s3  ;;  %v5381_v48 = vpop.f32.mrb[12].mxu0 }
 0x1ee   :  { %v5383_v54 = vpop.f32.mrb[12].mxu1  ;;  %v1790_v63 = vpop.f32.mrb[13].mxu0  ;;  %v2344_v37 = vrot.slane %v5381_v48, 1 }
 0x1ef   :  { %v2424_v31 = vrot.slane %v5383_v54, 1  ;;  %v2030_v10 = vpop.f32.mrb[13].mxu1  ;;  %2564 = vrot.lane.b32.xlu1 %v2423_v35, %s3980_s3  ;;  %v5387_v22 = vpop.f32.mrb[14].mxu0  ;;  %v2857_v17 = vrot.slane %v1790_v63, 2 }
 0x1f0   :  { %v2937_v15 = vrot.slane %v2030_v10, 2  ;;  %v5389_v20 = vpop.f32.mrb[14].mxu1  ;;  %v2345_v27 = vrot.slane %v5387_v22, 1  ;;  %v1794_v41 = vpop.f32.mrb[15].mxu0 }
 0x1f1   :  { %v2425_v42 = vrot.slane %v5389_v20, 1  ;;  %v2034_v57 = vpop.f32.mrb[15].mxu1  ;;  %v2858_v62 = vrot.slane %v1794_v41, 2 }
 0x1f2   :  { %v2938_v25 = vrot.slane %v2034_v57, 2  ;;  %v2346_v6 = vsel %vm2333_vm7, %v2344_v37, %v2345_v27 }
 0x1f3   :  { %v2426_v40 = vsel %vm2333_vm7, %v2424_v31, %v2425_v42  ;;  %2502 = vrot.lane.b32.xlu0 %v2346_v6, %s3980_s3  ;;  %v5398_v26 = vsel %vm2846_vm8, %v2857_v17, %v2858_v62 }
 0x1f4   :  { %v5401_v55 = vsel %vm2846_vm8, %v2937_v15, %v2938_v25 }
 0x1f5   :  { %v1798_v18 = vpop.f32.mrb[16].mxu0 }
 0x1f6   :  { %v2038_v39 = vpop.f32.mrb[16].mxu1  ;;  %v2347_v24 = vrot.slane %v1798_v18, 1  ;;  %v1800_v44 = vpop.f32.mrb[17].mxu0 }
 0x1f7   :  { %v2427_v51 = vrot.slane %v2038_v39, 1  ;;  %v2040_v46 = vpop.f32.mrb[17].mxu1  ;;  %v2860_v32 = vrot.slane %v1800_v44, 2  ;;  %2566 = vrot.lane.b32.xlu0 %v2426_v40, %s3980_s3  ;;  %v5404_v59 = vpop.f32.mrb[18].mxu0 }
 0x1f8   :  { %v2940_v9 = vrot.slane %v2040_v46, 2  ;;  %v5406_v60 = vpop.f32.mrb[18].mxu1  ;;  %v1804_v0 = vpop.f32.mrb[19].mxu0  ;;  %v2348_v2 = vsel %vm2333_vm7, %v2345_v27, %v2347_v24  ;;  %v2349_v5 = vrot.slane %v5404_v59, 1 }
 0x1f9   :  { %v2044_v1 = vpop.f32.mrb[19].mxu1  ;;  %v2428_v16 = vsel %vm2333_vm7, %v2425_v42, %v2427_v51  ;;  %2504 = vrot.lane.b32.xlu1 %v2348_v2, %s3980_s3  ;;  %v5412_v49 = vsel %vm2846_vm8, %v2858_v62, %v2860_v32  ;;  %v2429_v7 = vrot.slane %v5406_v60, 1  ;;  %v2862_v12 = vrot.slane %v1804_v0, 2 }
 0x1fa   :  { %v5415_v3 = vsel %vm2846_vm8, %v2938_v25, %v2940_v9  ;;  %v2942_v34 = vrot.slane %v2044_v1, 2 }
 0x1fd   :  { %2568 = vrot.lane.b32.xlu1 %v2428_v16, %s3980_s3  ;;  %v5420_v4 = vpop.f32.mrb[20].mxu0 }
 0x1fe   :  { %v5417_v38 = vpop.f32.mrb[20].mxu1  ;;  %v2350_v13 = vrot.slane %v5420_v4, 1  ;;  %v1810_v14 = vpop.f32.mrb[21].mxu0 }
 0x1ff   :  { %v2430_v11 = vrot.slane %v5417_v38, 1  ;;  %v2050_v21 = vpop.f32.mrb[21].mxu1  ;;  %v2863_v29 = vrot.slane %v1810_v14, 2  ;;  %v1812_v63 = vpop.f32.mrb[22].mxu0 }
 0x200   :  { %v2943_v35 = vrot.slane %v2050_v21, 2  ;;  %v2052_v31 = vpop.f32.mrb[22].mxu1  ;;  %v2352_v10 = vrot.slane %v1812_v63, 1  ;;  %v1814_v15 = vpop.f32.mrb[23].mxu0  ;;  %v2351_v41 = vsel %vm2333_vm7, %v2349_v5, %v2350_v13 }
 0x201   :  { %v2432_v37 = vrot.slane %v2052_v31, 1  ;;  %v2054_v27 = vpop.f32.mrb[23].mxu1  ;;  %v2431_v42 = vsel %vm2333_vm7, %v2429_v7, %v2430_v11  ;;  %v2865_v57 = vrot.slane %v1814_v15, 2  ;;  %2506 = vrot.lane.b32.xlu0 %v2351_v41, %s3980_s3  ;;  %v5430_v62 = vsel %vm2846_vm8, %v2862_v12, %v2863_v29 }
 0x202   :  { %v2945_v17 = vrot.slane %v2054_v27, 2  ;;  %v5433_v25 = vsel %vm2846_vm8, %v2942_v34, %v2943_v35  ;;  %v2353_v6 = vsel %vm2333_vm7, %v2350_v13, %v2352_v10 }
 0x203   :  { %v2433_v40 = vsel %vm2333_vm7, %v2430_v11, %v2432_v37  ;;  %2508 = vrot.lane.b32.xlu1 %v2353_v6, %s3980_s3  ;;  %v5439_v18 = vsel %vm2846_vm8, %v2863_v29, %v2865_v57 }
 0x204   :  { %v5442_v39 = vsel %vm2846_vm8, %v2943_v35, %v2945_v17 }
 0x205   :  { %2570 = vrot.lane.b32.xlu0 %v2431_v42, %s3980_s3  ;;  %v5445_v24 = vpop.f32.mrb[24].mxu0 }
 0x206   :  { %v5447_v51 = vpop.f32.mrb[24].mxu1  ;;  %v1820_v44 = vpop.f32.mrb[25].mxu0  ;;  %v2354_v2 = vrot.slane %v5445_v24, 1 }
 0x207   :  { %v2434_v46 = vrot.slane %v5447_v51, 1  ;;  %v2060_v32 = vpop.f32.mrb[25].mxu1  ;;  %2572 = vrot.lane.b32.xlu1 %v2433_v40, %s3980_s3  ;;  %v5451_v0 = vpop.f32.mrb[26].mxu0  ;;  %v2867_v13 = vrot.slane %v1820_v44, 2 }
 0x208   :  { %v2947_v9 = vrot.slane %v2060_v32, 2  ;;  %v5453_v1 = vpop.f32.mrb[26].mxu1  ;;  %v2355_v16 = vrot.slane %v5451_v0, 1  ;;  %v1824_v5 = vpop.f32.mrb[27].mxu0 }
 0x209   :  { %v2435_v7 = vrot.slane %v5453_v1, 1  ;;  %v2064_v11 = vpop.f32.mrb[27].mxu1  ;;  %v2868_v14 = vrot.slane %v1824_v5, 2 }
 0x20a   :  { %v2948_v21 = vrot.slane %v2064_v11, 2  ;;  %v2356_v12 = vsel %vm2333_vm7, %v2354_v2, %v2355_v16 }
 0x20b   :  { %v2436_v34 = vsel %vm2333_vm7, %v2434_v46, %v2435_v7  ;;  %2510 = vrot.lane.b32.xlu0 %v2356_v12, %s3980_s3  ;;  %v5462_v29 = vsel %vm2846_vm8, %v2867_v13, %v2868_v14 }
 0x20c   :  { %v5465_v35 = vsel %vm2846_vm8, %v2947_v9, %v2948_v21 }
 0x20d   :  { %v1828_v63 = vpop.f32.mrb[28].mxu0 }
 0x20e   :  { %v2068_v31 = vpop.f32.mrb[28].mxu1  ;;  %v2357_v10 = vrot.slane %v1828_v63, 1  ;;  %v1830_v37 = vpop.f32.mrb[29].mxu0 }
 0x20f   :  { %v2437_v15 = vrot.slane %v2068_v31, 1  ;;  %v2070_v27 = vpop.f32.mrb[29].mxu1  ;;  %v2870_v41 = vrot.slane %v1830_v37, 2  ;;  %2574 = vrot.lane.b32.xlu0 %v2436_v34, %s3980_s3  ;;  %v5468_v57 = vpop.f32.mrb[30].mxu0 }
 0x210   :  { %v2950_v42 = vrot.slane %v2070_v27, 2  ;;  %6473 = vst [vmem:[#allocation14_spill] sm:$0xff] %v5468_v57  ;;  %v5470_v17 = vpop.f32.mrb[30].mxu1  ;;  %v1834_v6 = vpop.f32.mrb[31].mxu0  ;;  %v2358_v44 = vsel %vm2333_vm7, %v2355_v16, %v2357_v10  ;;  %v2359_v11 = vrot.slane %v5468_v57, 1 }
 0x211   :  { %6474 = vst [vmem:[#allocation18_spill] sm:$0xff] %v5470_v17  ;;  %v2074_v40 = vpop.f32.mrb[31].mxu1  ;;  %v2438_v46 = vsel %vm2333_vm7, %v2435_v7, %v2437_v15  ;;  %2512 = vrot.lane.b32.xlu1 %v2358_v44, %s3980_s3  ;;  %v5476_v32 = vsel %vm2846_vm8, %v2868_v14, %v2870_v41  ;;  %v2439_v16 = vrot.slane %v5470_v17, 1  ;;  %v2872_v34 = vrot.slane %v1834_v6, 2 }
 0x212   :  { %v5479_v9 = vsel %vm2846_vm8, %v2948_v21, %v2950_v42  ;;  %v2952_v63 = vrot.slane %v2074_v40, 2 }
 0x215   :  { %2576 = vrot.lane.b32.xlu1 %v2438_v46, %s3980_s3  ;;  %v5484_v5 = vpop.f32.mrb[32].mxu0 }
 0x216   :  { %v5481_v2 = vpop.f32.mrb[32].mxu1  ;;  %6476 = vst [vmem:[#allocation15_spill] sm:$0xff] %v5484_v5  ;;  %v2360_v13 = vrot.slane %v5484_v5, 1  ;;  %v1840_v12 = vpop.f32.mrb[33].mxu0 }
 0x217   :  { %6475 = vst [vmem:[#allocation16_spill] sm:$0xff] %v5481_v2  ;;  %v2440_v7 = vrot.slane %v5481_v2, 1  ;;  %v2080_v14 = vpop.f32.mrb[33].mxu1  ;;  %v2873_v21 = vrot.slane %v1840_v12, 2  ;;  %v1842_v10 = vpop.f32.mrb[34].mxu0 }
 0x218   :  { %v2953_v31 = vrot.slane %v2080_v14, 2  ;;  %v2082_v15 = vpop.f32.mrb[34].mxu1  ;;  %v2362_v37 = vrot.slane %v1842_v10, 1  ;;  %v1844_v27 = vpop.f32.mrb[35].mxu0  ;;  %v2361_v44 = vsel %vm2333_vm7, %v2359_v11, %v2360_v13 }
 0x219   :  { %v2442_v41 = vrot.slane %v2082_v15, 1  ;;  %v2084_v42 = vpop.f32.mrb[35].mxu1  ;;  %v2441_v46 = vsel %vm2333_vm7, %v2439_v16, %v2440_v7  ;;  %v2875_v17 = vrot.slane %v1844_v27, 2  ;;  %2514 = vrot.lane.b32.xlu0 %v2361_v44, %s3980_s3  ;;  %v5494_v5 = vsel %vm2846_vm8, %v2872_v34, %v2873_v21 }
 0x21a   :  { %v2955_v2 = vrot.slane %v2084_v42, 2  ;;  %6477 = vst [vmem:[#allocation17_spill] sm:$0xff] %v5494_v5  ;;  %v5497_v6 = vsel %vm2846_vm8, %v2952_v63, %v2953_v31  ;;  %v2363_v40 = vsel %vm2333_vm7, %v2360_v13, %v2362_v37 }
 0x21b   :  { %6478 = vst [vmem:[#allocation20_spill] sm:$0xff] %v5497_v6  ;;  %v2443_v12 = vsel %vm2333_vm7, %v2440_v7, %v2442_v41  ;;  %2516 = vrot.lane.b32.xlu1 %v2363_v40, %s3980_s3  ;;  %v5503_v11 = vsel %vm2846_vm8, %v2873_v21, %v2875_v17 }
 0x21c   :  { %6479 = vst [vmem:[#allocation19_spill] sm:$0xff] %v5503_v11  ;;  %v5506_v16 = vsel %vm2846_vm8, %v2953_v31, %v2955_v2 }
 0x21d   :  { %6480 = vst [vmem:[#allocation22_spill] sm:$0xff] %v5506_v16  ;;  %2578 = vrot.lane.b32.xlu0 %v2441_v46, %s3980_s3  ;;  %v5509_v14 = vpop.f32.mrb[36].mxu0 }
 0x21e   :  { %6481 = vst [vmem:[#allocation21_spill] sm:$0xff] %v5509_v14  ;;  %v5511_v34 = vpop.f32.mrb[36].mxu1  ;;  %v1850_v63 = vpop.f32.mrb[37].mxu0  ;;  %v2364_v2 = vrot.slane %v5509_v14, 1 }
 0x21f   :  { %6482 = vst [vmem:[#allocation23_spill] sm:$0xff] %v5511_v34  ;;  %v2444_v10 = vrot.slane %v5511_v34, 1  ;;  %v2090_v13 = vpop.f32.mrb[37].mxu1  ;;  %2580 = vrot.lane.b32.xlu1 %v2443_v12, %s3980_s3  ;;  %v5515_v7 = vpop.f32.mrb[38].mxu0  ;;  %v2877_v41 = vrot.slane %v1850_v63, 2 }
 0x220   :  { %v2957_v15 = vrot.slane %v2090_v13, 2  ;;  %6483 = vst [vmem:[#allocation24_spill] sm:$0xff] %v5515_v7  ;;  %v5517_v17 = vpop.f32.mrb[38].mxu1  ;;  %v2365_v21 = vrot.slane %v5515_v7, 1  ;;  %v1854_v31 = vpop.f32.mrb[39].mxu0 }
 0x221   :  { %6484 = vst [vmem:[#allocation25_spill] sm:$0xff] %v5517_v17  ;;  %v2445_v37 = vrot.slane %v5517_v17, 1  ;;  %v2094_v27 = vpop.f32.mrb[39].mxu1  ;;  %v2878_v42 = vrot.slane %v1854_v31, 2 }
 0x222   :  { %v2958_v44 = vrot.slane %v2094_v27, 2  ;;  %v2366_v46 = vsel %vm2333_vm7, %v2364_v2, %v2365_v21 }
 0x223   :  { %v2446_v40 = vsel %vm2333_vm7, %v2444_v10, %v2445_v37  ;;  %2518 = vrot.lane.b32.xlu0 %v2366_v46, %s3980_s3  ;;  %v5526_v12 = vsel %vm2846_vm8, %v2877_v41, %v2878_v42 }
 0x224   :  { %6485 = vst [vmem:[#allocation26_spill] sm:$0xff] %v5526_v12  ;;  %v5529_v13 = vsel %vm2846_vm8, %v2957_v15, %v2958_v44 }
 0x225   :  { %6486 = vst [vmem:[#allocation27_spill] sm:$0xff] %v5529_v13  ;;  %v1858_v7 = vpop.f32.mrb[40].mxu0 }
 0x226   :  { %v2098_v34 = vpop.f32.mrb[40].mxu1  ;;  %v2367_v16 = vrot.slane %v1858_v7, 1  ;;  %v1860_v14 = vpop.f32.mrb[41].mxu0 }
 0x227   :  { %v2447_v17 = vrot.slane %v2098_v34, 1  ;;  %v2100_v63 = vpop.f32.mrb[41].mxu1  ;;  %v2880_v31 = vrot.slane %v1860_v14, 2  ;;  %2582 = vrot.lane.b32.xlu0 %v2446_v40, %s3980_s3  ;;  %v5532_v2 = vpop.f32.mrb[42].mxu0 }
 0x228   :  { %v2960_v27 = vrot.slane %v2100_v63, 2  ;;  %6487 = vst [vmem:[#allocation28_spill] sm:$0xff] %v5532_v2  ;;  %v5534_v10 = vpop.f32.mrb[42].mxu1  ;;  %v1864_v46 = vpop.f32.mrb[43].mxu0  ;;  %v2368_v12 = vsel %vm2333_vm7, %v2365_v21, %v2367_v16  ;;  %v2369_v63 = vrot.slane %v5532_v2, 1 }
 0x229   :  { %6488 = vst [vmem:[#allocation29_spill] sm:$0xff] %v5534_v10  ;;  %v2104_v41 = vpop.f32.mrb[43].mxu1  ;;  %v2448_v15 = vsel %vm2333_vm7, %v2445_v37, %v2447_v17  ;;  %2520 = vrot.lane.b32.xlu1 %v2368_v12, %s3980_s3  ;;  %v5540_v34 = vsel %vm2846_vm8, %v2878_v42, %v2880_v31  ;;  %v2449_v16 = vrot.slane %v5534_v10, 1  ;;  %v2882_v12 = vrot.slane %v1864_v46, 2 }
 0x22a   :  { %6489 = vst [vmem:[#allocation30_spill] sm:$0xff] %v5540_v34  ;;  %v5543_v14 = vsel %vm2846_vm8, %v2958_v44, %v2960_v27  ;;  %v2962_v31 = vrot.slane %v2104_v41, 2 }
 0x22b   :  { %6490 = vst [vmem:[#allocation31_spill] sm:$0xff] %v5543_v14 }
 0x22d   :  { %2584 = vrot.lane.b32.xlu1 %v2448_v15, %s3980_s3  ;;  %v5548_v40 = vpop.f32.mrb[44].mxu0 }
 0x22e   :  { %v5545_v7 = vpop.f32.mrb[44].mxu1  ;;  %6492 = vst [vmem:[#allocation33_spill] sm:$0xff] %v5548_v40  ;;  %v2370_v21 = vrot.slane %v5548_v40, 1  ;;  %v1870_v37 = vpop.f32.mrb[45].mxu0 }
 0x22f   :  { %6491 = vst [vmem:[#allocation32_spill] sm:$0xff] %v5545_v7  ;;  %v2450_v17 = vrot.slane %v5545_v7, 1  ;;  %v2110_v42 = vpop.f32.mrb[45].mxu1  ;;  %v2883_v44 = vrot.slane %v1870_v37, 2  ;;  %v1872_v14 = vpop.f32.mrb[46].mxu0 }
 0x230   :  { %v2963_v27 = vrot.slane %v2110_v42, 2  ;;  %v2112_v34 = vpop.f32.mrb[46].mxu1  ;;  %v2372_v13 = vrot.slane %v1872_v14, 1  ;;  %v1874_v15 = vpop.f32.mrb[47].mxu0  ;;  %v2371_v2 = vsel %vm2333_vm7, %v2369_v63, %v2370_v21 }
 0x231   :  { %v2452_v6 = vrot.slane %v2112_v34, 1  ;;  %v2114_v11 = vpop.f32.mrb[47].mxu1  ;;  %v2451_v10 = vsel %vm2333_vm7, %v2449_v16, %v2450_v17  ;;  %v2885_v5 = vrot.slane %v1874_v15, 2  ;;  %2522 = vrot.lane.b32.xlu0 %v2371_v2, %s3980_s3  ;;  %v5558_v40 = vsel %vm2846_vm8, %v2882_v12, %v2883_v44 }
 0x232   :  { %v2965_v7 = vrot.slane %v2114_v11, 2  ;;  %6493 = vst [vmem:[#allocation34_spill] sm:$0xff] %v5558_v40  ;;  %v5561_v46 = vsel %vm2846_vm8, %v2962_v31, %v2963_v27  ;;  %v2373_v41 = vsel %vm2333_vm7, %v2370_v21, %v2372_v13 }
 0x233   :  { %6494 = vst [vmem:[#allocation35_spill] sm:$0xff] %v5561_v46  ;;  %v2453_v14 = vsel %vm2333_vm7, %v2450_v17, %v2452_v6  ;;  %2524 = vrot.lane.b32.xlu1 %v2373_v41, %s3980_s3  ;;  %v5567_v34 = vsel %vm2846_vm8, %v2883_v44, %v2885_v5 }
 0x234   :  { %6495 = vst [vmem:[#allocation36_spill] sm:$0xff] %v5567_v34  ;;  %v5570_v63 = vsel %vm2846_vm8, %v2963_v27, %v2965_v7 }
 0x235   :  { %6496 = vst [vmem:[#allocation37_spill] sm:$0xff] %v5570_v63  ;;  %2586 = vrot.lane.b32.xlu0 %v2451_v10, %s3980_s3  ;;  %v5573_v11 = vpop.f32.mrb[48].mxu0 }
 0x236   :  { %6497 = vst [vmem:[#allocation38_spill] sm:$0xff] %v5573_v11  ;;  %v5575_v2 = vpop.f32.mrb[48].mxu1  ;;  %v1880_v16 = vpop.f32.mrb[49].mxu0  ;;  %v2374_v7 = vrot.slane %v5573_v11, 1 }
 0x237   :  { %6498 = vst [vmem:[#allocation39_spill] sm:$0xff] %v5575_v2  ;;  %v2454_v37 = vrot.slane %v5575_v2, 1  ;;  %v2120_v13 = vpop.f32.mrb[49].mxu1  ;;  %2588 = vrot.lane.b32.xlu1 %v2453_v14, %s3980_s3  ;;  %v5579_v6 = vpop.f32.mrb[50].mxu0  ;;  %v2887_v31 = vrot.slane %v1880_v16, 2 }
 0x238   :  { %v2967_v21 = vrot.slane %v2120_v13, 2  ;;  %6499 = vst [vmem:[#allocation40_spill] sm:$0xff] %v5579_v6  ;;  %v5581_v5 = vpop.f32.mrb[50].mxu1  ;;  %v2375_v17 = vrot.slane %v5579_v6, 1  ;;  %v1884_v10 = vpop.f32.mrb[51].mxu0 }
 0x239   :  { %6500 = vst [vmem:[#allocation41_spill] sm:$0xff] %v5581_v5  ;;  %v2455_v42 = vrot.slane %v5581_v5, 1  ;;  %v2124_v12 = vpop.f32.mrb[51].mxu1  ;;  %v2888_v44 = vrot.slane %v1884_v10, 2 }
 0x23a   :  { %v2968_v27 = vrot.slane %v2124_v12, 2  ;;  %v2376_v15 = vsel %vm2333_vm7, %v2374_v7, %v2375_v17 }
 0x23b   :  { %v2456_v41 = vsel %vm2333_vm7, %v2454_v37, %v2455_v42  ;;  %2526 = vrot.lane.b32.xlu0 %v2376_v15, %s3980_s3  ;;  %v5590_v14 = vsel %vm2846_vm8, %v2887_v31, %v2888_v44 }
 0x23c   :  { %6501 = vst [vmem:[#allocation42_spill] sm:$0xff] %v5590_v14  ;;  %v5593_v13 = vsel %vm2846_vm8, %v2967_v21, %v2968_v27 }
 0x23d   :  { %6502 = vst [vmem:[#allocation43_spill] sm:$0xff] %v5593_v13  ;;  %v1888_v6 = vpop.f32.mrb[52].mxu0 }
 0x23e   :  { %v2128_v2 = vpop.f32.mrb[52].mxu1  ;;  %v2377_v11 = vrot.slane %v1888_v6, 1  ;;  %v1890_v63 = vpop.f32.mrb[53].mxu0 }
 0x23f   :  { %v2457_v5 = vrot.slane %v2128_v2, 1  ;;  %v2130_v16 = vpop.f32.mrb[53].mxu1  ;;  %v2890_v10 = vrot.slane %v1890_v63, 2  ;;  %2590 = vrot.lane.b32.xlu0 %v2456_v41, %s3980_s3  ;;  %v5596_v7 = vpop.f32.mrb[54].mxu0 }
 0x240   :  { %v2970_v12 = vrot.slane %v2130_v16, 2  ;;  %6503 = vst [vmem:[#allocation44_spill] sm:$0xff] %v5596_v7  ;;  %v5598_v37 = vpop.f32.mrb[54].mxu1  ;;  %v1894_v15 = vpop.f32.mrb[55].mxu0  ;;  %v2378_v14 = vsel %vm2333_vm7, %v2375_v17, %v2377_v11  ;;  %v2379_v16 = vrot.slane %v5596_v7, 1 }
 0x241   :  { %6504 = vst [vmem:[#allocation45_spill] sm:$0xff] %v5598_v37  ;;  %v2134_v31 = vpop.f32.mrb[55].mxu1  ;;  %v2458_v21 = vsel %vm2333_vm7, %v2455_v42, %v2457_v5  ;;  %2528 = vrot.lane.b32.xlu1 %v2378_v14, %s3980_s3  ;;  %v5604_v2 = vsel %vm2846_vm8, %v2888_v44, %v2890_v10  ;;  %v2459_v11 = vrot.slane %v5598_v37, 1  ;;  %v2892_v14 = vrot.slane %v1894_v15, 2 }
 0x242   :  { %6505 = vst [vmem:[#allocation46_spill] sm:$0xff] %v5604_v2  ;;  %v5607_v63 = vsel %vm2846_vm8, %v2968_v27, %v2970_v12  ;;  %v2972_v10 = vrot.slane %v2134_v31, 2 }
 0x243   :  { %6506 = vst [vmem:[#allocation47_spill] sm:$0xff] %v5607_v63 }
 0x245   :  { %2592 = vrot.lane.b32.xlu1 %v2458_v21, %s3980_s3  ;;  %v5612_v41 = vpop.f32.mrb[56].mxu0 }
 0x246   :  { %v5609_v6 = vpop.f32.mrb[56].mxu1  ;;  %6508 = vst [vmem:[#allocation49_spill] sm:$0xff] %v5612_v41  ;;  %v2380_v17 = vrot.slane %v5612_v41, 1  ;;  %v1900_v42 = vpop.f32.mrb[57].mxu0 }
 0x247   :  { %6507 = vst [vmem:[#allocation48_spill] sm:$0xff] %v5609_v6  ;;  %v2460_v5 = vrot.slane %v5609_v6, 1  ;;  %v2140_v44 = vpop.f32.mrb[57].mxu1  ;;  %v2893_v27 = vrot.slane %v1900_v42, 2  ;;  %v1902_v63 = vpop.f32.mrb[58].mxu0 }
 0x248   :  { %v2973_v12 = vrot.slane %v2140_v44, 2  ;;  %v2142_v2 = vpop.f32.mrb[58].mxu1  ;;  %v2382_v13 = vrot.slane %v1902_v63, 1  ;;  %v1904_v21 = vpop.f32.mrb[59].mxu0  ;;  %v2381_v7 = vsel %vm2333_vm7, %v2379_v16, %v2380_v17 }
 0x249   :  { %v2462_v46 = vrot.slane %v2142_v2, 1  ;;  %v2144_v34 = vpop.f32.mrb[59].mxu1  ;;  %v2461_v37 = vsel %vm2333_vm7, %v2459_v11, %v2460_v5  ;;  %v2895_v40 = vrot.slane %v1904_v21, 2  ;;  %2530 = vrot.lane.b32.xlu0 %v2381_v7, %s3980_s3  ;;  %v5622_v41 = vsel %vm2846_vm8, %v2892_v14, %v2893_v27 }
 0x24a   :  { %v2975_v6 = vrot.slane %v2144_v34, 2  ;;  %6509 = vst [vmem:[#allocation50_spill] sm:$0xff] %v5622_v41  ;;  %v5625_v15 = vsel %vm2846_vm8, %v2972_v10, %v2973_v12  ;;  %v2383_v31 = vsel %vm2333_vm7, %v2380_v17, %v2382_v13 }
 0x24b   :  { %6510 = vst [vmem:[#allocation51_spill] sm:$0xff] %v5625_v15  ;;  %v2463_v63 = vsel %vm2333_vm7, %v2460_v5, %v2462_v46  ;;  %2532 = vrot.lane.b32.xlu1 %v2383_v31, %s3980_s3  ;;  %v5631_v2 = vsel %vm2846_vm8, %v2893_v27, %v2895_v40  ;;  %v5645_v46 = vld [vmem:[%s6404_s4] ss:$0 sm:$0xff] }
 0x24c   :  { %6511 = vst [vmem:[#allocation52_spill] sm:$0xff] %v5631_v2  ;;  %v5634_v16 = vsel %vm2846_vm8, %v2973_v12, %v2975_v6  ;;  %v3815_v2 = vld [vmem:[#allocation4] sm:$0xff] }
 0x24d   :  { %6512 = vst [vmem:[#allocation53_spill] sm:$0xff] %v5634_v16  ;;  %v2495_v34 = vpop.permute.xlu0 %2494  ;;  %2594 = vrot.lane.b32.xlu0 %v2461_v37, %s3980_s3  ;;  %v5637_v7 = vpop.f32.mrb[60].mxu0  ;;  %v5654_v37 = vstv %s6400_s0 }
 0x24e   :  { %6513 = vst [vmem:[#allocation54_spill] sm:$0xff] %v5637_v7  ;;  %v2686_v11 = vadd.f32 %v2495_v34, %v5318_v43  ;;  %v1910_v42 = vpop.f32.mrb[61].mxu0  ;;  %v5640_v44 = vpop.f32.mrb[60].mxu1  ;;  %v2384_v5 = vrot.slane %v5637_v7, 1 }
 0x24f   :  { %6514 = vst [vmem:[#allocation55_spill] sm:$0xff] %v5640_v44  ;;  %v2464_v40 = vrot.slane %v5640_v44, 1  ;;  %v2150_v13 = vpop.f32.mrb[61].mxu1  ;;  %2596 = vrot.lane.b32.xlu1 %v2463_v63, %s3980_s3  ;;  %v5649_v6 = vpop.f32.mrb[62].mxu0  ;;  %v2897_v27 = vrot.slane %v1910_v42, 2 }
 0x250   :  { %6515 = vst [vmem:[#allocation56_spill] sm:$0xff] %v5649_v6  ;;  %v3071_v43 = vadd.f32 %v5334_v58, %v2686_v11  ;;  %v2385_v17 = vrot.slane %v5649_v6, 1  ;;  %v5659_v14 = vpop.f32.mrb[63].mxu0  ;;  %v5661_v10 = vpop.f32.mrb[62].mxu1  ;;  %v2977_v12 = vrot.slane %v2150_v13, 2 }
 0x251   :  { %6516 = vst [vmem:[#allocation57_spill] sm:$0xff] %v5661_v10  ;;  %v2898_v21 = vrot.slane %v5659_v14, 2  ;;  %v2465_v31 = vrot.slane %v5661_v10, 1  ;;  %v5665_v63 = vpop.f32.mrb[63].mxu1  ;;  %v2559_v34 = vpop.permute.xlu0 %2558 }
 0x252   :  { %v3142_v44 = vadd.f32 %v5645_v46, %v3071_v43  ;;  %v2718_v11 = vadd.f32 %v2559_v34, %v5320_v30  ;;  %v2386_v6 = vsel %vm2333_vm7, %v2384_v5, %v2385_v17  ;;  %v6518_v30 = vrot.slane %v5665_v63, 2 }
 0x253   :  { %v2497_v7 = vpop.permute.xlu1 %2496  ;;  %2534 = vrot.lane.b32.xlu0 %v2386_v6, %s3980_s3  ;;  %v2466_v42 = vsel %vm2333_vm7, %v2464_v40, %v2465_v31  ;;  %v5674_v13 = vsel %vm2846_vm8, %v2897_v27, %v2898_v21  ;;  %v3464_v6 = vld [vmem:[#allocation7] sm:$0xff] }
 0x254   :  { %6517 = vst [vmem:[#allocation58_spill] sm:$0xff] %v5674_v13  ;;  %vm3207_vm9 = vcmp.gt.f32.partialorder %v3142_v44, 0.0  ;;  %v3272_v14 = vmul.f32 %v5654_v37, %v3142_v44  ;;  %v3103_v10 = vadd.f32 %v5337_v8, %v2718_v11  ;;  %v2687_v43 = vadd.f32 %v2497_v7, %v5322_v56 }
 0x255   :  { %v1918_v58 = vpop.f32.mrb[64].mxu0  ;;  %v5682_v5 = vsel %vm2846_vm8, %v2977_v12, %v6518_v30 }
 0x256   :  { %v2158_v16 = vpop.f32.mrb[64].mxu1  ;;  %6519 = vst [vmem:[#allocation59_spill] sm:$0xff] %v5682_v5  ;;  %v3336_v34 = vsel %vm3207_vm9, %v3142_v44, %v3272_v14  ;;  %v3174_v40 = vadd.f32 %v5645_v46, %v3103_v10  ;;  %v3072_v27 = vadd.f32 %v5348_v45, %v2687_v43  ;;  %v1920_v13 = vpop.f32.mrb[65].mxu0  ;;  %v2387_v8 = vrot.slane %v1918_v58, 1  ;;  %v3496_v43 = vld [vmem:[#allocation7 + $0x100] sm:$0xff] }
 0x257   :  { %v2160_v15 = vpop.f32.mrb[65].mxu1  ;;  %v3400_v41 = vmul.f32 %v3815_v2, %v3336_v34  ;;  %v2467_v11 = vrot.slane %v2158_v16, 1  ;;  %v2900_v56 = vrot.slane %v1920_v13, 2  ;;  %v2561_v7 = vpop.permute.xlu1 %2560  ;;  %2598 = vrot.lane.b32.xlu0 %v2466_v42, %s3980_s3  ;;  %v3465_v16 = vld [vmem:[#allocation7 + $0x8] sm:$0xff] }
 0x258   :  { %v5687_v57 = vpop.f32.mrb[66].mxu0  ;;  %vm3239_vm10 = vcmp.gt.f32.partialorder %v3174_v40, 0.0  ;;  %v3304_v12 = vmul.f32 %v5654_v37, %v3174_v40  ;;  %v3143_v44 = vadd.f32 %v5645_v46, %v3072_v27  ;;  %v2719_v10 = vadd.f32 %v2561_v7, %v5324_v19  ;;  %v5694_v14 = vpop.f32.mrb[66].mxu1  ;;  %v3816_v19 = vld [vmem:[#allocation4 + $0x100] sm:$0xff] }
 0x259   :  { %v5692_v45 = vpop.f32.mrb[67].mxu0  ;;  %v3528_v2 = vadd.f32 %v3464_v6, %v3400_v41  ;;  %v2980_v58 = vrot.slane %v2160_v15, 2  ;;  %v5698_v42 = vpop.f32.mrb[67].mxu1  ;;  %v2469_v41 = vrot.slane %v5694_v14, 1  ;;  %v2388_v15 = vsel %vm2333_vm7, %v2385_v17, %v2387_v8 }
 0x25a   :  { %v3368_v30 = vsel %vm3239_vm10, %v3174_v40, %v3304_v12  ;;  %vm3208_vm11 = vcmp.gt.f32.partialorder %v3143_v44, 0.0  ;;  %v3273_v34 = vmul.f32 %v5654_v37, %v3143_v44  ;;  %v3104_v27 = vadd.f32 %v5351_v47, %v2719_v10  ;;  %2536 = vrot.lane.b32.xlu1 %v2388_v15, %s3980_s3  ;;  %v3497_v15 = vld [vmem:[#allocation7 + $0x108] sm:$0xff] }
 0x25b   :  { %3592 = vst.msk [vmem:[#allocation10] sm:$0xff] %vm65_vm0, %v3528_v2  ;;  %v3432_v7 = vmul.f32 %v3816_v19, %v3368_v30  ;;  %v2499_v6 = vpop.permute.xlu0 %2498  ;;  %v2468_v13 = vsel %vm2333_vm7, %v2465_v31, %v2467_v11  ;;  %v5710_v47 = vsel %vm2846_vm8, %v2898_v21, %v2900_v56  ;;  %v3817_v2 = vld [vmem:[#allocation4 + $0x8] sm:$0xff]  ;;  %v6520_v31 = vrot.slane %v5665_v63, 2 }
 0x25c   :  { %v3337_v5 = vsel %vm3208_vm11, %v3143_v44, %v3273_v34  ;;  %v3175_v40 = vadd.f32 %v5645_v46, %v3104_v27  ;;  %v2688_v12 = vadd.f32 %v2499_v6, %v5340_v61  ;;  %v6521_v27 = vrot.slane %v5687_v57, 1 }
 0x25d   :  { %v3560_v10 = vadd.f32 %v3496_v43, %v3432_v7  ;;  %v3401_v30 = vmul.f32 %v3817_v2, %v3337_v5  ;;  %v2501_v8 = vpop.permute.xlu1 %2500  ;;  %v5718_v11 = vsel %vm2846_vm8, %v6520_v31, %v2980_v58  ;;  %v5723_v56 = vpop.f32.mrb[68].mxu0 }
 0x25e   :  { %v5713_v17 = vpop.f32.mrb[68].mxu1  ;;  %vm3240_vm12 = vcmp.gt.f32.partialorder %v3175_v40, 0.0  ;;  %v3305_v44 = vmul.f32 %v5654_v37, %v3175_v40  ;;  %v3073_v61 = vadd.f32 %v5366_v23, %v2688_v12  ;;  %v2689_v34 = vadd.f32 %v2501_v8, %v5356_v53  ;;  %v5730_v58 = vpop.f32.mrb[69].mxu0  ;;  %2600 = vrot.lane.b32.xlu1 %v2468_v13, %s3980_s3  ;;  %v3818_v53 = vld [vmem:[#allocation4 + $0x108] sm:$0xff] }
 0x25f   :  { %v2470_v21 = vrot.slane %v5713_v17, 1  ;;  %v5725_v5 = vpop.f32.mrb[69].mxu1  ;;  %3624 = vst.msk [vmem:[#allocation10 + $0x100] sm:$0xff] %vm65_vm0, %v3560_v10  ;;  %v3529_v43 = vadd.f32 %v3465_v16, %v3401_v30  ;;  %v2390_v63 = vrot.slane %v5723_v56, 1  ;;  %v2563_v7 = vpop.permute.xlu0 %2562 }
 0x260   :  { %v3369_v23 = vsel %vm3240_vm12, %v3175_v40, %v3305_v44  ;;  %v3144_v6 = vadd.f32 %v5645_v46, %v3073_v61  ;;  %v2720_v10 = vadd.f32 %v2563_v7, %v5342_v50  ;;  %v1932_v16 = vpop.f32.mrb[70].mxu0  ;;  %v5737_v2 = vpop.f32.mrb[70].mxu1  ;;  %v3074_v8 = vadd.f32 %v5375_v36, %v2689_v34 }
 0x261   :  { %3593 = vst.msk [vmem:[#allocation10 + $0x8] sm:$0xff] %vm65_vm0, %v3529_v43  ;;  %v3433_v30 = vmul.f32 %v3818_v53, %v3369_v23  ;;  %v2392_v31 = vrot.slane %v1932_v16, 1  ;;  %v5741_v19 = vpop.f32.mrb[71].mxu0  ;;  %v2472_v40 = vrot.slane %v5737_v2, 1  ;;  %v5744_v44 = vpop.f32.mrb[71].mxu1  ;;  %v3466_v16 = vld [vmem:[#allocation7 + $0x10] sm:$0xff]  ;;  %v2391_v12 = vsel %vm2333_vm7, %v6521_v27, %v2390_v63 }
 0x262   :  { %vm3209_vm13 = vcmp.gt.f32.partialorder %v3144_v6, 0.0  ;;  %v3274_v13 = vmul.f32 %v5654_v37, %v3144_v6  ;;  %v3105_v50 = vadd.f32 %v5369_v28, %v2720_v10  ;;  %v2565_v7 = vpop.permute.xlu1 %2564  ;;  %v3145_v23 = vadd.f32 %v5645_v46, %v3074_v8  ;;  %v3819_v10 = vld [vmem:[#allocation4 + $0x10] sm:$0xff]  ;;  %2538 = vrot.lane.b32.xlu0 %v2391_v12, %s3980_s3 }
 0x263   :  { %v3561_v43 = vadd.f32 %v3497_v15, %v3433_v30  ;;  %v2721_v34 = vadd.f32 %v2565_v7, %v5353_v52  ;;  %v2393_v28 = vsel %vm2333_vm7, %v2390_v63, %v2392_v31  ;;  %v2471_v31 = vsel %vm2333_vm7, %v2469_v41, %v2470_v21 }
 0x264   :  { %v3338_v53 = vsel %vm3209_vm13, %v3144_v6, %v3274_v13  ;;  %v3176_v2 = vadd.f32 %v5645_v46, %v3105_v50  ;;  %vm3210_vm14 = vcmp.gt.f32.partialorder %v3145_v23, 0.0  ;;  %v3275_v30 = vmul.f32 %v5654_v37, %v3145_v23  ;;  %2540 = vrot.lane.b32.xlu1 %v2393_v28, %s3980_s3  ;;  %v3467_v50 = vld [vmem:[#allocation7 + $0x18] sm:$0xff] }
 0x265   :  { %3625 = vst.msk [vmem:[#allocation10 + $0x108] sm:$0xff] %vm65_vm0, %v3561_v43  ;;  %v3402_v15 = vmul.f32 %v3819_v10, %v3338_v53  ;;  %v3106_v8 = vadd.f32 %v5378_v33, %v2721_v34  ;;  %v2503_v52 = vpop.permute.xlu0 %2502  ;;  %v5762_v6 = vpop.f32.mrb[72].mxu0  ;;  %v3820_v28 = vld [vmem:[#allocation4 + $0x18] sm:$0xff] }
 0x266   :  { %6522 = vst [vmem:[#allocation60_spill] sm:$0xff] %v5762_v6  ;;  %vm3241_vm15 = vcmp.gt.f32.partialorder %v3176_v2, 0.0  ;;  %v3306_v27 = vmul.f32 %v5654_v37, %v3176_v2  ;;  %v2690_v63 = vadd.f32 %v2503_v52, %v5381_v48  ;;  %v5771_v13 = vpop.f32.mrb[73].mxu0  ;;  %v5773_v33 = vpop.f32.mrb[72].mxu1  ;;  %v3339_v7 = vsel %vm3210_vm14, %v3145_v23, %v3275_v30  ;;  %v3498_v52 = vld [vmem:[#allocation7 + $0x110] sm:$0xff]  ;;  %2602 = vrot.lane.b32.xlu0 %v2471_v31, %s3980_s3 }
 0x267   :  { %6523 = vst [vmem:[#allocation61_spill] sm:$0xff] %v5773_v33  ;;  %v3530_v12 = vadd.f32 %v3466_v16, %v3402_v15  ;;  %v3177_v43 = vadd.f32 %v5645_v46, %v3106_v8  ;;  %v2394_v34 = vrot.slane %v5762_v6, 1  ;;  %v5777_v53 = vpop.f32.mrb[73].mxu1  ;;  %v5779_v48 = vpop.f32.mrb[74].mxu0  ;;  %v3403_v10 = vmul.f32 %v3820_v28, %v3339_v7  ;;  %v3821_v15 = vld [vmem:[#allocation4 + $0x110] sm:$0xff] }
 0x268   :  { %6524 = vst [vmem:[#allocation62_spill] sm:$0xff] %v5779_v48  ;;  %v3370_v41 = vsel %vm3241_vm15, %v3176_v2, %v3306_v27  ;;  %v3075_v36 = vadd.f32 %v5398_v26, %v2690_v63  ;;  %v5784_v16 = vpop.f32.mrb[75].mxu0  ;;  %v5786_v23 = vpop.f32.mrb[74].mxu1  ;;  %v2474_v7 = vrot.slane %v5773_v33, 1  ;;  %v2395_v31 = vrot.slane %v5779_v48, 1  ;;  %v3468_v63 = vld [vmem:[#allocation7 + $0x20] sm:$0xff] }
 0x269   :  { %6525 = vst [vmem:[#allocation63_spill] sm:$0xff] %v5786_v23  ;;  %3594 = vst.msk [vmem:[#allocation10 + $0x10] sm:$0xff] %vm65_vm0, %v3530_v12  ;;  %v3434_v30 = vmul.f32 %v3821_v15, %v3370_v41  ;;  %vm3242_vm1 = vcmp.gt.f32.partialorder %v3177_v43, 0.0  ;;  %v3307_v8 = vmul.f32 %v5654_v37, %v3177_v43  ;;  %v5792_v2 = vpop.f32.mrb[75].mxu1  ;;  %v3531_v26 = vadd.f32 %v3467_v50, %v3403_v10  ;;  %v2567_v28 = vpop.permute.xlu0 %2566  ;;  %v3499_v15 = vld [vmem:[#allocation7 + $0x118] sm:$0xff] }
 0x26a   :  { %v3146_v27 = vadd.f32 %v5645_v46, %v3075_v36  ;;  %v2473_v12 = vsel %vm2333_vm7, %v2470_v21, %v2472_v40  ;;  %v3822_v36 = vld [vmem:[#allocation4 + $0x118] sm:$0xff]  ;;  %v2475_v21 = vrot.slane %v5786_v23, 1  ;;  %v3823_v40 = vld [vmem:[#allocation4 + $0x20] sm:$0xff] }
 0x26b   :  { %v3562_v41 = vadd.f32 %v3498_v52, %v3434_v30  ;;  %v3371_v61 = vsel %vm3242_vm1, %v3177_v43, %v3307_v8  ;;  %2604 = vrot.lane.b32.xlu1 %v2473_v12, %s3980_s3  ;;  %v2505_v6 = vpop.permute.xlu1 %2504  ;;  %3595 = vst.msk [vmem:[#allocation10 + $0x18] sm:$0xff] %vm65_vm0, %v3531_v26  ;;  %v2722_v43 = vadd.f32 %v2567_v28, %v5383_v54 }
 0x26c   :  { %v3435_v50 = vmul.f32 %v3822_v36, %v3371_v61  ;;  %vm3211_vm2 = vcmp.gt.f32.partialorder %v3146_v27, 0.0  ;;  %v3276_v10 = vmul.f32 %v5654_v37, %v3146_v27  ;;  %v2691_v52 = vadd.f32 %v2505_v6, %v5387_v22 }
 0x26d   :  { %3626 = vst.msk [vmem:[#allocation10 + $0x110] sm:$0xff] %vm65_vm0, %v3562_v41  ;;  %v2396_v30 = vsel %vm2333_vm7, %v2394_v34, %v2395_v31  ;;  %v1948_v8 = vpop.f32.mrb[76].mxu0  ;;  %v3107_v54 = vadd.f32 %v5401_v55, %v2722_v43 }
 0x26e   :  { %v2188_v12 = vpop.f32.mrb[76].mxu1  ;;  %v3563_v26 = vadd.f32 %v3499_v15, %v3435_v50  ;;  %v3340_v61 = vsel %vm3211_vm2, %v3146_v27, %v3276_v10  ;;  %2542 = vrot.lane.b32.xlu0 %v2396_v30, %s3980_s3  ;;  %v2397_v36 = vrot.slane %v1948_v8, 1  ;;  %v5811_v23 = vpop.f32.mrb[77].mxu0  ;;  %v3076_v22 = vadd.f32 %v5412_v49, %v2691_v52 }
 0x26f   :  { %v2477_v33 = vrot.slane %v2188_v12, 1  ;;  %v5813_v41 = vpop.f32.mrb[77].mxu1  ;;  %v3404_v48 = vmul.f32 %v3823_v40, %v3340_v61  ;;  %v2569_v34 = vpop.permute.xlu1 %2568  ;;  %v2476_v50 = vsel %vm2333_vm7, %v2474_v7, %v2475_v21  ;;  %v3178_v43 = vadd.f32 %v5645_v46, %v3107_v54 }
 0x270   :  { %v5818_v28 = vpop.f32.mrb[78].mxu0  ;;  %3627 = vst.msk [vmem:[#allocation10 + $0x118] sm:$0xff] %vm65_vm0, %v3563_v26  ;;  %v2723_v15 = vadd.f32 %v2569_v34, %v5389_v20  ;;  %v5827_v55 = vpop.f32.mrb[78].mxu1  ;;  %v3147_v52 = vadd.f32 %v5645_v46, %v3076_v22  ;;  %v2398_v26 = vsel %vm2333_vm7, %v2395_v31, %v2397_v36  ;;  %v6527_v34 = vrot.slane %v5730_v58, 2 }
 0x271   :  { %v5825_v40 = vpop.f32.mrb[79].mxu0  ;;  %6526 = vst [vmem:[#allocation64_spill] sm:$0xff] %v5827_v55  ;;  %v3532_v49 = vadd.f32 %v3468_v63, %v3404_v48  ;;  %v5832_v8 = vpop.f32.mrb[79].mxu1  ;;  %vm3243_vm3 = vcmp.gt.f32.partialorder %v3178_v43, 0.0  ;;  %v3308_v48 = vmul.f32 %v5654_v37, %v3178_v43  ;;  %2544 = vrot.lane.b32.xlu1 %v2398_v26, %s3980_s3  ;;  %v2478_v22 = vsel %vm2333_vm7, %v2475_v21, %v2477_v33 }
 0x272   :  { %v3108_v12 = vadd.f32 %v5415_v3, %v2723_v15  ;;  %2606 = vrot.lane.b32.xlu0 %v2476_v50, %s3980_s3  ;;  %vm3212_vm4 = vcmp.gt.f32.partialorder %v3147_v52, 0.0  ;;  %v3277_v63 = vmul.f32 %v5654_v37, %v3147_v52  ;;  %v6528_v31 = vrot.slane %v5692_v45, 2  ;;  %v3500_v15 = vld [vmem:[#allocation7 + $0x120] sm:$0xff] }
 0x273   :  { %3596 = vst.msk [vmem:[#allocation10 + $0x20] sm:$0xff] %vm65_vm0, %v3532_v49  ;;  %v2507_v61 = vpop.permute.xlu0 %2506  ;;  %v3372_v50 = vsel %vm3243_vm3, %v3178_v43, %v3308_v48  ;;  %v3469_v49 = vld [vmem:[#allocation7 + $0x28] sm:$0xff]  ;;  %v6532_v21 = vrot.slane %v5725_v5, 2  ;;  %v6533_v45 = vrot.slane %v5698_v42, 2  ;;  %v3824_v43 = vld [vmem:[#allocation4 + $0x120] sm:$0xff] }
 0x274   :  { %v3179_v3 = vadd.f32 %v5645_v46, %v3108_v12  ;;  %v2692_v54 = vadd.f32 %v2507_v61, %v5404_v59  ;;  %v5851_v36 = vsel %vm2846_vm8, %v6528_v31, %v6527_v34  ;;  %v3341_v7 = vsel %vm3212_vm4, %v3147_v52, %v3277_v63  ;;  %v3825_v52 = vld [vmem:[#allocation4 + $0x28] sm:$0xff] }
 0x275   :  { %v2509_v26 = vpop.permute.xlu1 %2508  ;;  %v6530_v12 = vrot.slane %v5741_v19, 2  ;;  %v6531_v59 = vmov %v6527_v34  ;;  %v5867_v61 = vsel %vm2846_vm8, %v6533_v45, %v6532_v21  ;;  %v3436_v48 = vmul.f32 %v3824_v43, %v3372_v50  ;;  %v5870_v19 = vpop.f32.mrb[80].mxu0  ;;  %2608 = vrot.lane.b32.xlu1 %v2478_v22, %s3980_s3  ;;  %v3501_v43 = vld [vmem:[#allocation7 + $0x128] sm:$0xff] }
 0x276   :  { %v5853_v30 = vpop.f32.mrb[80].mxu1  ;;  %v3405_v63 = vmul.f32 %v3825_v52, %v3341_v7  ;;  %vm3244_vm5 = vcmp.gt.f32.partialorder %v3179_v3, 0.0  ;;  %v3309_v34 = vmul.f32 %v5654_v37, %v3179_v3  ;;  %v3077_v31 = vadd.f32 %v5430_v62, %v2692_v54  ;;  %v5879_v50 = vpop.f32.mrb[81].mxu0  ;;  %v3826_v62 = vld [vmem:[#allocation4 + $0x128] sm:$0xff] }
 0x277   :  { %6529 = vst [vmem:[#allocation65_spill] sm:$0xff] %v5853_v30  ;;  %v5860_v33 = vsel %vm2846_vm8, %v6531_v59, %v6530_v12  ;;  %v5872_v58 = vpop.f32.mrb[81].mxu1  ;;  %v2693_v42 = vadd.f32 %v2509_v26, %v5420_v4  ;;  %v2400_v59 = vrot.slane %v5870_v19, 1  ;;  %v2571_v7 = vpop.permute.xlu0 %2570  ;;  %v3564_v21 = vadd.f32 %v3500_v15, %v3436_v48 }
 0x278   :  { %v3533_v45 = vadd.f32 %v3469_v49, %v3405_v63  ;;  %v3373_v52 = vsel %vm3244_vm5, %v3179_v3, %v3309_v34  ;;  %v1962_v6 = vpop.f32.mrb[82].mxu0  ;;  %v5882_v20 = vpop.f32.mrb[82].mxu1  ;;  %v3148_v4 = vadd.f32 %v5645_v46, %v3077_v31  ;;  %v2724_v3 = vadd.f32 %v2571_v7, %v5406_v60 }
 0x279   :  { %v3437_v54 = vmul.f32 %v3826_v62, %v3373_v52  ;;  %v3078_v22 = vadd.f32 %v5439_v18, %v2693_v42  ;;  %v5887_v12 = vpop.f32.mrb[83].mxu0  ;;  %v5889_v10 = vpop.f32.mrb[83].mxu1  ;;  %3628 = vst.msk [vmem:[#allocation10 + $0x120] sm:$0xff] %vm65_vm0, %v3564_v21  ;;  %v2402_v15 = vrot.slane %v1962_v6, 1  ;;  %v2482_v48 = vrot.slane %v5882_v20, 1  ;;  %v3470_v20 = vld [vmem:[#allocation7 + $0x30] sm:$0xff] }
 0x27a   :  { %3597 = vst.msk [vmem:[#allocation10 + $0x28] sm:$0xff] %vm65_vm0, %v3533_v45  ;;  %v2573_v63 = vpop.permute.xlu1 %2572  ;;  %vm3213_vm6 = vcmp.gt.f32.partialorder %v3148_v4, 0.0  ;;  %v3278_v18 = vmul.f32 %v5654_v37, %v3148_v4  ;;  %v3109_v42 = vadd.f32 %v5433_v25, %v2724_v3  ;;  %v6534_v60 = vrot.slane %v5818_v28, 1 }
 0x27b   :  { %v3565_v34 = vadd.f32 %v3501_v43, %v3437_v54  ;;  %v3149_v31 = vadd.f32 %v5645_v46, %v3078_v22  ;;  %v2725_v45 = vadd.f32 %v2573_v63, %v5417_v38  ;;  %v2403_v52 = vsel %vm2333_vm7, %v2400_v59, %v2402_v15  ;;  %v3827_v54 = vld [vmem:[#allocation4 + $0x30] sm:$0xff] }
 0x27c   :  { %v2401_v6 = vsel %vm2333_vm7, %v6534_v60, %v2400_v59  ;;  %v3342_v7 = vsel %vm3213_vm6, %v3148_v4, %v3278_v18  ;;  %v3180_v22 = vadd.f32 %v5645_v46, %v3109_v42  ;;  %2548 = vrot.lane.b32.xlu1 %v2403_v52, %s3980_s3  ;;  %v3471_v18 = vld [vmem:[#allocation7 + $0x38] sm:$0xff]  ;;  %v6537_v59 = vrot.slane %v5853_v30, 1 }
 0x27d   :  { %3629 = vst.msk [vmem:[#allocation10 + $0x128] sm:$0xff] %vm65_vm0, %v3565_v34  ;;  %vm3214_vm9 = vcmp.gt.f32.partialorder %v3149_v31, 0.0  ;;  %v3279_v43 = vmul.f32 %v5654_v37, %v3149_v31  ;;  %2546 = vrot.lane.b32.xlu0 %v2401_v6, %s3980_s3  ;;  %v2511_v25 = vpop.permute.xlu0 %2510  ;;  %v5908_v62 = vpop.f32.mrb[84].mxu0  ;;  %v3406_v38 = vmul.f32 %v3827_v54, %v3342_v7  ;;  %v3110_v3 = vadd.f32 %v5442_v39, %v2725_v45  ;;  %v3828_v52 = vld [vmem:[#allocation4 + $0x38] sm:$0xff] }
 0x27e   :  { %6535 = vst [vmem:[#allocation66_spill] sm:$0xff] %v5908_v62  ;;  %v2694_v4 = vadd.f32 %v2511_v25, %v5445_v24  ;;  %v5914_v63 = vpop.f32.mrb[85].mxu0  ;;  %v5916_v34 = vpop.f32.mrb[84].mxu1  ;;  %v6538_v15 = vrot.slane %v5827_v55, 1  ;;  %v2404_v42 = vrot.slane %v5908_v62, 1  ;;  %vm3245_vm10 = vcmp.gt.f32.partialorder %v3180_v22, 0.0 }
 0x27f   :  { %6536 = vst [vmem:[#allocation67_spill] sm:$0xff] %v5916_v34  ;;  %v3343_v60 = vsel %vm3214_vm9, %v3149_v31, %v3279_v43  ;;  %v5925_v45 = vpop.f32.mrb[85].mxu1  ;;  %v5927_v7 = vpop.f32.mrb[86].mxu0  ;;  %v3534_v24 = vadd.f32 %v3470_v20, %v3406_v38  ;;  %v3310_v31 = vmul.f32 %v5654_v37, %v3180_v22  ;;  %v2484_v39 = vrot.slane %v5916_v34, 1 }
 0x280   :  { %v2481_v6 = vsel %vm2333_vm7, %v6538_v15, %v6537_v59  ;;  %6539 = vst [vmem:[#allocation68_spill] sm:$0xff] %v5927_v7  ;;  %v3407_v25 = vmul.f32 %v3828_v52, %v3343_v60  ;;  %v5930_v43 = vpop.f32.mrb[87].mxu0  ;;  %v5932_v54 = vpop.f32.mrb[86].mxu1  ;;  %v3181_v59 = vadd.f32 %v5645_v46, %v3110_v3  ;;  %v3079_v15 = vadd.f32 %v5462_v29, %v2694_v4  ;;  %v3502_v52 = vld [vmem:[#allocation7 + $0x130] sm:$0xff] }
 0x281   :  { %6540 = vst [vmem:[#allocation69_spill] sm:$0xff] %v5932_v54  ;;  %2610 = vrot.lane.b32.xlu0 %v2481_v6, %s3980_s3  ;;  %v5939_v20 = vpop.f32.mrb[87].mxu1  ;;  %v2575_v38 = vpop.permute.xlu0 %2574  ;;  %3598 = vst.msk [vmem:[#allocation10 + $0x30] sm:$0xff] %vm65_vm0, %v3534_v24  ;;  %v3374_v26 = vsel %vm3245_vm10, %v3180_v22, %v3310_v31  ;;  %v6541_v49 = vrot.slane %v5853_v30, 1  ;;  %v3829_v4 = vld [vmem:[#allocation4 + $0x130] sm:$0xff] }
 0x282   :  { %v3535_v60 = vadd.f32 %v3471_v18, %v3407_v25  ;;  %v3438_v6 = vmul.f32 %v3829_v4, %v3374_v26  ;;  %vm3246_vm11 = vcmp.gt.f32.partialorder %v3181_v59, 0.0  ;;  %v3311_v27 = vmul.f32 %v5654_v37, %v3181_v59  ;;  %v3503_v26 = vld [vmem:[#allocation7 + $0x138] sm:$0xff] }
 0x283   :  { %v2483_v3 = vsel %vm2333_vm7, %v6541_v49, %v2482_v48  ;;  %v3150_v21 = vadd.f32 %v5645_v46, %v3079_v15  ;;  %v2513_v34 = vpop.permute.xlu1 %2512  ;;  %v2726_v48 = vadd.f32 %v2575_v38, %v5447_v51  ;;  %v6542_v18 = vrot.slane %v5927_v7, 1 }
 0x284   :  { %2612 = vrot.lane.b32.xlu1 %v2483_v3, %s3980_s3  ;;  %3599 = vst.msk [vmem:[#allocation10 + $0x38] sm:$0xff] %vm65_vm0, %v3535_v60  ;;  %v3566_v24 = vadd.f32 %v3502_v52, %v3438_v6  ;;  %v3375_v25 = vsel %vm3246_vm11, %v3181_v59, %v3311_v27  ;;  %v3830_v3 = vld [vmem:[#allocation4 + $0x138] sm:$0xff]  ;;  %v2695_v22 = vadd.f32 %v2513_v34, %v5451_v0  ;;  %v3472_v27 = vld [vmem:[#allocation7 + $0x40] sm:$0xff] }
 0x285   :  { %vm3215_vm12 = vcmp.gt.f32.partialorder %v3150_v21, 0.0  ;;  %v3280_v31 = vmul.f32 %v5654_v37, %v3150_v21  ;;  %v1978_v15 = vpop.f32.mrb[88].mxu0  ;;  %v3439_v29 = vmul.f32 %v3830_v3, %v3375_v25  ;;  %v3111_v60 = vadd.f32 %v5465_v35, %v2726_v48  ;;  %v3831_v48 = vld [vmem:[#allocation4 + $0x40] sm:$0xff] }
 0x286   :  { %v2218_v4 = vpop.f32.mrb[88].mxu1  ;;  %v2406_v49 = vsel %vm2333_vm7, %v2404_v42, %v6542_v18  ;;  %v5960_v62 = vpop.f32.mrb[89].mxu0  ;;  %3630 = vst.msk [vmem:[#allocation10 + $0x130] sm:$0xff] %vm65_vm0, %v3566_v24  ;;  %v2407_v38 = vrot.slane %v1978_v15, 1  ;;  %v3080_v25 = vadd.f32 %v5476_v32, %v2695_v22 }
 0x287   :  { %v5962_v51 = vpop.f32.mrb[89].mxu1  ;;  %v3344_v59 = vsel %vm3215_vm12, %v3150_v21, %v3280_v31  ;;  %2550 = vrot.lane.b32.xlu0 %v2406_v49, %s3980_s3  ;;  %v2487_v52 = vrot.slane %v2218_v4, 1  ;;  %v2577_v6 = vpop.permute.xlu1 %2576  ;;  %v3567_v34 = vadd.f32 %v3503_v26, %v3439_v29  ;;  %v3182_v18 = vadd.f32 %v5645_v46, %v3111_v60  ;;  %v3473_v21 = vld [vmem:[#allocation7 + $0x48] sm:$0xff] }
 0x288   :  { %v5967_v0 = vpop.f32.mrb[90].mxu0  ;;  %v3408_v42 = vmul.f32 %v3831_v48, %v3344_v59  ;;  %v5973_v24 = vpop.f32.mrb[90].mxu1  ;;  %v2727_v49 = vadd.f32 %v2577_v6, %v5453_v1  ;;  %v6545_v31 = vrot.slane %v5932_v54, 1  ;;  %v3151_v22 = vadd.f32 %v5645_v46, %v3080_v25  ;;  %v3832_v25 = vld [vmem:[#allocation4 + $0x140] sm:$0xff]  ;;  %v3833_v29 = vld [vmem:[#allocation4 + $0x48] sm:$0xff] }
 0x289   :  { %6543 = vst [vmem:[#allocation70_spill] sm:$0xff] %v5967_v0  ;;  %v5971_v3 = vpop.f32.mrb[91].mxu0  ;;  %6544 = vst [vmem:[#allocation71_spill] sm:$0xff] %v5973_v24  ;;  %v5981_v26 = vpop.f32.mrb[91].mxu1  ;;  %vm3247_vm13 = vcmp.gt.f32.partialorder %v3182_v18, 0.0  ;;  %v3312_v32 = vmul.f32 %v5654_v37, %v3182_v18 }
 0x28a   :  { %v2486_v15 = vsel %vm2333_vm7, %v2484_v39, %v6545_v31  ;;  %3631 = vst.msk [vmem:[#allocation10 + $0x138] sm:$0xff] %vm65_vm0, %v3567_v34  ;;  %v3536_v4 = vadd.f32 %v3472_v27, %v3408_v42  ;;  %v3112_v60 = vadd.f32 %v5479_v9, %v2727_v49  ;;  %v3504_v34 = vld [vmem:[#allocation7 + $0x140] sm:$0xff]  ;;  %vm3216_vm14 = vcmp.gt.f32.partialorder %v3151_v22, 0.0  ;;  %v6554_v39 = vld [vmem:[#allocation19_spill] sm:$0xff] }
 0x28b   :  { %2614 = vrot.lane.b32.xlu0 %v2486_v15, %s3980_s3  ;;  %v2515_v6 = vpop.permute.xlu0 %2514  ;;  %v3376_v27 = vsel %vm3247_vm13, %v3182_v18, %v3312_v32  ;;  %v3281_v48 = vmul.f32 %v5654_v37, %v3151_v22  ;;  %v6546_v42 = vrot.slane %v5927_v7, 1  ;;  %v6547_v15 = vld [vmem:[#allocation14_spill] sm:$0xff]  ;;  %v6548_v18 = vrot.slane %v5932_v54, 1 }
 0x28c   :  { %3600 = vst.msk [vmem:[#allocation10 + $0x40] sm:$0xff] %vm65_vm0, %v3536_v4  ;;  %v3440_v49 = vmul.f32 %v3832_v25, %v3376_v27  ;;  %v3183_v31 = vadd.f32 %v5645_v46, %v3112_v60  ;;  %v2696_v59 = vadd.f32 %v2515_v6, %v6547_v15  ;;  %v6552_v6 = vrot.slane %v5725_v5, 2 }
 0x28d   :  { %v2408_v9 = vsel %vm2333_vm7, %v6546_v42, %v2407_v38  ;;  %v2517_v4 = vpop.permute.xlu1 %2516  ;;  %v2488_v32 = vsel %vm2333_vm7, %v6548_v18, %v2487_v52  ;;  %v3345_v35 = vsel %vm3216_vm14, %v3151_v22, %v3281_v48  ;;  %v6549_v38 = vld [vmem:[#allocation15_spill] sm:$0xff]  ;;  %v6006_v27 = vpop.f32.mrb[92].mxu0  ;;  %v6553_v18 = vld [vmem:[#allocation17_spill] sm:$0xff] }
 0x28e   :  { %2552 = vrot.lane.b32.xlu1 %v2408_v9, %s3980_s3  ;;  %v5999_v1 = vpop.f32.mrb[92].mxu1  ;;  %v2697_v42 = vadd.f32 %v2517_v4, %v6549_v38  ;;  %6550 = vst [vmem:[#allocation14_spill] sm:$0xff] %v6006_v27  ;;  %v6551_v9 = vrot.slane %v5744_v44, 2  ;;  %v3568_v15 = vadd.f32 %v3504_v34, %v3440_v49  ;;  %v3409_v52 = vmul.f32 %v3833_v29, %v3345_v35  ;;  %v6018_v48 = vpop.f32.mrb[93].mxu0  ;;  %v3505_v35 = vld [vmem:[#allocation7 + $0x148] sm:$0xff] }
 0x28f   :  { %v6008_v60 = vpop.f32.mrb[93].mxu1  ;;  %vm3248_vm15 = vcmp.gt.f32.partialorder %v3183_v31, 0.0  ;;  %v3313_v22 = vmul.f32 %v5654_v37, %v3183_v31  ;;  %v2579_v4 = vpop.permute.xlu0 %2578  ;;  %v3081_v38 = vadd.f32 %v6553_v18, %v2696_v59  ;;  %v2410_v44 = vrot.slane %v6006_v27, 1 }
 0x290   :  { %v6015_v25 = vsel %vm2846_vm8, %v6552_v6, %v6551_v9  ;;  %v3082_v54 = vadd.f32 %v6554_v39, %v2697_v42  ;;  %v1992_v7 = vpop.f32.mrb[94].mxu0  ;;  %v2232_v9 = vpop.f32.mrb[94].mxu1  ;;  %3632 = vst.msk [vmem:[#allocation10 + $0x140] sm:$0xff] %vm65_vm0, %v3568_v15  ;;  %v3537_v34 = vadd.f32 %v3473_v21, %v3409_v52  ;;  %v6555_v6 = vld [vmem:[#allocation18_spill] sm:$0xff]  ;;  %v3834_v42 = vld [vmem:[#allocation4 + $0x148] sm:$0xff]  ;;  %v6560_v52 = vrot.slane %v5999_v1, 1 }
 0x291   :  { %v3377_v29 = vsel %vm3248_vm15, %v3183_v31, %v3313_v22  ;;  %v2728_v30 = vadd.f32 %v2579_v4, %v6555_v6  ;;  %v6028_v59 = vpop.f32.mrb[95].mxu0  ;;  %v6030_v39 = vpop.f32.mrb[95].mxu1  ;;  %v3152_v5 = vadd.f32 %v5645_v46, %v3081_v38  ;;  %v2412_v15 = vrot.slane %v1992_v7, 1  ;;  %v6556_v31 = vld [vmem:[#allocation20_spill] sm:$0xff] }
 0x292   :  { %2616 = vrot.lane.b32.xlu1 %v2488_v32, %s3980_s3  ;;  %v3441_v18 = vmul.f32 %v3834_v42, %v3377_v29  ;;  %v3153_v27 = vadd.f32 %v5645_v46, %v3082_v54  ;;  %v2581_v21 = vpop.permute.xlu1 %2580  ;;  %3601 = vst.msk [vmem:[#allocation10 + $0x48] sm:$0xff] %vm65_vm0, %v3537_v34  ;;  %v2492_v22 = vrot.slane %v2232_v9, 1  ;;  %v6557_v7 = vld [vmem:[#allocation16_spill] sm:$0xff]  ;;  %v6558_v34 = vrot.slane %v5967_v0, 1 }
 0x293   :  { %v3113_v32 = vadd.f32 %v6556_v31, %v2728_v30  ;;  %vm3217_vm1 = vcmp.gt.f32.partialorder %v3152_v5, 0.0  ;;  %v3282_v49 = vmul.f32 %v5654_v37, %v3152_v5  ;;  %v2729_v29 = vadd.f32 %v2581_v21, %v6557_v7  ;;  %v3474_v9 = vld [vmem:[#allocation7 + $0x50] sm:$0xff] }
 0x294   :  { %v3569_v6 = vadd.f32 %v3505_v35, %v3441_v18  ;;  %vm3218_vm2 = vcmp.gt.f32.partialorder %v3153_v27, 0.0  ;;  %v3283_v38 = vmul.f32 %v5654_v37, %v3153_v27  ;;  %v2411_v30 = vsel %vm2333_vm7, %v6558_v34, %v2410_v44  ;;  %v6559_v18 = vld [vmem:[#allocation21_spill] sm:$0xff]  ;;  %v3835_v7 = vld [vmem:[#allocation4 + $0x50] sm:$0xff] }
 0x295   :  { %v3184_v54 = vadd.f32 %v5645_v46, %v3113_v32  ;;  %v2519_v42 = vpop.permute.xlu0 %2518  ;;  %v3346_v31 = vsel %vm3217_vm1, %v3152_v5, %v3282_v49  ;;  %2554 = vrot.lane.b32.xlu0 %v2411_v30, %s3980_s3  ;;  %v2413_v35 = vsel %vm2333_vm7, %v2410_v44, %v2412_v15  ;;  %v6561_v32 = vrot.slane %v5973_v24, 1  ;;  %v3475_v34 = vld [vmem:[#allocation7 + $0x58] sm:$0xff]  ;;  %v6562_v15 = vld [vmem:[#allocation22_spill] sm:$0xff] }
 0x296   :  { %3633 = vst.msk [vmem:[#allocation10 + $0x148] sm:$0xff] %vm65_vm0, %v3569_v6  ;;  %v2698_v4 = vadd.f32 %v2519_v42, %v6559_v18  ;;  %v3410_v0 = vmul.f32 %v3835_v7, %v3346_v31  ;;  %v3347_v55 = vsel %vm3218_vm2, %v3153_v27, %v3283_v38  ;;  %2556 = vrot.lane.b32.xlu1 %v2413_v35, %s3980_s3  ;;  %v3836_v49 = vld [vmem:[#allocation4 + $0x58] sm:$0xff]  ;;  %v6563_v30 = vld [vmem:[#allocation26_spill] sm:$0xff]  ;;  %v3506_v31 = vld [vmem:[#allocation7 + $0x150] sm:$0xff]  ;;  %v6565_v27 = vrot.slane %v5784_v16, 2 }
 0x297   :  { %v2491_v21 = vsel %vm2333_vm7, %v6561_v32, %v6560_v52  ;;  %vm3249_vm3 = vcmp.gt.f32.partialorder %v3184_v54, 0.0  ;;  %v3314_v5 = vmul.f32 %v5654_v37, %v3184_v54  ;;  %v3411_v44 = vmul.f32 %v3836_v49, %v3347_v55 }
 0x298   :  { %v3114_v6 = vadd.f32 %v6562_v15, %v2729_v29  ;;  %v3083_v42 = vadd.f32 %v6563_v30, %v2698_v4  ;;  %v6564_v18 = vmov %v6560_v52  ;;  %v3538_v32 = vadd.f32 %v3474_v9, %v3410_v0 }
 0x299   :  { %v2493_v52 = vsel %vm2333_vm7, %v6564_v18, %v2492_v22  ;;  %v3378_v7 = vsel %vm3249_vm3, %v3184_v54, %v3314_v5  ;;  %v2583_v24 = vpop.permute.xlu0 %2582  ;;  %v6566_v38 = vrot.slane %v5771_v13, 2  ;;  %v6567_v55 = vrot.slane %v5792_v2, 2  ;;  %v3837_v22 = vld [vmem:[#allocation4 + $0x150] sm:$0xff]  ;;  %2618 = vrot.lane.b32.xlu0 %v2491_v21, %s3980_s3  ;;  %v6569_v13 = vld [vmem:[#allocation23_spill] sm:$0xff] }
 0x29a   :  { %v6568_v29 = vrot.slane %v5777_v53, 2  ;;  %v3539_v49 = vadd.f32 %v3475_v34, %v3411_v44  ;;  %v3442_v0 = vmul.f32 %v3837_v22, %v3378_v7  ;;  %v3185_v54 = vadd.f32 %v5645_v46, %v3114_v6  ;;  %3602 = vst.msk [vmem:[#allocation10 + $0x50] sm:$0xff] %vm65_vm0, %v3538_v32  ;;  %2620 = vrot.lane.b32.xlu1 %v2493_v52, %s3980_s3  ;;  %v6576_v2 = vld [vmem:[#allocation27_spill] sm:$0xff]  ;;  %v6577_v32 = vld [vmem:[#allocation24_spill] sm:$0xff] }
 0x29b   :  { %v6067_v35 = vsel %vm2846_vm8, %v6566_v38, %v6565_v27  ;;  %v3154_v9 = vadd.f32 %v5645_v46, %v3083_v42  ;;  %v2730_v5 = vadd.f32 %v2583_v24, %v6569_v13  ;;  %v2521_v15 = vpop.permute.xlu1 %2520  ;;  %v6570_v53 = vrot.slane %v5811_v23, 2 }
 0x29c   :  { %v6074_v4 = vsel %vm2846_vm8, %v6568_v29, %v6567_v55  ;;  %v6571_v30 = vmov %v6565_v27  ;;  %v6572_v44 = vrot.slane %v5813_v41, 2  ;;  %v6573_v6 = vmov %v6567_v55  ;;  %3603 = vst.msk [vmem:[#allocation10 + $0x58] sm:$0xff] %vm65_vm0, %v3539_v49 }
 0x29d   :  { %v6087_v34 = vsel %vm2846_vm8, %v6571_v30, %v6570_v53  ;;  %v6574_v42 = vrot.slane %v5879_v50, 2  ;;  %v6575_v18 = vrot.slane %v5825_v40, 2  ;;  %v3570_v16 = vadd.f32 %v3506_v31, %v3442_v0  ;;  %v3507_v31 = vld [vmem:[#allocation7 + $0x158] sm:$0xff] }
 0x29e   :  { %v6094_v21 = vsel %vm2846_vm8, %v6573_v6, %v6572_v44  ;;  %vm3250_vm7 = vcmp.gt.f32.partialorder %v3185_v54, 0.0  ;;  %v3315_v23 = vmul.f32 %v5654_v37, %v3185_v54  ;;  %vm3219_vm4 = vcmp.gt.f32.partialorder %v3154_v9, 0.0  ;;  %v6586_v6 = vld [vmem:[#allocation30_spill] sm:$0xff] }
 0x29f   :  { %v6101_v24 = vsel %vm2846_vm8, %v6575_v18, %v6574_v42  ;;  %v3284_v41 = vmul.f32 %v5654_v37, %v3154_v9  ;;  %v3115_v52 = vadd.f32 %v6576_v2, %v2730_v5  ;;  %v2699_v7 = vadd.f32 %v2521_v15, %v6577_v32  ;;  %3634 = vst.msk [vmem:[#allocation10 + $0x150] sm:$0xff] %vm65_vm0, %v3570_v16  ;;  %v3838_v15 = vld [vmem:[#allocation4 + $0x158] sm:$0xff] }
 0x2a0   :  { %v6578_v27 = vrot.slane %v5887_v12, 2  ;;  %v6579_v40 = vmov %v6574_v42  ;;  %v3379_v55 = vsel %vm3250_vm7, %v3185_v54, %v3315_v23  ;;  %v6580_v29 = vrot.slane %v5872_v58, 2  ;;  %v2585_v42 = vpop.permute.xlu1 %2584  ;;  %v3839_v58 = vld [vmem:[#allocation4 + $0x60] sm:$0xff]  ;;  %v6587_v16 = vld [vmem:[#allocation25_spill] sm:$0xff] }
 0x2a1   :  { %v6581_v49 = vrot.slane %v5832_v8, 2  ;;  %v6582_v0 = vrot.slane %v5889_v10, 2  ;;  %v6584_v13 = vrot.slane %v5930_v43, 2  ;;  %v6585_v5 = vrot.slane %v5914_v63, 2  ;;  %v3476_v8 = vld [vmem:[#allocation7 + $0x60] sm:$0xff] }
 0x2a2   :  { %v6113_v38 = vsel %vm2846_vm8, %v6579_v40, %v6578_v27  ;;  %v6583_v12 = vmov %v6580_v29  ;;  %v3443_v53 = vmul.f32 %v3838_v15, %v3379_v55  ;;  %v3348_v30 = vsel %vm3219_vm4, %v3154_v9, %v3284_v41 }
 0x2a3   :  { %v6121_v22 = vsel %vm2846_vm8, %v6581_v49, %v6580_v29  ;;  %v6128_v50 = vsel %vm2846_vm8, %v6583_v12, %v6582_v0  ;;  %v6135_v54 = vsel %vm2846_vm8, %v6585_v5, %v6584_v13  ;;  %v3186_v44 = vadd.f32 %v5645_v46, %v3115_v52  ;;  %v6592_v29 = vld [vmem:[#allocation31_spill] sm:$0xff] }
 0x2a4   :  { %v3084_v10 = vadd.f32 %v6586_v6, %v2699_v7  ;;  %v3412_v18 = vmul.f32 %v3839_v58, %v3348_v30  ;;  %v2731_v23 = vadd.f32 %v2585_v42, %v6587_v16  ;;  %v6588_v2 = vrot.slane %v5939_v20, 2 }
 0x2a5   :  { %v6589_v63 = vrot.slane %v5925_v45, 2  ;;  %v6590_v27 = vrot.slane %v5960_v62, 2  ;;  %v6591_v9 = vmov %v6584_v13  ;;  %v3571_v52 = vadd.f32 %v3507_v31, %v3443_v53  ;;  %v3508_v13 = vld [vmem:[#allocation7 + $0x160] sm:$0xff]  ;;  %v2525_v16 = vpop.permute.xlu1 %2524 }
 0x2a6   :  { %vm3251_vm5 = vcmp.gt.f32.partialorder %v3186_v44, 0.0  ;;  %v3316_v7 = vmul.f32 %v5654_v37, %v3186_v44  ;;  %v3155_v40 = vadd.f32 %v5645_v46, %v3084_v10  ;;  %v3540_v55 = vadd.f32 %v3476_v8, %v3412_v18  ;;  %v6599_v10 = vld [vmem:[#allocation28_spill] sm:$0xff] }
 0x2a7   :  { %v6145_v32 = vsel %vm2846_vm8, %v6589_v63, %v6588_v2  ;;  %v6152_v41 = vsel %vm2846_vm8, %v6591_v9, %v6590_v27  ;;  %v3116_v49 = vadd.f32 %v6592_v29, %v2731_v23  ;;  %v6593_v45 = vrot.slane %v5962_v51, 2  ;;  %3635 = vst.msk [vmem:[#allocation10 + $0x158] sm:$0xff] %vm65_vm0, %v3571_v52  ;;  %v2523_v51 = vpop.permute.xlu0 %2522  ;;  %v3841_v27 = vld [vmem:[#allocation4 + $0x68] sm:$0xff] }
 0x2a8   :  { %v6594_v0 = vmov %v6588_v2  ;;  %v6595_v43 = vrot.slane %v6018_v48, 2  ;;  %v6596_v12 = vrot.slane %v5971_v3, 2  ;;  %v3380_v5 = vsel %vm3251_vm5, %v3186_v44, %v3316_v7  ;;  %3604 = vst.msk [vmem:[#allocation10 + $0x60] sm:$0xff] %vm65_vm0, %v3540_v55  ;;  %v3840_v3 = vld [vmem:[#allocation4 + $0x160] sm:$0xff]  ;;  %v6605_v55 = vld [vmem:[#allocation33_spill] sm:$0xff] }
 0x2a9   :  { %v6162_v62 = vsel %vm2846_vm8, %v6594_v0, %v6593_v45  ;;  %vm3220_vm6 = vcmp.gt.f32.partialorder %v3155_v40, 0.0  ;;  %v3285_v15 = vmul.f32 %v5654_v37, %v3155_v40  ;;  %v6597_v20 = vrot.slane %v6028_v59, 2  ;;  %v3477_v59 = vld [vmem:[#allocation7 + $0x68] sm:$0xff] }
 0x2aa   :  { %v6169_v31 = vsel %vm2846_vm8, %v6596_v12, %v6595_v43  ;;  %v6598_v53 = vmov %v6595_v43  ;;  %v3444_v30 = vmul.f32 %v3840_v3, %v3380_v5  ;;  %v3187_v6 = vadd.f32 %v5645_v46, %v3116_v49  ;;  %v3842_v43 = vld [vmem:[#allocation4 + $0x168] sm:$0xff] }
 0x2ab   :  { %v6178_v8 = vsel %vm2846_vm8, %v6598_v53, %v6597_v20  ;;  %v2700_v42 = vadd.f32 %v2523_v51, %v6599_v10  ;;  %v6600_v44 = vrot.slane %v6008_v60, 2  ;;  %v6601_v58 = vrot.slane %v5981_v26, 2  ;;  %v6604_v26 = vld [vmem:[#allocation34_spill] sm:$0xff]  ;;  %v2587_v49 = vpop.permute.xlu0 %2586  ;;  %v6606_v60 = vld [vmem:[#allocation29_spill] sm:$0xff]  ;;  %v2589_v20 = vpop.permute.xlu1 %2588  ;;  %v6608_v53 = vld [vmem:[#allocation35_spill] sm:$0xff] }
 0x2ac   :  { %v3349_v48 = vsel %vm3220_vm6, %v3155_v40, %v3285_v15  ;;  %v6602_v23 = vrot.slane %v6030_v39, 2  ;;  %v3572_v46 = vadd.f32 %v3508_v13, %v3444_v30  ;;  %vm3252_vm9 = vcmp.gt.f32.partialorder %v3187_v6, 0.0  ;;  %v3509_v39 = vld [vmem:[#allocation7 + $0x168] sm:$0xff]  ;;  %v6205_v13 = vld [vmem:[%s6404_s4] ss:$0 sm:$0xff]  ;;  %v6607_v15 = vld [vmem:[#allocation36_spill] sm:$0xff] }
 0x2ad   :  { %v6188_v18 = vsel %vm2846_vm8, %v6601_v58, %v6600_v44  ;;  %v6603_v2 = vmov %v6600_v44  ;;  %v3413_v9 = vmul.f32 %v3841_v27, %v3349_v48  ;;  %v3317_v52 = vmul.f32 %v5654_v37, %v3187_v6  ;;  %v6609_v30 = vld [vmem:[#allocation32_spill] sm:$0xff]  ;;  %s3981_s4 = smov [#allocation10]  }
 0x2ae   :  { %v6195_v63 = vsel %vm2846_vm8, %v6603_v2, %v6602_v23  ;;  %v3085_v7 = vadd.f32 %v6604_v26, %v2700_v42  ;;  %v2701_v29 = vadd.f32 %v2525_v16, %v6605_v55  ;;  %3636 = vst.msk [vmem:[#allocation10 + $0x160] sm:$0xff] %vm65_vm0, %v3572_v46  ;;  %v2732_v0 = vadd.f32 %v2587_v49, %v6606_v60  ;;  %v3478_v16 = vld [vmem:[#allocation7 + $0x70] sm:$0xff]  ;;  %s3661_s11 = sshll.u32 %s3981_s4, 4  ;;  %s3662_s11 = int_to_ptr.vmem [resolvable:$true] %s3661_s11 }
 0x2af   :  { %v3541_v40 = vadd.f32 %v3477_v59, %v3413_v9  ;;  %v3381_v45 = vsel %vm3252_vm9, %v3187_v6, %v3317_v52  ;;  %v2733_v6 = vadd.f32 %v2589_v20, %v6609_v30  ;;  %v6610_v59 = vld [vmem:[#allocation37_spill] sm:$0xff]  ;;  %v2527_v46 = vpop.permute.xlu0 %2526  ;;  %v3844_v27 = vld [vmem:[#allocation4 + $0x70] sm:$0xff]  ;;  %s3946_s12 = scalar_lea.vmem %s3662_s11, 8192  ;;  %p3951_p11 = scmp.lt.s32.totalorder %s3662_s11, %s3662_s11 }
 0x2b0   :  { %v3445_v12 = vmul.f32 %v3842_v43, %v3381_v45  ;;  %v3156_v5 = vadd.f32 %v6205_v13, %v3085_v7  ;;  %v3086_v51 = vadd.f32 %v6607_v15, %v2701_v29  ;;  %v3117_v3 = vadd.f32 %v6608_v53, %v2732_v0  ;;  %v3479_v7 = vld [vmem:[#allocation7 + $0x78] sm:$0xff]  ;;  %v6611_v29 = vld [vmem:[#allocation38_spill] sm:$0xff]  ;;  %v3510_v60 = vld [vmem:[#allocation7 + $0x170] sm:$0xff]  ;;  %p3947_p10 = scmp.ne.s32.totalorder %s3662_s11, %s3946_s12  ;;  %p3952_p12 = scmp.lt.s32.totalorder %s3946_s12, %s3946_s12 }
 0x2b1   :  { %3605 = vst.msk [vmem:[#allocation10 + $0x68] sm:$0xff] %vm65_vm0, %v3541_v40  ;;  %v3118_v48 = vadd.f32 %v6610_v59, %v2733_v6  ;;  %v2702_v49 = vadd.f32 %v2527_v46, %v6611_v29  ;;  %v3846_v43 = vld [vmem:[#allocation4 + $0x170] sm:$0xff]  ;;  %v6612_v15 = vld [vmem:[#allocation42_spill] sm:$0xff] }
 0x2b2   :  { %v3573_v10 = vadd.f32 %v3509_v39, %v3445_v12  ;;  %vm3221_vm8 = vcmp.gt.f32.partialorder %v3156_v5, 0.0  ;;  %v3286_v42 = vmul.f32 %v5654_v37, %v3156_v5  ;;  %v3157_v44 = vadd.f32 %v6205_v13, %v3086_v51  ;;  %v3845_v39 = vld [vmem:[#allocation4 + $0x78] sm:$0xff]  ;;  %p3953_p13 = por %p3952_p12, %p3951_p11 }
 0x2b3   :  { %v3188_v58 = vadd.f32 %v6205_v13, %v3117_v3  ;;  %v3189_v26 = vadd.f32 %v6205_v13, %v3118_v48  ;;  %v3087_v51 = vadd.f32 %v6612_v15, %v2702_v49  ;;  %v2591_v20 = vpop.permute.xlu0 %2590  ;;  %v6613_v3 = vld [vmem:[#allocation39_spill] sm:$0xff]  ;;  %v2529_v59 = vpop.permute.xlu1 %2528 }
 0x2b4   :  { %3637 = vst.msk [vmem:[#allocation10 + $0x168] sm:$0xff] %vm65_vm0, %v3573_v10  ;;  %v3350_v23 = vsel %vm3221_vm8, %v3156_v5, %v3286_v42  ;;  %vm3222_vm10 = vcmp.gt.f32.partialorder %v3157_v44, 0.0  ;;  %v3287_v2 = vmul.f32 %v5654_v37, %v3157_v44  ;;  %v2734_v30 = vadd.f32 %v2591_v20, %v6613_v3  ;;  %v3511_v10 = vld [vmem:[#allocation7 + $0x178] sm:$0xff]  ;;  %v3849_v20 = vld [vmem:[#allocation4 + $0x180] sm:$0xff]  ;;  %v6618_v3 = vld [vmem:[#allocation47_spill] sm:$0xff]  ;;  %p3954_p0 = pnand %p3953_p13, %p3947_p10 }
 0x2b5   :  { %v3414_v9 = vmul.f32 %v3844_v27, %v3350_v23  ;;  %vm3253_vm11 = vcmp.gt.f32.partialorder %v3188_v58, 0.0  ;;  %v3318_v52 = vmul.f32 %v5654_v37, %v3188_v58  ;;  %vm3254_vm12 = vcmp.gt.f32.partialorder %v3189_v26, 0.0 }
 0x2b6   :  { %v3351_v55 = vsel %vm3222_vm10, %v3157_v44, %v3287_v2  ;;  %v3319_v5 = vmul.f32 %v5654_v37, %v3189_v26  ;;  %v3158_v44 = vadd.f32 %v6205_v13, %v3087_v51  ;;  %v6615_v2 = vld [vmem:[#allocation40_spill] sm:$0xff] }
 0x2b7   :  { %v3542_v40 = vadd.f32 %v3478_v16, %v3414_v9  ;;  %v3415_v45 = vmul.f32 %v3845_v39, %v3351_v55  ;;  %v3382_v0 = vsel %vm3253_vm11, %v3188_v58, %v3318_v52  ;;  %v3847_v58 = vld [vmem:[#allocation4 + $0x178] sm:$0xff]  ;;  %v6614_v16 = vld [vmem:[#allocation43_spill] sm:$0xff]  ;;  %v2703_v46 = vadd.f32 %v2529_v59, %v6615_v2  ;;  %v3480_v55 = vld [vmem:[#allocation7 + $0x80] sm:$0xff]  ;;  %v2593_v49 = vpop.permute.xlu1 %2592 }
 0x2b8   :  { %v3446_v12 = vmul.f32 %v3846_v43, %v3382_v0  ;;  %v3383_v42 = vsel %vm3254_vm12, %v3189_v26, %v3319_v5  ;;  %v3119_v23 = vadd.f32 %v6614_v16, %v2734_v30  ;;  %vm3223_vm13 = vcmp.gt.f32.partialorder %v3158_v44, 0.0  ;;  %v6616_v26 = vld [vmem:[#allocation46_spill] sm:$0xff]  ;;  %v6617_v0 = vld [vmem:[#allocation41_spill] sm:$0xff] }
 0x2b9   :  { %3606 = vst.msk [vmem:[#allocation10 + $0x70] sm:$0xff] %vm65_vm0, %v3542_v40  ;;  %v3543_v53 = vadd.f32 %v3479_v7, %v3415_v45  ;;  %v3447_v48 = vmul.f32 %v3847_v58, %v3383_v42  ;;  %v3288_v27 = vmul.f32 %v5654_v37, %v3158_v44  ;;  %v3088_v7 = vadd.f32 %v6616_v26, %v2703_v46  ;;  %v3848_v40 = vld [vmem:[#allocation4 + $0x80] sm:$0xff] }
 0x2ba   :  { %v3574_v6 = vadd.f32 %v3510_v60, %v3446_v12  ;;  %v3190_v52 = vadd.f32 %v6205_v13, %v3119_v23  ;;  %v2735_v43 = vadd.f32 %v2593_v49, %v6617_v0  ;;  %v3512_v5 = vld [vmem:[#allocation7 + $0x180] sm:$0xff]  ;;  %v6622_v49 = vld [vmem:[#allocation52_spill] sm:$0xff] }
 0x2bb   :  { %3607 = vst.msk [vmem:[#allocation10 + $0x78] sm:$0xff] %vm65_vm0, %v3543_v53  ;;  %v3575_v9 = vadd.f32 %v3511_v10, %v3447_v48  ;;  %v3352_v29 = vsel %vm3223_vm13, %v3158_v44, %v3288_v27  ;;  %v3159_v60 = vadd.f32 %v6205_v13, %v3088_v7  ;;  %v3481_v10 = vld [vmem:[#allocation7 + $0x88] sm:$0xff]  ;;  %v6619_v44 = vld [vmem:[#allocation44_spill] sm:$0xff]  ;;  %v6620_v46 = vld [vmem:[#allocation50_spill] sm:$0xff] }
 0x2bc   :  { %3638 = vst.msk [vmem:[#allocation10 + $0x170] sm:$0xff] %vm65_vm0, %v3574_v6  ;;  %v3416_v39 = vmul.f32 %v3848_v40, %v3352_v29  ;;  %vm3255_vm14 = vcmp.gt.f32.partialorder %v3190_v52, 0.0  ;;  %v3320_v45 = vmul.f32 %v5654_v37, %v3190_v52  ;;  %v3120_v30 = vadd.f32 %v6618_v3, %v2735_v43  ;;  %v2531_v6 = vpop.permute.xlu0 %2530  ;;  %v3850_v48 = vld [vmem:[#allocation4 + $0x88] sm:$0xff]  ;;  %v6625_v3 = vld [vmem:[#allocation48_spill] sm:$0xff] }
 0x2bd   :  { %3639 = vst.msk [vmem:[#allocation10 + $0x178] sm:$0xff] %vm65_vm0, %v3575_v9  ;;  %vm3224_vm15 = vcmp.gt.f32.partialorder %v3159_v60, 0.0  ;;  %v3289_v51 = vmul.f32 %v5654_v37, %v3159_v60  ;;  %v2704_v59 = vadd.f32 %v2531_v6, %v6619_v44  ;;  %v2533_v2 = vpop.permute.xlu1 %2532  ;;  %v6621_v9 = vld [vmem:[#allocation49_spill] sm:$0xff] }
 0x2be   :  { %v3544_v12 = vadd.f32 %v3480_v55, %v3416_v39  ;;  %v3384_v15 = vsel %vm3255_vm14, %v3190_v52, %v3320_v45  ;;  %v3191_v23 = vadd.f32 %v6205_v13, %v3120_v30  ;;  %v2705_v52 = vadd.f32 %v2533_v2, %v6621_v9  ;;  %v6623_v39 = vld [vmem:[#allocation45_spill] sm:$0xff]  ;;  %v6627_v9 = vld [vmem:[#allocation54_spill] sm:$0xff] }
 0x2bf   :  { %v3448_v53 = vmul.f32 %v3849_v20, %v3384_v15  ;;  %v3353_v42 = vsel %vm3224_vm15, %v3159_v60, %v3289_v51  ;;  %v3089_v27 = vadd.f32 %v6620_v46, %v2704_v59  ;;  %v3513_v60 = vld [vmem:[#allocation7 + $0x188] sm:$0xff]  ;;  %v3852_v59 = vld [vmem:[#allocation4 + $0x90] sm:$0xff]  ;;  %v3483_v46 = vld [vmem:[#allocation7 + $0x98] sm:$0xff] }
 0x2c0   :  { %3608 = vst.msk [vmem:[#allocation10 + $0x80] sm:$0xff] %vm65_vm0, %v3544_v12  ;;  %v3417_v16 = vmul.f32 %v3850_v48, %v3353_v42  ;;  %vm3256_vm1 = vcmp.gt.f32.partialorder %v3191_v23, 0.0  ;;  %v3321_v7 = vmul.f32 %v5654_v37, %v3191_v23  ;;  %v2595_v55 = vpop.permute.xlu0 %2594  ;;  %v3090_v40 = vadd.f32 %v6622_v49, %v2705_v52  ;;  %v3851_v12 = vld [vmem:[#allocation4 + $0x188] sm:$0xff] }
 0x2c1   :  { %v3576_v58 = vadd.f32 %v3512_v5, %v3448_v53  ;;  %v3160_v29 = vadd.f32 %v6205_v13, %v3089_v27  ;;  %v2736_v45 = vadd.f32 %v2595_v55, %v6623_v39  ;;  %v2597_v43 = vpop.permute.xlu1 %2596  ;;  %v6624_v20 = vld [vmem:[#allocation51_spill] sm:$0xff] }
 0x2c2   :  { %v3545_v26 = vadd.f32 %v3481_v10, %v3417_v16  ;;  %v3385_v0 = vsel %vm3256_vm1, %v3191_v23, %v3321_v7  ;;  %v3161_v51 = vadd.f32 %v6205_v13, %v3090_v40  ;;  %v2737_v30 = vadd.f32 %v2597_v43, %v6625_v3  ;;  %v3482_v10 = vld [vmem:[#allocation7 + $0x90] sm:$0xff]  ;;  %v6626_v16 = vld [vmem:[#allocation53_spill] sm:$0xff]  ;;  %v6628_v40 = vld [vmem:[#allocation58_spill] sm:$0xff] }
 0x2c3   :  { %3640 = vst.msk [vmem:[#allocation10 + $0x180] sm:$0xff] %vm65_vm0, %v3576_v58  ;;  %v3449_v5 = vmul.f32 %v3851_v12, %v3385_v0  ;;  %vm3225_vm2 = vcmp.gt.f32.partialorder %v3160_v29, 0.0  ;;  %v3290_v15 = vmul.f32 %v5654_v37, %v3160_v29  ;;  %v3121_v53 = vadd.f32 %v6624_v20, %v2736_v45  ;;  %v3853_v7 = vld [vmem:[#allocation4 + $0x98] sm:$0xff]  ;;  %v3854_v12 = vld [vmem:[#allocation4 + $0x190] sm:$0xff]  ;;  %v6629_v20 = vld [vmem:[#allocation55_spill] sm:$0xff] }
 0x2c4   :  { %3609 = vst.msk [vmem:[#allocation10 + $0x88] sm:$0xff] %vm65_vm0, %v3545_v26  ;;  %vm3226_vm3 = vcmp.gt.f32.partialorder %v3161_v51, 0.0  ;;  %v3291_v44 = vmul.f32 %v5654_v37, %v3161_v51  ;;  %v3122_v23 = vadd.f32 %v6626_v16, %v2737_v30  ;;  %v3515_v30 = vld [vmem:[#allocation7 + $0x198] sm:$0xff] }
 0x2c5   :  { %v3577_v6 = vadd.f32 %v3513_v60, %v3449_v5  ;;  %v3354_v42 = vsel %vm3225_vm2, %v3160_v29, %v3290_v15  ;;  %v3192_v48 = vadd.f32 %v6205_v13, %v3121_v53  ;;  %v2535_v2 = vpop.permute.xlu0 %2534  ;;  %v3514_v60 = vld [vmem:[#allocation7 + $0x190] sm:$0xff] }
 0x2c6   :  { %v3418_v58 = vmul.f32 %v3852_v59, %v3354_v42  ;;  %v3355_v27 = vsel %vm3226_vm3, %v3161_v51, %v3291_v44  ;;  %v2706_v52 = vadd.f32 %v2535_v2, %v6627_v9  ;;  %v3193_v49 = vadd.f32 %v6205_v13, %v3122_v23  ;;  %v3855_v42 = vld [vmem:[#allocation4 + $0x198] sm:$0xff]  ;;  %v6630_v59 = vld [vmem:[#allocation59_spill] sm:$0xff] }
 0x2c7   :  { %3641 = vst.msk [vmem:[#allocation10 + $0x188] sm:$0xff] %vm65_vm0, %v3577_v6  ;;  %v3419_v55 = vmul.f32 %v3853_v7, %v3355_v27  ;;  %vm3257_vm7 = vcmp.gt.f32.partialorder %v3192_v48, 0.0  ;;  %v3322_v29 = vmul.f32 %v5654_v37, %v3192_v48 }
 0x2c8   :  { %v3546_v26 = vadd.f32 %v3482_v10, %v3418_v58  ;;  %v3091_v39 = vadd.f32 %v6628_v40, %v2706_v52  ;;  %vm3258_vm4 = vcmp.gt.f32.partialorder %v3193_v49, 0.0  ;;  %v3323_v15 = vmul.f32 %v5654_v37, %v3193_v49  ;;  %v6631_v52 = vld [vmem:[#allocation56_spill] sm:$0xff]  ;;  %v3516_v40 = vld [vmem:[#allocation7 + $0x1a0] sm:$0xff] }
 0x2c9   :  { %v3547_v45 = vadd.f32 %v3483_v46, %v3419_v55  ;;  %v3386_v0 = vsel %vm3257_vm7, %v3192_v48, %v3322_v29  ;;  %v2599_v43 = vpop.permute.xlu0 %2598  ;;  %v3484_v48 = vld [vmem:[#allocation7 + $0xa0] sm:$0xff] }
 0x2ca   :  { %3610 = vst.msk [vmem:[#allocation10 + $0x90] sm:$0xff] %vm65_vm0, %v3546_v26  ;;  %v3450_v5 = vmul.f32 %v3854_v12, %v3386_v0  ;;  %v3162_v51 = vadd.f32 %v6205_v13, %v3091_v39  ;;  %v2738_v53 = vadd.f32 %v2599_v43, %v6629_v20  ;;  %v3387_v6 = vsel %vm3258_vm4, %v3193_v49, %v3323_v15  ;;  %v3856_v46 = vld [vmem:[#allocation4 + $0xa0] sm:$0xff]  ;;  %v3485_v20 = vld [vmem:[#allocation7 + $0xa8] sm:$0xff] }
 0x2cb   :  { %3611 = vst.msk [vmem:[#allocation10 + $0x98] sm:$0xff] %vm65_vm0, %v3547_v45  ;;  %v3451_v44 = vmul.f32 %v3855_v42, %v3387_v6  ;;  %v3857_v43 = vld [vmem:[#allocation4 + $0x1a0] sm:$0xff]  ;;  %v3858_v6 = vld [vmem:[#allocation4 + $0xa8] sm:$0xff] }
 0x2cc   :  { %v3578_v3 = vadd.f32 %v3514_v60, %v3450_v5  ;;  %vm3227_vm5 = vcmp.gt.f32.partialorder %v3162_v51, 0.0  ;;  %v3292_v10 = vmul.f32 %v5654_v37, %v3162_v51  ;;  %v3123_v58 = vadd.f32 %v6630_v59, %v2738_v53  ;;  %v2537_v23 = vpop.permute.xlu1 %2536  ;;  %v6632_v60 = vld [vmem:[#allocation57_spill] sm:$0xff] }
 0x2cd   :  { %v3579_v2 = vadd.f32 %v3515_v30, %v3451_v44  ;;  %v2707_v26 = vadd.f32 %v2537_v23, %v6631_v52 }
 0x2ce   :  { %3642 = vst.msk [vmem:[#allocation10 + $0x190] sm:$0xff] %vm65_vm0, %v3578_v3  ;;  %v3356_v16 = vsel %vm3227_vm5, %v3162_v51, %v3292_v10  ;;  %v3194_v9 = vadd.f32 %v6205_v13, %v3123_v58 }
 0x2cf   :  { %v3420_v27 = vmul.f32 %v3856_v46, %v3356_v16  ;;  %3643 = vst.msk [vmem:[#allocation10 + $0x198] sm:$0xff] %vm65_vm0, %v3579_v2  ;;  %v3092_v29 = vadd.f32 %v5710_v47, %v2707_v26  ;;  %v3517_v16 = vld [vmem:[#allocation7 + $0x1a8] sm:$0xff] }
 0x2d0   :  { %vm3259_vm6 = vcmp.gt.f32.partialorder %v3194_v9, 0.0  ;;  %v3324_v55 = vmul.f32 %v5654_v37, %v3194_v9  ;;  %v2601_v49 = vpop.permute.xlu1 %2600  ;;  %v3859_v46 = vld [vmem:[#allocation4 + $0x1a8] sm:$0xff] }
 0x2d1   :  { %v3548_v7 = vadd.f32 %v3484_v48, %v3420_v27  ;;  %v3163_v45 = vadd.f32 %v6205_v13, %v3092_v29  ;;  %v2739_v0 = vadd.f32 %v2601_v49, %v6632_v60  ;;  %v3486_v29 = vld [vmem:[#allocation7 + $0xb0] sm:$0xff] }
 0x2d2   :  { %v3388_v39 = vsel %vm3259_vm6, %v3194_v9, %v3324_v55 }
 0x2d3   :  { %3612 = vst.msk [vmem:[#allocation10 + $0xa0] sm:$0xff] %vm65_vm0, %v3548_v7  ;;  %v3452_v12 = vmul.f32 %v3857_v43, %v3388_v39  ;;  %vm3228_vm9 = vcmp.gt.f32.partialorder %v3163_v45, 0.0  ;;  %v3293_v5 = vmul.f32 %v5654_v37, %v3163_v45  ;;  %v3124_v15 = vadd.f32 %v5718_v11, %v2739_v0  ;;  %v3860_v39 = vld [vmem:[#allocation4 + $0xb0] sm:$0xff] }
 0x2d4   :  { %v2539_v3 = vpop.permute.xlu0 %2538 }
 0x2d5   :  { %v3580_v51 = vadd.f32 %v3516_v40, %v3452_v12  ;;  %v3357_v53 = vsel %vm3228_vm9, %v3163_v45, %v3293_v5  ;;  %v3195_v47 = vadd.f32 %v6205_v13, %v3124_v15  ;;  %v2708_v42 = vadd.f32 %v2539_v3, %v5687_v57  ;;  %v3861_v12 = vld [vmem:[#allocation4 + $0xb8] sm:$0xff]  ;;  %v6633_v15 = vld [vmem:[#allocation60_spill] sm:$0xff] }
 0x2d6   :  { %v2541_v30 = vpop.permute.xlu1 %2540  ;;  %v3421_v10 = vmul.f32 %v3858_v6, %v3357_v53 }
 0x2d7   :  { %3644 = vst.msk [vmem:[#allocation10 + $0x1a0] sm:$0xff] %vm65_vm0, %v3580_v51  ;;  %v2709_v44 = vadd.f32 %v2541_v30, %v5723_v56  ;;  %vm3260_vm8 = vcmp.gt.f32.partialorder %v3195_v47, 0.0  ;;  %v3325_v59 = vmul.f32 %v5654_v37, %v3195_v47  ;;  %v3093_v11 = vadd.f32 %v5851_v36, %v2708_v42  ;;  %v3518_v30 = vld [vmem:[#allocation7 + $0x1b0] sm:$0xff] }
 0x2d8   :  { %v3549_v58 = vadd.f32 %v3485_v20, %v3421_v10  ;;  %v2603_v2 = vpop.permute.xlu0 %2602  ;;  %v6634_v10 = vld [vmem:[#allocation61_spill] sm:$0xff] }
 0x2d9   :  { %v3094_v48 = vadd.f32 %v5860_v33, %v2709_v44  ;;  %v3389_v23 = vsel %vm3260_vm8, %v3195_v47, %v3325_v59  ;;  %v3164_v9 = vadd.f32 %v6205_v13, %v3093_v11  ;;  %v2740_v56 = vadd.f32 %v2603_v2, %v5694_v14  ;;  %v3487_v14 = vld [vmem:[#allocation7 + $0xb8] sm:$0xff]  ;;  %v3862_v59 = vld [vmem:[#allocation4 + $0x1b0] sm:$0xff] }
 0x2da   :  { %3613 = vst.msk [vmem:[#allocation10 + $0xa8] sm:$0xff] %vm65_vm0, %v3549_v58  ;;  %v3453_v27 = vmul.f32 %v3859_v46, %v3389_v23 }
 0x2db   :  { %v3165_v57 = vadd.f32 %v6205_v13, %v3094_v48  ;;  %vm3229_vm10 = vcmp.gt.f32.partialorder %v3164_v9, 0.0  ;;  %v3294_v36 = vmul.f32 %v5654_v37, %v3164_v9  ;;  %v3125_v7 = vadd.f32 %v5867_v61, %v2740_v56  ;;  %v6635_v48 = vld [vmem:[#allocation62_spill] sm:$0xff] }
 0x2dc   :  { %v3581_v26 = vadd.f32 %v3517_v16, %v3453_v27  ;;  %v3863_v27 = vld [vmem:[#allocation4 + $0x1b8] sm:$0xff] }
 0x2dd   :  { %v2605_v52 = vpop.permute.xlu1 %2604  ;;  %vm3230_vm11 = vcmp.gt.f32.partialorder %v3165_v57, 0.0  ;;  %v3295_v33 = vmul.f32 %v5654_v37, %v3165_v57  ;;  %v3358_v49 = vsel %vm3229_vm10, %v3164_v9, %v3294_v36  ;;  %v3196_v0 = vadd.f32 %v6205_v13, %v3125_v7 }
 0x2de   :  { %v2741_v55 = vadd.f32 %v2605_v52, %v5713_v17  ;;  %3645 = vst.msk [vmem:[#allocation10 + $0x1a8] sm:$0xff] %vm65_vm0, %v3581_v26  ;;  %v3422_v45 = vmul.f32 %v3860_v39, %v3358_v49  ;;  %v3864_v49 = vld [vmem:[#allocation4 + $0xc0] sm:$0xff] }
 0x2df   :  { %v3359_v60 = vsel %vm3230_vm11, %v3165_v57, %v3295_v33  ;;  %vm3261_vm12 = vcmp.gt.f32.partialorder %v3196_v0, 0.0  ;;  %v3326_v17 = vmul.f32 %v5654_v37, %v3196_v0  ;;  %v3488_v33 = vld [vmem:[#allocation7 + $0xc0] sm:$0xff] }
 0x2e0   :  { %v2543_v40 = vpop.permute.xlu0 %2542  ;;  %v3126_v43 = vadd.f32 %v6015_v25, %v2741_v55  ;;  %v3423_v5 = vmul.f32 %v3861_v12, %v3359_v60  ;;  %v3550_v61 = vadd.f32 %v3486_v29, %v3422_v45  ;;  %v6636_v55 = vld [vmem:[#allocation63_spill] sm:$0xff] }
 0x2e1   :  { %v2710_v51 = vadd.f32 %v2543_v40, %v6633_v15  ;;  %v3390_v6 = vsel %vm3261_vm12, %v3196_v0, %v3326_v17  ;;  %v3489_v15 = vld [vmem:[#allocation7 + $0xc8] sm:$0xff] }
 0x2e2   :  { %v3197_v20 = vadd.f32 %v6205_v13, %v3126_v43  ;;  %v3551_v53 = vadd.f32 %v3487_v14, %v3423_v5  ;;  %3614 = vst.msk [vmem:[#allocation10 + $0xb0] sm:$0xff] %vm65_vm0, %v3550_v61  ;;  %v3454_v58 = vmul.f32 %v3862_v59, %v3390_v6  ;;  %v3520_v14 = vld [vmem:[#allocation7 + $0x1c0] sm:$0xff] }
 0x2e3   :  { %v3095_v47 = vadd.f32 %v6067_v35, %v2710_v51  ;;  %v2545_v44 = vpop.permute.xlu1 %2544  ;;  %v3519_v35 = vld [vmem:[#allocation7 + $0x1b8] sm:$0xff]  ;;  %v3865_v43 = vld [vmem:[#allocation4 + $0x1c0] sm:$0xff] }
 0x2e4   :  { %v2607_v3 = vpop.permute.xlu0 %2606  ;;  %vm3262_vm13 = vcmp.gt.f32.partialorder %v3197_v20, 0.0  ;;  %v3327_v25 = vmul.f32 %v5654_v37, %v3197_v20  ;;  %3615 = vst.msk [vmem:[#allocation10 + $0xb8] sm:$0xff] %vm65_vm0, %v3551_v53  ;;  %v2711_v16 = vadd.f32 %v2545_v44, %v6635_v48  ;;  %v3582_v46 = vadd.f32 %v3518_v30, %v3454_v58  ;;  %v6637_v48 = vld [vmem:[#allocation64_spill] sm:$0xff] }
 0x2e5   :  { %v2742_v42 = vadd.f32 %v2607_v3, %v6634_v10  ;;  %v3166_v11 = vadd.f32 %v6205_v13, %v3095_v47 }
 0x2e6   :  { %v3391_v23 = vsel %vm3262_vm13, %v3197_v20, %v3327_v25  ;;  %v3096_v52 = vadd.f32 %v6087_v34, %v2711_v16  ;;  %3646 = vst.msk [vmem:[#allocation10 + $0x1b0] sm:$0xff] %vm65_vm0, %v3582_v46  ;;  %v3866_v20 = vld [vmem:[#allocation4 + $0xc8] sm:$0xff]  ;;  %v6638_v46 = vld [vmem:[#allocation65_spill] sm:$0xff] }
 0x2e7   :  { %v3127_v2 = vadd.f32 %v6074_v4, %v2742_v42  ;;  %v3455_v9 = vmul.f32 %v3863_v27, %v3391_v23  ;;  %vm3231_vm14 = vcmp.gt.f32.partialorder %v3166_v11, 0.0  ;;  %v3296_v57 = vmul.f32 %v5654_v37, %v3166_v11  ;;  %v2609_v26 = vpop.permute.xlu1 %2608  ;;  %v3521_v25 = vld [vmem:[#allocation7 + $0x1c8] sm:$0xff] }
 0x2e8   :  { %v2743_v29 = vadd.f32 %v2609_v26, %v6636_v55  ;;  %v3167_v39 = vadd.f32 %v6205_v13, %v3096_v52  ;;  %v3867_v42 = vld [vmem:[#allocation4 + $0x1c8] sm:$0xff]  ;;  %v3491_v26 = vld [vmem:[#allocation7 + $0xd8] sm:$0xff] }
 0x2e9   :  { %v3198_v56 = vadd.f32 %v6205_v13, %v3127_v2  ;;  %v3583_v36 = vadd.f32 %v3519_v35, %v3455_v9  ;;  %v3360_v7 = vsel %vm3231_vm14, %v3166_v11, %v3296_v57  ;;  %v3869_v55 = vld [vmem:[#allocation4 + $0xd8] sm:$0xff] }
 0x2ea   :  { %v3424_v4 = vmul.f32 %v3864_v49, %v3360_v7  ;;  %v3128_v45 = vadd.f32 %v6094_v21, %v2743_v29  ;;  %vm3232_vm1 = vcmp.gt.f32.partialorder %v3167_v39, 0.0  ;;  %v3297_v0 = vmul.f32 %v5654_v37, %v3167_v39 }
 0x2eb   :  { %vm3263_vm15 = vcmp.gt.f32.partialorder %v3198_v56, 0.0  ;;  %v3328_v40 = vmul.f32 %v5654_v37, %v3198_v56  ;;  %3647 = vst.msk [vmem:[#allocation10 + $0x1b8] sm:$0xff] %vm65_vm0, %v3583_v36 }
 0x2ec   :  { %v3552_v34 = vadd.f32 %v3488_v33, %v3424_v4  ;;  %v3199_v5 = vadd.f32 %v6205_v13, %v3128_v45  ;;  %v3361_v51 = vsel %vm3232_vm1, %v3167_v39, %v3297_v0 }
 0x2ed   :  { %v3392_v60 = vsel %vm3263_vm15, %v3198_v56, %v3328_v40  ;;  %v3425_v53 = vmul.f32 %v3866_v20, %v3361_v51  ;;  %v3490_v56 = vld [vmem:[#allocation7 + $0xd0] sm:$0xff]  ;;  %v6639_v40 = vld [vmem:[#allocation66_spill] sm:$0xff] }
 0x2ee   :  { %v3456_v12 = vmul.f32 %v3865_v43, %v3392_v60  ;;  %3616 = vst.msk [vmem:[#allocation10 + $0xc0] sm:$0xff] %vm65_vm0, %v3552_v34  ;;  %vm3264_vm2 = vcmp.gt.f32.partialorder %v3199_v5, 0.0  ;;  %v3329_v21 = vmul.f32 %v5654_v37, %v3199_v5  ;;  %v2549_v47 = vpop.permute.xlu1 %2548  ;;  %v3870_v60 = vld [vmem:[#allocation4 + $0x1d0] sm:$0xff] }
 0x2ef   :  { %v2547_v61 = vpop.permute.xlu0 %2546  ;;  %v2713_v30 = vadd.f32 %v2549_v47, %v5870_v19  ;;  %v3553_v6 = vadd.f32 %v3489_v15, %v3425_v53  ;;  %v6640_v15 = vld [vmem:[#allocation67_spill] sm:$0xff]  ;;  %v3871_v47 = vld [vmem:[#allocation4 + $0x1d8] sm:$0xff] }
 0x2f0   :  { %v3584_v17 = vadd.f32 %v3520_v14, %v3456_v12  ;;  %v2712_v3 = vadd.f32 %v2547_v61, %v5818_v28  ;;  %v3393_v10 = vsel %vm3264_vm2, %v3199_v5, %v3329_v21  ;;  %v3522_v14 = vld [vmem:[#allocation7 + $0x1d0] sm:$0xff] }
 0x2f1   :  { %v3457_v44 = vmul.f32 %v3867_v42, %v3393_v10  ;;  %v3098_v58 = vadd.f32 %v6113_v38, %v2713_v30  ;;  %3617 = vst.msk [vmem:[#allocation10 + $0xc8] sm:$0xff] %vm65_vm0, %v3553_v6  ;;  %v6641_v6 = vld [vmem:[#allocation68_spill] sm:$0xff] }
 0x2f2   :  { %3648 = vst.msk [vmem:[#allocation10 + $0x1c0] sm:$0xff] %vm65_vm0, %v3584_v17  ;;  %v3097_v59 = vadd.f32 %v6101_v24, %v2712_v3  ;;  %v3523_v17 = vld [vmem:[#allocation7 + $0x1d8] sm:$0xff] }
 0x2f3   :  { %v2611_v11 = vpop.permute.xlu0 %2610  ;;  %v3585_v35 = vadd.f32 %v3521_v25, %v3457_v44  ;;  %v3169_v19 = vadd.f32 %v6205_v13, %v3098_v58 }
 0x2f4   :  { %v2744_v16 = vadd.f32 %v2611_v11, %v6637_v48  ;;  %v3168_v28 = vadd.f32 %v6205_v13, %v3097_v59  ;;  %v3492_v59 = vld [vmem:[#allocation7 + $0xe0] sm:$0xff] }
 0x2f5   :  { %3649 = vst.msk [vmem:[#allocation10 + $0x1c8] sm:$0xff] %vm65_vm0, %v3585_v35  ;;  %vm3234_vm7 = vcmp.gt.f32.partialorder %v3169_v19, 0.0  ;;  %v3299_v38 = vmul.f32 %v5654_v37, %v3169_v19  ;;  %v3872_v48 = vld [vmem:[#allocation4 + $0xe0] sm:$0xff] }
 0x2f6   :  { %v2613_v23 = vpop.permute.xlu1 %2612  ;;  %v3129_v2 = vadd.f32 %v6121_v22, %v2744_v16  ;;  %vm3233_vm3 = vcmp.gt.f32.partialorder %v3168_v28, 0.0  ;;  %v3298_v24 = vmul.f32 %v5654_v37, %v3168_v28  ;;  %v3868_v22 = vld [vmem:[#allocation4 + $0xd0] sm:$0xff] }
 0x2f7   :  { %v2745_v27 = vadd.f32 %v2613_v23, %v6638_v46  ;;  %v3363_v36 = vsel %vm3234_vm7, %v3169_v19, %v3299_v38 }
 0x2f8   :  { %v3200_v9 = vadd.f32 %v6205_v13, %v3129_v2  ;;  %v3362_v52 = vsel %vm3233_vm3, %v3168_v28, %v3298_v24  ;;  %v3427_v29 = vmul.f32 %v3869_v55, %v3363_v36  ;;  %v6642_v28 = vld [vmem:[#allocation69_spill] sm:$0xff]  ;;  %v3524_v2 = vld [vmem:[#allocation7 + $0x1e0] sm:$0xff] }
 0x2f9   :  { %v3130_v57 = vadd.f32 %v6128_v50, %v2745_v27  ;;  %v2551_v33 = vpop.permute.xlu0 %2550  ;;  %v3426_v7 = vmul.f32 %v3868_v22, %v3362_v52  ;;  %v3873_v27 = vld [vmem:[#allocation4 + $0x1e0] sm:$0xff] }
 0x2fa   :  { %vm3265_vm4 = vcmp.gt.f32.partialorder %v3200_v9, 0.0  ;;  %v3330_v49 = vmul.f32 %v5654_v37, %v3200_v9  ;;  %v2714_v39 = vadd.f32 %v2551_v33, %v6639_v40  ;;  %v3555_v34 = vadd.f32 %v3491_v26, %v3427_v29  ;;  %v3874_v26 = vld [vmem:[#allocation4 + $0xe8] sm:$0xff]  ;;  %v6643_v22 = vld [vmem:[#allocation70_spill] sm:$0xff] }
 0x2fb   :  { %v3201_v4 = vadd.f32 %v6205_v13, %v3130_v57  ;;  %v3554_v45 = vadd.f32 %v3490_v56, %v3426_v7  ;;  %v6644_v29 = vld [vmem:[#allocation14_spill] sm:$0xff] }
 0x2fc   :  { %v3394_v50 = vsel %vm3265_vm4, %v3200_v9, %v3330_v49  ;;  %v3099_v12 = vadd.f32 %v6135_v54, %v2714_v39  ;;  %3619 = vst.msk [vmem:[#allocation10 + $0xd8] sm:$0xff] %vm65_vm0, %v3555_v34  ;;  %v3493_v9 = vld [vmem:[#allocation7 + $0xe8] sm:$0xff] }
 0x2fd   :  { %v3458_v0 = vmul.f32 %v3870_v60, %v3394_v50  ;;  %vm3266_vm5 = vcmp.gt.f32.partialorder %v3201_v4, 0.0  ;;  %v3331_v43 = vmul.f32 %v5654_v37, %v3201_v4  ;;  %v2615_v5 = vpop.permute.xlu0 %2614  ;;  %3618 = vst.msk [vmem:[#allocation10 + $0xd0] sm:$0xff] %vm65_vm0, %v3554_v45  ;;  %v3525_v34 = vld [vmem:[#allocation7 + $0x1e8] sm:$0xff] }
 0x2fe   :  { %v2746_v51 = vadd.f32 %v2615_v5, %v6640_v15  ;;  %v3170_v53 = vadd.f32 %v6205_v13, %v3099_v12  ;;  %v6645_v60 = vld [vmem:[#allocation71_spill] sm:$0xff] }
 0x2ff   :  { %v3586_v61 = vadd.f32 %v3522_v14, %v3458_v0  ;;  %v3395_v20 = vsel %vm3266_vm5, %v3201_v4, %v3331_v43  ;;  %v3875_v12 = vld [vmem:[#allocation4 + $0x1e8] sm:$0xff] }
 0x300   :  { %v2553_v21 = vpop.permute.xlu1 %2552  ;;  %v3459_v3 = vmul.f32 %v3871_v47, %v3395_v20  ;;  %v3131_v30 = vadd.f32 %v6145_v32, %v2746_v51  ;;  %vm3235_vm6 = vcmp.gt.f32.partialorder %v3170_v53, 0.0  ;;  %v3300_v54 = vmul.f32 %v5654_v37, %v3170_v53 }
 0x301   :  { %v2715_v25 = vadd.f32 %v2553_v21, %v6641_v6  ;;  %3650 = vst.msk [vmem:[#allocation10 + $0x1d0] sm:$0xff] %vm65_vm0, %v3586_v61 }
 0x302   :  { %v3587_v10 = vadd.f32 %v3523_v17, %v3459_v3  ;;  %v3202_v42 = vadd.f32 %v6205_v13, %v3131_v30  ;;  %v3364_v58 = vsel %vm3235_vm6, %v3170_v53, %v3300_v54  ;;  %v3494_v53 = vld [vmem:[#allocation7 + $0xf0] sm:$0xff]  ;;  %v3877_v54 = vld [vmem:[#allocation4 + $0xf8] sm:$0xff] }
 0x303   :  { %v3100_v44 = vadd.f32 %v6152_v41, %v2715_v25  ;;  %v3428_v16 = vmul.f32 %v3872_v48, %v3364_v58  ;;  %v3876_v3 = vld [vmem:[#allocation4 + $0xf0] sm:$0xff] }
 0x304   :  { %v2617_v11 = vpop.permute.xlu1 %2616  ;;  %3651 = vst.msk [vmem:[#allocation10 + $0x1d8] sm:$0xff] %vm65_vm0, %v3587_v10  ;;  %vm3267_vm9 = vcmp.gt.f32.partialorder %v3202_v42, 0.0  ;;  %v3332_v32 = vmul.f32 %v5654_v37, %v3202_v42 }
 0x305   :  { %v3171_v35 = vadd.f32 %v6205_v13, %v3100_v44  ;;  %v2747_v19 = vadd.f32 %v2617_v11, %v6642_v28  ;;  %v3556_v23 = vadd.f32 %v3492_v59, %v3428_v16  ;;  %v3526_v59 = vld [vmem:[#allocation7 + $0x1f0] sm:$0xff]  ;;  %v3527_v16 = vld [vmem:[#allocation7 + $0x1f8] sm:$0xff] }
 0x306   :  { %v3396_v46 = vsel %vm3267_vm9, %v3202_v42, %v3332_v32  ;;  %v3878_v11 = vld [vmem:[#allocation4 + $0x1f0] sm:$0xff] }
 0x307   :  { %vm3236_vm8 = vcmp.gt.f32.partialorder %v3171_v35, 0.0  ;;  %v3301_v41 = vmul.f32 %v5654_v37, %v3171_v35  ;;  %v3460_v24 = vmul.f32 %v3873_v27, %v3396_v46  ;;  %v3132_v38 = vadd.f32 %v6162_v62, %v2747_v19  ;;  %3620 = vst.msk [vmem:[#allocation10 + $0xe0] sm:$0xff] %vm65_vm0, %v3556_v23  ;;  %v2555_v56 = vpop.permute.xlu0 %2554 }
 0x308   :  { %v2716_v7 = vadd.f32 %v2555_v56, %v6643_v22  ;;  %v2557_v55 = vpop.permute.xlu1 %2556 }
 0x309   :  { %v3365_v57 = vsel %vm3236_vm8, %v3171_v35, %v3301_v41  ;;  %v3588_v52 = vadd.f32 %v3524_v2, %v3460_v24  ;;  %v3203_v33 = vadd.f32 %v6205_v13, %v3132_v38  ;;  %v2717_v49 = vadd.f32 %v2557_v55, %v6644_v29 }
 0x30a   :  { %v3429_v36 = vmul.f32 %v3874_v26, %v3365_v57  ;;  %v3101_v40 = vadd.f32 %v6169_v31, %v2716_v7 }
 0x30b   :  { %3652 = vst.msk [vmem:[#allocation10 + $0x1e0] sm:$0xff] %vm65_vm0, %v3588_v52  ;;  %vm3268_vm10 = vcmp.gt.f32.partialorder %v3203_v33, 0.0  ;;  %v3333_v62 = vmul.f32 %v5654_v37, %v3203_v33  ;;  %v3102_v39 = vadd.f32 %v6178_v8, %v2717_v49  ;;  %v2619_v45 = vpop.permute.xlu0 %2618 }
 0x30c   :  { %v3557_v4 = vadd.f32 %v3493_v9, %v3429_v36  ;;  %v3172_v50 = vadd.f32 %v6205_v13, %v3101_v40  ;;  %v2748_v0 = vadd.f32 %v2619_v45, %v6645_v60  ;;  %v2621_v43 = vpop.permute.xlu1 %2620 }
 0x30d   :  { %v3397_v14 = vsel %vm3268_vm10, %v3203_v33, %v3333_v62  ;;  %v3173_v15 = vadd.f32 %v6205_v13, %v3102_v39  ;;  %v2749_v51 = vadd.f32 %v2621_v43, %v5999_v1  ;;  %v3495_v1 = vld [vmem:[#allocation7 + $0xf8] sm:$0xff] }
 0x30e   :  { %3621 = vst.msk [vmem:[#allocation10 + $0xe8] sm:$0xff] %vm65_vm0, %v3557_v4  ;;  %v3461_v5 = vmul.f32 %v3875_v12, %v3397_v14  ;;  %vm3237_vm11 = vcmp.gt.f32.partialorder %v3172_v50, 0.0  ;;  %v3302_v31 = vmul.f32 %v5654_v37, %v3172_v50  ;;  %v3133_v8 = vadd.f32 %v6188_v18, %v2748_v0 }
 0x30f   :  { %vm3238_vm12 = vcmp.gt.f32.partialorder %v3173_v15, 0.0  ;;  %v3303_v17 = vmul.f32 %v5654_v37, %v3173_v15  ;;  %v3134_v20 = vadd.f32 %v6195_v63, %v2749_v51 }
 0x310   :  { %v3589_v61 = vadd.f32 %v3525_v34, %v3461_v5  ;;  %v3366_v21 = vsel %vm3237_vm11, %v3172_v50, %v3302_v31  ;;  %v3204_v47 = vadd.f32 %v6205_v13, %v3133_v8 }
 0x311   :  { %v3430_v30 = vmul.f32 %v3876_v3, %v3366_v21  ;;  %v3367_v6 = vsel %vm3238_vm12, %v3173_v15, %v3303_v17  ;;  %v3205_v25 = vadd.f32 %v6205_v13, %v3134_v20  ;;  %v3879_v13 = vld [vmem:[#allocation4 + $0x1f8] sm:$0xff] }
 0x312   :  { %3653 = vst.msk [vmem:[#allocation10 + $0x1e8] sm:$0xff] %vm65_vm0, %v3589_v61  ;;  %v3431_v18 = vmul.f32 %v3877_v54, %v3367_v6  ;;  %vm3269_vm13 = vcmp.gt.f32.partialorder %v3204_v47, 0.0  ;;  %v3334_v10 = vmul.f32 %v5654_v37, %v3204_v47 }
 0x313   :  { %v3558_v42 = vadd.f32 %v3494_v53, %v3430_v30  ;;  %vm3270_vm14 = vcmp.gt.f32.partialorder %v3205_v25, 0.0  ;;  %v3335_v63 = vmul.f32 %v5654_v37, %v3205_v25 }
 0x314   :  { %v3559_v44 = vadd.f32 %v3495_v1, %v3431_v18  ;;  %v3398_v58 = vsel %vm3269_vm13, %v3204_v47, %v3334_v10 }
 0x315   :  { %3622 = vst.msk [vmem:[#allocation10 + $0xf0] sm:$0xff] %vm65_vm0, %v3558_v42  ;;  %v3462_v48 = vmul.f32 %v3878_v11, %v3398_v58  ;;  %v3399_v32 = vsel %vm3270_vm14, %v3205_v25, %v3335_v63 }
 0x316   :  { %3623 = vst.msk [vmem:[#allocation10 + $0xf8] sm:$0xff] %vm65_vm0, %v3559_v44  ;;  %v3463_v35 = vmul.f32 %v3879_v13, %v3399_v32 }
 0x317   :  { %v3590_v28 = vadd.f32 %v3526_v59, %v3462_v48 }
 0x318   :  { %v3591_v19 = vadd.f32 %v3527_v16, %v3463_v35 }
 0x319   :  { %3654 = vst.msk [vmem:[#allocation10 + $0x1f0] sm:$0xff] %vm65_vm0, %v3590_v28 }
 0x31a   :  { %3655 = vst.msk [vmem:[#allocation10 + $0x1f8] sm:$0xff] %vm65_vm0, %v3591_v19 }
 0x31b   :  { %3957 = shalt.err (!%p3954_p0)
}
 0x31c   :  { %s3958_s15 = scalar_lea.hbm %s6405_s5, 8192 }
 0x31d   :  { %p3959_p1 = scmp.ne.s32.totalorder %s6405_s5, %s3958_s15  ;;  %p3962_p2 = scmp.lt.u32.totalorder %s3958_s15, %s6405_s5 }
 0x31f   :  { %p3964_p3 = pnand %p3962_p2, %p3959_p1 }
 0x321   :  { %3967 = shalt.err (!%p3964_p3)
}
 0x322   :  { %3667 = dma.vmem_to_hbm [thread:$0]  %s3662_s11, 8192, %s6405_s5, [#allocation6], %s3976_s30, %s3976_s30, %s3977_s6  }
 0x323   :  { %3972 = dma.done.wait [#allocation6], 8192  }
 0x324   :  { %3973 = vsyncadd [#allocation6], 4294959104 }
 0x325   :  { %3671 = vsyncpa [#allocation5], 1 }
 0x326   :  { %3672 = vsyncpa [#allocation8], 1 }
 0x327   :  { %3673 = vsyncpa [#allocation6], 1 }

</bundles_post_ra>
